<compile_context>
chip_gen: v7x
topology: tpu7x:2x2x1
jax: 0.10.0
libtpu: 0.0.40
codegen_flags: <defaults>
</compile_context>

<pallas_src>
import functools

import jax
import jax.numpy as jnp
from jax.experimental import pallas as pl
from jax.experimental.pallas import tpu as pltpu


# --------------------------------------------------------------------------- #
# Kernel: one (possibly packed) graph mini-batch per grid step.
# --------------------------------------------------------------------------- #
def _graph_classifier_kernel(node_feat_ref, adj_ref, subg_ref,
                             w_n2l_ref, b_n2l_ref,
                             w_conv_ref, b_conv_ref,
                             w_out_ref, b_out_ref,
                             w_h1_ref, b_h1_ref,
                             w_last_ref, b_last_ref,
                             logits_ref,
                             *, max_lv, num_classes, batch_rows):
    f32 = jnp.float32
    cdt = w_conv_ref.dtype          # matmul operand dtype (bf16 perf / f32 check)

    # ---- hoisted loads (the max_lv loop below is a static unroll) ----
    x = node_feat_ref[...].astype(cdt)        # [N_pad, F_pad]
    # int8 0/1 adjacency widened ONCE to the matmul dtype, reused max_lv times.
    adj = adj_ref[...].astype(cdt)            # [N_pad, N_pad]
    subg = subg_ref[...].astype(cdt)          # [B_pad, N_pad]
    w_n2l, b_n2l = w_n2l_ref[...], b_n2l_ref[...]
    w_conv, b_conv = w_conv_ref[...], b_conv_ref[...]
    w_out, b_out = w_out_ref[...], b_out_ref[...]
    w_h1, b_h1 = w_h1_ref[...], b_h1_ref[...]
    w_last, b_last = w_last_ref[...], b_last_ref[...]

    # ---- EmbedMeanField (mean_field, dense 0/1 adjacency, no edge feats) ----
    input_msg = jnp.dot(x, w_n2l, preferred_element_type=f32) + b_n2l
    cur = jnp.maximum(input_msg, 0.0)
    # Fold the per-round conv bias into the skip term once (broadcast hoisted
    # out of the unrolled loop; JAX does not CSE broadcast_in_dim).
    skip = input_msg + b_conv
    for _ in range(max_lv):
        # Dominant O(N^2 * latent) matmul: bf16/f32 operands, f32 accumulation.
        pooled = jnp.dot(adj, cur.astype(cdt), preferred_element_type=f32)
        lin = jnp.dot(pooled.astype(cdt), w_conv, preferred_element_type=f32)
        cur = jnp.maximum(lin + skip, 0.0)

    # Per-node output projection (out_dim > 0 branch of EmbedMeanField).
    reluact = jnp.maximum(
        jnp.dot(cur.astype(cdt), w_out, preferred_element_type=f32) + b_out, 0.0)

    # Global pooling per graph (subg_sp spmm) + relu -> graph embedding.
    embed = jnp.maximum(
        jnp.dot(subg, reluact.astype(cdt), preferred_element_type=f32), 0.0)

    # ---- MLPClassifier: hidden + relu, last linear, log_softmax(dim=1) ----
    h = jnp.maximum(
        jnp.dot(embed.astype(cdt), w_h1, preferred_element_type=f32) + b_h1, 0.0)
    raw = jnp.dot(h.astype(cdt), w_last, preferred_element_type=f32) + b_last

    # Masked, numerically stable log-softmax over the first `num_classes`
    # lanes; zero both the padded class lanes and the padded batch rows so the
    # raw padded output slab contains no garbage.
    cls_id = jax.lax.broadcasted_iota(jnp.int32, raw.shape, 1)
    row_id = jax.lax.broadcasted_iota(jnp.int32, raw.shape, 0)
    valid_c = cls_id < num_classes
    valid_r = row_id < batch_rows
    raw_m = jnp.where(valid_c, raw, jnp.float32(-1e30))
    m = jnp.max(raw_m, axis=1, keepdims=True)
    shifted = raw_m - m
    lse = jnp.log(jnp.sum(jnp.where(valid_c, jnp.exp(shifted), 0.0),
                          axis=1, keepdims=True))
    logits_ref[...] = jnp.where(valid_c & valid_r, shifted - lse, 0.0)


# --------------------------------------------------------------------------- #
# Wrapper helpers
# --------------------------------------------------------------------------- #
def _round_up(x, m):
    return ((x + m - 1) // m) * m


def _pad_to(a, shape):
    return jnp.pad(a, [(0, t - s) for s, t in zip(a.shape, shape)])


def _block_diag(blocks):
    rows = sum(b.shape[0] for b in blocks)
    cols = sum(b.shape[1] for b in blocks)
    out = jnp.zeros((rows, cols), blocks[0].dtype)
    r = c = 0
    for b in blocks:
        out = out.at[r:r + b.shape[0], c:c + b.shape[1]].set(b)
        r += b.shape[0]
        c += b.shape[1]
    return out


def _vmem_capacity_bytes():
    try:
        return int(pltpu.get_tpu_info().vmem_capacity_bytes)
    except Exception:
        return 64 << 20      # conservative fallback valid on every generation


# --------------------------------------------------------------------------- #
# Forward pass
# --------------------------------------------------------------------------- #
def graph_classifier_forward(node_feat, adj, subg, params, labels=None, *,
                             max_lv=3, compute_dtype=jnp.bfloat16,
                             pack_graphs=True, pack_node_limit=2048):
    """Forward pass.  Accepts a single mini-batch (2-D inputs) or a stack of
    G mini-batches (leading axis).  Small mini-batches are packed into one
    block-diagonal slab; otherwise one mini-batch per grid step."""
    squeeze_g = node_feat.ndim == 2
    if squeeze_g:
        node_feat, adj, subg = node_feat[None], adj[None], subg[None]
        if labels is not None:
            labels = labels[None]

    orig_G = node_feat.shape[0]
    orig_B = subg.shape[1]

    G, N, F = node_feat.shape
    B = subg.shape[1]

    # Block-diagonal packing of small graph mini-batches (exact: graphs stay
    # disconnected blocks of the packed adjacency / pooling matrices).
    if pack_graphs and G > 1 and _round_up(G * N, 128) <= pack_node_limit:
        node_feat = node_feat.reshape(1, G * N, F)
        adj = _block_diag([adj[g] for g in range(G)])[None]
        subg = _block_diag([subg[g] for g in range(G)])[None]
        G, N, B = 1, G * N, G * B

    L = params["w_n2l"].shape[1]
    O = params["w_out"].shape[1]
    H = params["w_h1"].shape[1]
    C = params["w_last"].shape[1]

    LANE, SUB = 128, 8
    N_pad = _round_up(N, LANE)
    F_pad = _round_up(F, LANE)
    L_pad = _round_up(L, LANE)
    O_pad = _round_up(O, LANE)
    H_pad = _round_up(H, LANE)
    C_pad = _round_up(C, LANE)
    B_pad = _round_up(B, SUB)

    cdt = jnp.dtype(compute_dtype)
    cbytes = cdt.itemsize

    # Zero-padding is mathematically neutral everywhere except the final
    # softmax, which the kernel masks explicitly.
    # Adjacency: int8 straight from the 0/1 input (no f32 detour).
    # TODO(synk): assumes a binary adjacency (n2n_sp of s2v); weighted graphs
    #   would need compute_dtype storage instead of int8.
    x_p = _pad_to(node_feat.astype(jnp.float32), (G, N_pad, F_pad))
    adj_p = _pad_to(adj.astype(jnp.int8), (G, N_pad, N_pad))
    subg_p = _pad_to(subg.astype(jnp.float32), (G, B_pad, N_pad))

    # Weights in the matmul dtype (bf16 on the perf path), biases in f32.
    w_n2l = _pad_to(params["w_n2l"].astype(cdt), (F_pad, L_pad))
    b_n2l = _pad_to(params["b_n2l"].astype(jnp.float32), (1, L_pad))
    w_conv = _pad_to(params["w_conv"].astype(cdt), (L_pad, L_pad))
    b_conv = _pad_to(params["b_conv"].astype(jnp.float32), (1, L_pad))
    w_out = _pad_to(params["w_out"].astype(cdt), (L_pad, O_pad))
    b_out = _pad_to(params["b_out"].astype(jnp.float32), (1, O_pad))
    w_h1 = _pad_to(params["w_h1"].astype(cdt), (O_pad, H_pad))
    b_h1 = _pad_to(params["b_h1"].astype(jnp.float32), (1, H_pad))
    w_last = _pad_to(params["w_last"].astype(cdt), (H_pad, C_pad))
    b_last = _pad_to(params["b_last"].astype(jnp.float32), (1, C_pad))

    args = (x_p, adj_p, subg_p,
            w_n2l, b_n2l, w_conv, b_conv,
            w_out, b_out, w_h1, b_h1, w_last, b_last)

    # Advisory cost estimate (padded dims).
    flops_per_g = (2 * N_pad * F_pad * L_pad
                   + max_lv * (2 * N_pad * N_pad * L_pad + 2 * N_pad * L_pad * L_pad)
                   + 2 * N_pad * L_pad * O_pad
                   + 2 * B_pad * N_pad * O_pad
                   + 2 * B_pad * O_pad * H_pad
                   + 2 * B_pad * H_pad * C_pad)
    bytes_in = sum(int(a.size) * a.dtype.itemsize for a in args)
    bytes_out = G * B_pad * C_pad * 4
    cost = pl.CostEstimate(flops=int(G * flops_per_g),
                           transcendentals=int(G * B_pad * (C_pad + 1)),
                           bytes_accessed=int(bytes_in + bytes_out))

    vmem_cap = _vmem_capacity_bytes()
    kernel = functools.partial(_graph_classifier_kernel,
                               max_lv=max_lv, num_classes=C, batch_rows=B)

    def _call(single_buffer_adj):
        adj_kwargs = {"pipeline_mode": pl.Buffered(1)} if single_buffer_adj else {}
        n_adj_buf = 1 if single_buffer_adj else 2

        in_specs = ([pl.BlockSpec((None, N_pad, F_pad), lambda g: (g, 0, 0)),
                     pl.BlockSpec((None, N_pad, N_pad), lambda g: (g, 0, 0),
                                  **adj_kwargs),
                     pl.BlockSpec((None, B_pad, N_pad), lambda g: (g, 0, 0))]
                    + [pl.BlockSpec(a.shape, lambda g: (0, 0)) for a in args[3:]])
        out_specs = pl.BlockSpec((None, B_pad, C_pad), lambda g: (g, 0, 0))

        # VMEM budget (generation-aware): adjacency buffer(s) + widened copy,
        # double-buffered x/subg/out blocks, weights counted once (constant
        # index_map -> copy-elided), f32/bf16 working set, small margin.
        weight_bytes = sum(int(a.size) * a.dtype.itemsize for a in args[3:])
        need = (n_adj_buf * N_pad * N_pad * 1            # int8 adjacency block(s)
                + N_pad * N_pad * cbytes                  # widened adjacency copy
                + 2 * N_pad * F_pad * 4                   # node-feature blocks
                + 2 * B_pad * N_pad * 4                   # subg blocks
                + 2 * B_pad * C_pad * 4                   # output blocks
                + weight_bytes
                + 5 * N_pad * L_pad * 4                   # f32 working set
                + 2 * N_pad * max(L_pad, O_pad) * cbytes  # casted operands
                + (4 << 20))
        vmem_limit = int(min(max(need, 16 << 20), vmem_cap - (8 << 20)))

        return pl.pallas_call(
            kernel,
            out_shape=jax.ShapeDtypeStruct((G, B_pad, C_pad), jnp.float32),
            grid=(G,),
            in_specs=in_specs,
            out_specs=out_specs,
            compiler_params=pltpu.CompilerParams(
                dimension_semantics=("parallel",),
                vmem_limit_bytes=vmem_limit),
            cost_estimate=cost,
        )(*args)

    try:
        logits_p = _call(True)
    except Exception:
        # Fallback if this JAX version rejects single-buffering the adjacency.
        logits_p = _call(False)

    logits = logits_p[:, :B, :C].reshape(orig_G, orig_B, C)
    if squeeze_g:
        logits = logits[0]

    if labels is None:
        return logits

    # Glue: F.nll_loss (mean reduction) + prediction accuracy — tiny
    # reductions, kept outside the kernel.
    flat_logits = logits.reshape(-1, C)
    flat_labels = labels.reshape(-1)
    loss = -jnp.mean(flat_logits[jnp.arange(flat_labels.shape[0]), flat_labels])
    pred = jnp.argmax(flat_logits, axis=1)
    acc = (pred == flat_labels).reshape(labels.shape)
    return logits, loss, acc


# --------------------------------------------------------------------------- #
# Pure-JAX reference (for sanity checking the kernel)
# --------------------------------------------------------------------------- #
def _reference_forward(node_feat, adj, subg, params, *, max_lv):
    hp = jax.lax.Precision.HIGHEST
    dot = lambda a, b: jnp.dot(a, b, precision=hp)
    input_msg = dot(node_feat, params["w_n2l"]) + params["b_n2l"]
    cur = jnp.maximum(input_msg, 0.0)
    for _ in range(max_lv):
        pooled = dot(adj, cur)
        cur = jnp.maximum(dot(pooled, params["w_conv"]) + params["b_conv"]
                          + input_msg, 0.0)
    reluact = jnp.maximum(dot(cur, params["w_out"]) + params["b_out"], 0.0)
    embed = jnp.maximum(dot(subg, reluact), 0.0)
    h = jnp.maximum(dot(embed, params["w_h1"]) + params["b_h1"], 0.0)
    raw = dot(h, params["w_last"]) + params["b_last"]
    return jax.nn.log_softmax(raw, axis=1)


def init_params(key, feat_dim, latent_dim, out_dim, hidden, num_classes):
    """Deterministic synthetic weights (shapes follow EmbedMeanField + MLPClassifier)."""
    ks = jax.random.split(key, 5)

    def linear(k, fan_in, fan_out):
        w = 0.1 * jax.random.normal(k, (fan_in, fan_out), jnp.float32)
        b = jnp.zeros((1, fan_out), jnp.float32)
        return w, b

    w_n2l, b_n2l = linear(ks[0], feat_dim, latent_dim)      # node feat -> latent
    w_conv, b_conv = linear(ks[1], latent_dim, latent_dim)  # message-passing conv
    w_out, b_out = linear(ks[2], latent_dim, out_dim)       # per-node output proj
    w_h1, b_h1 = linear(ks[3], out_dim, hidden)             # MLP hidden
    w_last, b_last = linear(ks[4], hidden, num_classes)     # classifier
    return dict(w_n2l=w_n2l, b_n2l=b_n2l, w_conv=w_conv, b_conv=b_conv,
                w_out=w_out, b_out=b_out, w_h1=w_h1, b_h1=b_h1,
                w_last=w_last, b_last=b_last)


if __name__ == "__main__":
    key = jax.random.PRNGKey(0)
    G = 2                       # graph mini-batches (block-diagonally packed)
    B, N, feat_dim = 2, 16, 4
    latent_dim, out_dim, hidden, num_classes, max_lv = 32, 32, 32, 20, 3

    k_par, k_data = jax.random.split(key)
    params = init_params(k_par, feat_dim, latent_dim, out_dim, hidden, num_classes)

    # PrepareFeatureLabel equivalent (synthetic): dense node features,
    # symmetric 0/1 adjacency, per-graph membership pooling matrix, labels.
    node_feats, adjs, subgs, labels = [], [], [], []
    for g, kg in enumerate(jax.random.split(k_data, G)):
        k_feat, k_adj, k_lbl = jax.random.split(kg, 3)
        nf = jax.random.normal(k_feat, (N, feat_dim), jnp.float32)
        upper = jnp.triu(jax.random.bernoulli(k_adj, 0.3, (N, N)), 1)
        a = (upper | upper.T).astype(jnp.float32)
        node_graph = jnp.concatenate(
            [jnp.zeros(N // 2, jnp.int32), jnp.ones(N - N // 2, jnp.int32)])
        sg = (node_graph[None, :] == jnp.arange(B)[:, None]).astype(jnp.float32)
        lbl = jax.random.randint(k_lbl, (B,), 0, num_classes)
        node_feats.append(nf); adjs.append(a); subgs.append(sg); labels.append(lbl)

    node_feat = jnp.stack(node_feats)   # [G, N, feat_dim]
    adj = jnp.stack(adjs)               # [G, N, N]
    subg = jnp.stack(subgs)             # [G, B, N]
    labels = jnp.stack(labels)          # [G, B]

    ref_logits = jnp.stack([
        _reference_forward(node_feat[g], adj[g], subg[g], params, max_lv=max_lv)
        for g in range(G)])

    # Accuracy check 1: full-f32 matmul path.
    logits_f32 = graph_classifier_forward(
        node_feat, adj, subg, params, max_lv=max_lv, compute_dtype=jnp.float32)
    assert jnp.allclose(logits_f32, ref_logits, atol=1e-2, rtol=1e-2)

    # Accuracy check 2: bf16 performance path (looser tolerance).
    logits_bf16 = graph_classifier_forward(
        node_feat, adj, subg, params, max_lv=max_lv, compute_dtype=jnp.bfloat16)
    assert jnp.allclose(logits_bf16, ref_logits, atol=5e-2, rtol=5e-2)

    # Performance path with loss / accuracy glue.
    logits, loss, acc = graph_classifier_forward(
        node_feat, adj, subg, params, labels, max_lv=max_lv,
        compute_dtype=jnp.bfloat16)
    jax.block_until_ready((logits, loss, acc))
    assert logits.shape == (G, B, num_classes)
    assert bool(jnp.all(jnp.isfinite(logits)))
    assert bool(jnp.isfinite(loss))
    assert acc.shape == (G, B)
    print("KERNEL_OK")
</pallas_src>

<mosaic_0001>
module attributes {stable_mosaic.version = 11 : i64} {
  func.func @_graph_classifier_kernel(%arg0: i32, %arg1: memref<1x128x128xf32, #tpu.memory_space<vmem>>, %arg2: memref<1x128x128xi8, #tpu.memory_space<vmem>>, %arg3: memref<1x8x128xf32, #tpu.memory_space<vmem>>, %arg4: memref<128x128xf32, #tpu.memory_space<vmem>>, %arg5: memref<1x128xf32, #tpu.memory_space<vmem>>, %arg6: memref<128x128xf32, #tpu.memory_space<vmem>>, %arg7: memref<1x128xf32, #tpu.memory_space<vmem>>, %arg8: memref<128x128xf32, #tpu.memory_space<vmem>>, %arg9: memref<1x128xf32, #tpu.memory_space<vmem>>, %arg10: memref<128x128xf32, #tpu.memory_space<vmem>>, %arg11: memref<1x128xf32, #tpu.memory_space<vmem>>, %arg12: memref<128x128xf32, #tpu.memory_space<vmem>>, %arg13: memref<1x128xf32, #tpu.memory_space<vmem>>, %arg14: memref<1x8x128xf32, #tpu.memory_space<vmem>>) attributes {dimension_semantics = [#tpu.dimension_semantics<parallel>], iteration_bounds = array<i64: 1>, scalar_prefetch = 0 : i64, scratch_operands = 0 : i64, tpu.core_type = #tpu.core_type<tc>, window_params = [{transform_indices = @transform_0, window_bounds = array<i64: 1, 128, 128>}, {pipeline_mode = #tpu.pipeline_mode<synchronous>, transform_indices = @transform_1, window_bounds = array<i64: 1, 128, 128>}, {transform_indices = @transform_2, window_bounds = array<i64: 1, 8, 128>}, {pipeline_mode = #tpu.pipeline_mode<synchronous>, transform_indices = @transform_3, window_bounds = array<i64: 128, 128>}, {pipeline_mode = #tpu.pipeline_mode<synchronous>, transform_indices = @transform_4, window_bounds = array<i64: 1, 128>}, {pipeline_mode = #tpu.pipeline_mode<synchronous>, transform_indices = @transform_5, window_bounds = array<i64: 128, 128>}, {pipeline_mode = #tpu.pipeline_mode<synchronous>, transform_indices = @transform_6, window_bounds = array<i64: 1, 128>}, {pipeline_mode = #tpu.pipeline_mode<synchronous>, transform_indices = @transform_7, window_bounds = array<i64: 128, 128>}, {pipeline_mode = #tpu.pipeline_mode<synchronous>, transform_indices = @transform_8, window_bounds = array<i64: 1, 128>}, {pipeline_mode = #tpu.pipeline_mode<synchronous>, transform_indices = @transform_9, window_bounds = array<i64: 128, 128>}, {pipeline_mode = #tpu.pipeline_mode<synchronous>, transform_indices = @transform_10, window_bounds = array<i64: 1, 128>}, {pipeline_mode = #tpu.pipeline_mode<synchronous>, transform_indices = @transform_11, window_bounds = array<i64: 128, 128>}, {pipeline_mode = #tpu.pipeline_mode<synchronous>, transform_indices = @transform_12, window_bounds = array<i64: 1, 128>}, {transform_indices = @transform_13, window_bounds = array<i64: 1, 8, 128>}]} {
    %c0 = arith.constant 0 : index
    %c0_0 = arith.constant 0 : index
    %c0_1 = arith.constant 0 : index
    %0 = vector.load %arg1[%c0, %c0_0, %c0_1] : memref<1x128x128xf32, #tpu.memory_space<vmem>>, vector<1x128x128xf32>
    %1 = vector.shape_cast %0 : vector<1x128x128xf32> to vector<128x128xf32>
    %c0_2 = arith.constant 0 : index
    %c0_3 = arith.constant 0 : index
    %c0_4 = arith.constant 0 : index
    %2 = vector.load %arg2[%c0_2, %c0_3, %c0_4] : memref<1x128x128xi8, #tpu.memory_space<vmem>>, vector<1x128x128xi8>
    %3 = vector.shape_cast %2 : vector<1x128x128xi8> to vector<128x128xi8>
    %4 = arith.sitofp %3 : vector<128x128xi8> to vector<128x128xf32>
    %c0_5 = arith.constant 0 : index
    %c0_6 = arith.constant 0 : index
    %c0_7 = arith.constant 0 : index
    %5 = vector.load %arg3[%c0_5, %c0_6, %c0_7] : memref<1x8x128xf32, #tpu.memory_space<vmem>>, vector<1x8x128xf32>
    %6 = vector.shape_cast %5 : vector<1x8x128xf32> to vector<8x128xf32>
    %c0_8 = arith.constant 0 : index
    %c0_9 = arith.constant 0 : index
    %7 = vector.load %arg4[%c0_8, %c0_9] : memref<128x128xf32, #tpu.memory_space<vmem>>, vector<128x128xf32>
    %c0_10 = arith.constant 0 : index
    %c0_11 = arith.constant 0 : index
    %8 = vector.load %arg5[%c0_10, %c0_11] : memref<1x128xf32, #tpu.memory_space<vmem>>, vector<1x128xf32>
    %c0_12 = arith.constant 0 : index
    %c0_13 = arith.constant 0 : index
    %9 = vector.load %arg6[%c0_12, %c0_13] : memref<128x128xf32, #tpu.memory_space<vmem>>, vector<128x128xf32>
    %c0_14 = arith.constant 0 : index
    %c0_15 = arith.constant 0 : index
    %10 = vector.load %arg7[%c0_14, %c0_15] : memref<1x128xf32, #tpu.memory_space<vmem>>, vector<1x128xf32>
    %c0_16 = arith.constant 0 : index
    %c0_17 = arith.constant 0 : index
    %11 = vector.load %arg8[%c0_16, %c0_17] : memref<128x128xf32, #tpu.memory_space<vmem>>, vector<128x128xf32>
    %c0_18 = arith.constant 0 : index
    %c0_19 = arith.constant 0 : index
    %12 = vector.load %arg9[%c0_18, %c0_19] : memref<1x128xf32, #tpu.memory_space<vmem>>, vector<1x128xf32>
    %c0_20 = arith.constant 0 : index
    %c0_21 = arith.constant 0 : index
    %13 = vector.load %arg10[%c0_20, %c0_21] : memref<128x128xf32, #tpu.memory_space<vmem>>, vector<128x128xf32>
    %c0_22 = arith.constant 0 : index
    %c0_23 = arith.constant 0 : index
    %14 = vector.load %arg11[%c0_22, %c0_23] : memref<1x128xf32, #tpu.memory_space<vmem>>, vector<1x128xf32>
    %c0_24 = arith.constant 0 : index
    %c0_25 = arith.constant 0 : index
    %15 = vector.load %arg12[%c0_24, %c0_25] : memref<128x128xf32, #tpu.memory_space<vmem>>, vector<128x128xf32>
    %c0_26 = arith.constant 0 : index
    %c0_27 = arith.constant 0 : index
    %16 = vector.load %arg13[%c0_26, %c0_27] : memref<1x128xf32, #tpu.memory_space<vmem>>, vector<1x128xf32>
    %cst = arith.constant dense<0.000000e+00> : vector<128x128xf32>
    %17 = tpu.matmul %1, %7, %cst {dimension_numbers = #tpu.dot_dimension_numbers<[1], [0], [0], [1], [0, 0, 1, 1], [], []>} : vector<128x128xf32>, vector<128x128xf32>, vector<128x128xf32> -> vector<128x128xf32>
    %18 = vector.broadcast %8 : vector<1x128xf32> to vector<128x128xf32>
    %19 = arith.addf %17, %18 : vector<128x128xf32>
    %cst_28 = arith.constant 0.000000e+00 : f32
    %20 = vector.broadcast %cst_28 : f32 to vector<128x128xf32>
    %21 = arith.maximumf %19, %20 : vector<128x128xf32>
    %22 = vector.broadcast %10 : vector<1x128xf32> to vector<128x128xf32>
    %23 = arith.addf %19, %22 : vector<128x128xf32>
    %cst_29 = arith.constant dense<0.000000e+00> : vector<128x128xf32>
    %24 = tpu.matmul %4, %21, %cst_29 {dimension_numbers = #tpu.dot_dimension_numbers<[1], [0], [0], [1], [0, 0, 1, 1], [], []>} : vector<128x128xf32>, vector<128x128xf32>, vector<128x128xf32> -> vector<128x128xf32>
    %cst_30 = arith.constant dense<0.000000e+00> : vector<128x128xf32>
    %25 = tpu.matmul %24, %9, %cst_30 {dimension_numbers = #tpu.dot_dimension_numbers<[1], [0], [0], [1], [0, 0, 1, 1], [], []>} : vector<128x128xf32>, vector<128x128xf32>, vector<128x128xf32> -> vector<128x128xf32>
    %26 = arith.addf %25, %23 : vector<128x128xf32>
    %cst_31 = arith.constant 0.000000e+00 : f32
    %27 = vector.broadcast %cst_31 : f32 to vector<128x128xf32>
    %28 = arith.maximumf %26, %27 : vector<128x128xf32>
    %cst_32 = arith.constant dense<0.000000e+00> : vector<128x128xf32>
    %29 = tpu.matmul %4, %28, %cst_32 {dimension_numbers = #tpu.dot_dimension_numbers<[1], [0], [0], [1], [0, 0, 1, 1], [], []>} : vector<128x128xf32>, vector<128x128xf32>, vector<128x128xf32> -> vector<128x128xf32>
    %cst_33 = arith.constant dense<0.000000e+00> : vector<128x128xf32>
    %30 = tpu.matmul %29, %9, %cst_33 {dimension_numbers = #tpu.dot_dimension_numbers<[1], [0], [0], [1], [0, 0, 1, 1], [], []>} : vector<128x128xf32>, vector<128x128xf32>, vector<128x128xf32> -> vector<128x128xf32>
    %31 = arith.addf %30, %23 : vector<128x128xf32>
    %cst_34 = arith.constant 0.000000e+00 : f32
    %32 = vector.broadcast %cst_34 : f32 to vector<128x128xf32>
    %33 = arith.maximumf %31, %32 : vector<128x128xf32>
    %cst_35 = arith.constant dense<0.000000e+00> : vector<128x128xf32>
    %34 = tpu.matmul %4, %33, %cst_35 {dimension_numbers = #tpu.dot_dimension_numbers<[1], [0], [0], [1], [0, 0, 1, 1], [], []>} : vector<128x128xf32>, vector<128x128xf32>, vector<128x128xf32> -> vector<128x128xf32>
    %cst_36 = arith.constant dense<0.000000e+00> : vector<128x128xf32>
    %35 = tpu.matmul %34, %9, %cst_36 {dimension_numbers = #tpu.dot_dimension_numbers<[1], [0], [0], [1], [0, 0, 1, 1], [], []>} : vector<128x128xf32>, vector<128x128xf32>, vector<128x128xf32> -> vector<128x128xf32>
    %36 = arith.addf %35, %23 : vector<128x128xf32>
    %cst_37 = arith.constant 0.000000e+00 : f32
    %37 = vector.broadcast %cst_37 : f32 to vector<128x128xf32>
    %38 = arith.maximumf %36, %37 : vector<128x128xf32>
    %cst_38 = arith.constant dense<0.000000e+00> : vector<128x128xf32>
    %39 = tpu.matmul %38, %11, %cst_38 {dimension_numbers = #tpu.dot_dimension_numbers<[1], [0], [0], [1], [0, 0, 1, 1], [], []>} : vector<128x128xf32>, vector<128x128xf32>, vector<128x128xf32> -> vector<128x128xf32>
    %40 = vector.broadcast %12 : vector<1x128xf32> to vector<128x128xf32>
    %41 = arith.addf %39, %40 : vector<128x128xf32>
    %cst_39 = arith.constant 0.000000e+00 : f32
    %42 = vector.broadcast %cst_39 : f32 to vector<128x128xf32>
    %43 = arith.maximumf %41, %42 : vector<128x128xf32>
    %cst_40 = arith.constant dense<0.000000e+00> : vector<8x128xf32>
    %44 = tpu.matmul %6, %43, %cst_40 {dimension_numbers = #tpu.dot_dimension_numbers<[1], [0], [0], [1], [0, 0, 1, 1], [], []>} : vector<8x128xf32>, vector<128x128xf32>, vector<8x128xf32> -> vector<8x128xf32>
    %cst_41 = arith.constant 0.000000e+00 : f32
    %45 = vector.broadcast %cst_41 : f32 to vector<8x128xf32>
    %46 = arith.maximumf %44, %45 : vector<8x128xf32>
    %cst_42 = arith.constant dense<0.000000e+00> : vector<8x128xf32>
    %47 = tpu.matmul %46, %13, %cst_42 {dimension_numbers = #tpu.dot_dimension_numbers<[1], [0], [0], [1], [0, 0, 1, 1], [], []>} : vector<8x128xf32>, vector<128x128xf32>, vector<8x128xf32> -> vector<8x128xf32>
    %48 = vector.broadcast %14 : vector<1x128xf32> to vector<8x128xf32>
    %49 = arith.addf %47, %48 : vector<8x128xf32>
    %cst_43 = arith.constant 0.000000e+00 : f32
    %50 = vector.broadcast %cst_43 : f32 to vector<8x128xf32>
    %51 = arith.maximumf %49, %50 : vector<8x128xf32>
    %cst_44 = arith.constant dense<0.000000e+00> : vector<8x128xf32>
    %52 = tpu.matmul %51, %15, %cst_44 {dimension_numbers = #tpu.dot_dimension_numbers<[1], [0], [0], [1], [0, 0, 1, 1], [], []>} : vector<8x128xf32>, vector<128x128xf32>, vector<8x128xf32> -> vector<8x128xf32>
    %53 = vector.broadcast %16 : vector<1x128xf32> to vector<8x128xf32>
    %54 = arith.addf %52, %53 : vector<8x128xf32>
    %55 = tpu.iota {dimensions = array<i32: 1>} : vector<8x128xi32>
    %56 = tpu.iota {dimensions = array<i32: 0>} : vector<8x128xi32>
    %c20_i32 = arith.constant 20 : i32
    %57 = vector.broadcast %c20_i32 : i32 to vector<8x128xi32>
    %58 = arith.cmpi slt, %55, %57 : vector<8x128xi32>
    %c4_i32 = arith.constant 4 : i32
    %59 = vector.broadcast %c4_i32 : i32 to vector<8x128xi32>
    %60 = arith.cmpi slt, %56, %59 : vector<8x128xi32>
    %cst_45 = arith.constant -1.000000e+30 : f32
    %61 = vector.broadcast %cst_45 : f32 to vector<8x128xf32>
    %62 = arith.select %58, %54, %61 : vector<8x128xi1>, vector<8x128xf32>
    %cst_46 = arith.constant dense<0xFF800000> : vector<8xf32>
    %63 = vector.multi_reduction <maximumf>, %62, %cst_46 [1] : vector<8x128xf32> to vector<8xf32>
    %64 = vector.shape_cast %63 : vector<8xf32> to vector<8x1xf32>
    %65 = vector.broadcast %64 : vector<8x1xf32> to vector<8x128xf32>
    %66 = arith.subf %62, %65 : vector<8x128xf32>
    %67 = math.exp %66 : vector<8x128xf32>
    %cst_47 = arith.constant 0.000000e+00 : f32
    %68 = vector.broadcast %cst_47 : f32 to vector<8x128xf32>
    %69 = arith.select %58, %67, %68 : vector<8x128xi1>, vector<8x128xf32>
    %cst_48 = arith.constant dense<0.000000e+00> : vector<8xf32>
    %70 = vector.multi_reduction <add>, %69, %cst_48 [1] : vector<8x128xf32> to vector<8xf32>
    %71 = vector.shape_cast %70 : vector<8xf32> to vector<8x1xf32>
    %72 = math.log %71 : vector<8x1xf32>
    %73 = arith.andi %58, %60 : vector<8x128xi1>
    %74 = vector.broadcast %72 : vector<8x1xf32> to vector<8x128xf32>
    %75 = arith.subf %66, %74 : vector<8x128xf32>
    %cst_49 = arith.constant 0.000000e+00 : f32
    %76 = vector.broadcast %cst_49 : f32 to vector<8x128xf32>
    %77 = arith.select %73, %75, %76 : vector<8x128xi1>, vector<8x128xf32>
    %c0_50 = arith.constant 0 : index
    %c0_51 = arith.constant 0 : index
    %c0_52 = arith.constant 0 : index
    %78 = vector.load %arg14[%c0_50, %c0_51, %c0_52] : memref<1x8x128xf32, #tpu.memory_space<vmem>>, vector<1x8x128xf32>
    %79 = vector.shape_cast %78 : vector<1x8x128xf32> to vector<8x128xf32>
    %80 = vector.shape_cast %77 : vector<8x128xf32> to vector<1x8x128xf32>
    tpu.vector_store %arg14[%c0_50, %c0_51, %c0_52], %80 {strides = array<i32>} : memref<1x8x128xf32, #tpu.memory_space<vmem>>, vector<1x8x128xf32>,
    return
  }
  func.func @transform_0(%arg0: i32) -> (i32, i32, i32) {
    %c0_i32 = arith.constant 0 : i32
    %c0_i32_0 = arith.constant 0 : i32
    %c0_i32_1 = arith.constant 0 : i32
    return %arg0, %c0_i32, %c0_i32_0 : i32, i32, i32
  }
  func.func @transform_1(%arg0: i32) -> (i32, i32, i32) {
    %c0_i32 = arith.constant 0 : i32
    %c0_i32_0 = arith.constant 0 : i32
    %c0_i32_1 = arith.constant 0 : i32
    return %arg0, %c0_i32, %c0_i32_0 : i32, i32, i32
  }
  func.func @transform_2(%arg0: i32) -> (i32, i32, i32) {
    %c0_i32 = arith.constant 0 : i32
    %c0_i32_0 = arith.constant 0 : i32
    %c0_i32_1 = arith.constant 0 : i32
    return %arg0, %c0_i32, %c0_i32_0 : i32, i32, i32
  }
  func.func @transform_3(%arg0: i32) -> (i32, i32) {
    %c0_i32 = arith.constant 0 : i32
    %c0_i32_0 = arith.constant 0 : i32
    %c0_i32_1 = arith.constant 0 : i32
    return %c0_i32, %c0_i32_0 : i32, i32
  }
  func.func @transform_4(%arg0: i32) -> (i32, i32) {
    %c0_i32 = arith.constant 0 : i32
    %c0_i32_0 = arith.constant 0 : i32
    %c0_i32_1 = arith.constant 0 : i32
    return %c0_i32, %c0_i32_0 : i32, i32
  }
  func.func @transform_5(%arg0: i32) -> (i32, i32) {
    %c0_i32 = arith.constant 0 : i32
    %c0_i32_0 = arith.constant 0 : i32
    %c0_i32_1 = arith.constant 0 : i32
    return %c0_i32, %c0_i32_0 : i32, i32
  }
  func.func @transform_6(%arg0: i32) -> (i32, i32) {
    %c0_i32 = arith.constant 0 : i32
    %c0_i32_0 = arith.constant 0 : i32
    %c0_i32_1 = arith.constant 0 : i32
    return %c0_i32, %c0_i32_0 : i32, i32
  }
  func.func @transform_7(%arg0: i32) -> (i32, i32) {
    %c0_i32 = arith.constant 0 : i32
    %c0_i32_0 = arith.constant 0 : i32
    %c0_i32_1 = arith.constant 0 : i32
    return %c0_i32, %c0_i32_0 : i32, i32
  }
  func.func @transform_8(%arg0: i32) -> (i32, i32) {
    %c0_i32 = arith.constant 0 : i32
    %c0_i32_0 = arith.constant 0 : i32
    %c0_i32_1 = arith.constant 0 : i32
    return %c0_i32, %c0_i32_0 : i32, i32
  }
  func.func @transform_9(%arg0: i32) -> (i32, i32) {
    %c0_i32 = arith.constant 0 : i32
    %c0_i32_0 = arith.constant 0 : i32
    %c0_i32_1 = arith.constant 0 : i32
    return %c0_i32, %c0_i32_0 : i32, i32
  }
  func.func @transform_10(%arg0: i32) -> (i32, i32) {
    %c0_i32 = arith.constant 0 : i32
    %c0_i32_0 = arith.constant 0 : i32
    %c0_i32_1 = arith.constant 0 : i32
    return %c0_i32, %c0_i32_0 : i32, i32
  }
  func.func @transform_11(%arg0: i32) -> (i32, i32) {
    %c0_i32 = arith.constant 0 : i32
    %c0_i32_0 = arith.constant 0 : i32
    %c0_i32_1 = arith.constant 0 : i32
    return %c0_i32, %c0_i32_0 : i32, i32
  }
  func.func @transform_12(%arg0: i32) -> (i32, i32) {
    %c0_i32 = arith.constant 0 : i32
    %c0_i32_0 = arith.constant 0 : i32
    %c0_i32_1 = arith.constant 0 : i32
    return %c0_i32, %c0_i32_0 : i32, i32
  }
  func.func @transform_13(%arg0: i32) -> (i32, i32, i32) {
    %c0_i32 = arith.constant 0 : i32
    %c0_i32_0 = arith.constant 0 : i32
    %c0_i32_1 = arith.constant 0 : i32
    return %arg0, %c0_i32, %c0_i32_0 : i32, i32, i32
  }
}

module attributes {stable_mosaic.version = 11 : i64} {
  func.func @_graph_classifier_kernel(%arg0: i32, %arg1: memref<1x128x128xf32, #tpu.memory_space<vmem>>, %arg2: memref<1x128x128xi8, #tpu.memory_space<vmem>>, %arg3: memref<1x8x128xf32, #tpu.memory_space<vmem>>, %arg4: memref<128x128xf32, #tpu.memory_space<vmem>>, %arg5: memref<1x128xf32, #tpu.memory_space<vmem>>, %arg6: memref<128x128xf32, #tpu.memory_space<vmem>>, %arg7: memref<1x128xf32, #tpu.memory_space<vmem>>, %arg8: memref<128x128xf32, #tpu.memory_space<vmem>>, %arg9: memref<1x128xf32, #tpu.memory_space<vmem>>, %arg10: memref<128x128xf32, #tpu.memory_space<vmem>>, %arg11: memref<1x128xf32, #tpu.memory_space<vmem>>, %arg12: memref<128x128xf32, #tpu.memory_space<vmem>>, %arg13: memref<1x128xf32, #tpu.memory_space<vmem>>, %arg14: memref<1x8x128xf32, #tpu.memory_space<vmem>>) attributes {dimension_semantics = [#tpu.dimension_semantics<parallel>], iteration_bounds = array<i64: 1>, scalar_prefetch = 0 : i64, scratch_operands = 0 : i64, tpu.core_type = #tpu.core_type<tc>, window_params = [{transform_indices = @transform_0, window_bounds = array<i64: 1, 128, 128>}, {transform_indices = @transform_1, window_bounds = array<i64: 1, 128, 128>}, {transform_indices = @transform_2, window_bounds = array<i64: 1, 8, 128>}, {pipeline_mode = #tpu.pipeline_mode<synchronous>, transform_indices = @transform_3, window_bounds = array<i64: 128, 128>}, {pipeline_mode = #tpu.pipeline_mode<synchronous>, transform_indices = @transform_4, window_bounds = array<i64: 1, 128>}, {pipeline_mode = #tpu.pipeline_mode<synchronous>, transform_indices = @transform_5, window_bounds = array<i64: 128, 128>}, {pipeline_mode = #tpu.pipeline_mode<synchronous>, transform_indices = @transform_6, window_bounds = array<i64: 1, 128>}, {pipeline_mode = #tpu.pipeline_mode<synchronous>, transform_indices = @transform_7, window_bounds = array<i64: 128, 128>}, {pipeline_mode = #tpu.pipeline_mode<synchronous>, transform_indices = @transform_8, window_bounds = array<i64: 1, 128>}, {pipeline_mode = #tpu.pipeline_mode<synchronous>, transform_indices = @transform_9, window_bounds = array<i64: 128, 128>}, {pipeline_mode = #tpu.pipeline_mode<synchronous>, transform_indices = @transform_10, window_bounds = array<i64: 1, 128>}, {pipeline_mode = #tpu.pipeline_mode<synchronous>, transform_indices = @transform_11, window_bounds = array<i64: 128, 128>}, {pipeline_mode = #tpu.pipeline_mode<synchronous>, transform_indices = @transform_12, window_bounds = array<i64: 1, 128>}, {transform_indices = @transform_13, window_bounds = array<i64: 1, 8, 128>}]} {
    %c0 = arith.constant 0 : index
    %c0_0 = arith.constant 0 : index
    %c0_1 = arith.constant 0 : index
    %0 = vector.load %arg1[%c0, %c0_0, %c0_1] : memref<1x128x128xf32, #tpu.memory_space<vmem>>, vector<1x128x128xf32>
    %1 = vector.shape_cast %0 : vector<1x128x128xf32> to vector<128x128xf32>
    %c0_2 = arith.constant 0 : index
    %c0_3 = arith.constant 0 : index
    %c0_4 = arith.constant 0 : index
    %2 = vector.load %arg2[%c0_2, %c0_3, %c0_4] : memref<1x128x128xi8, #tpu.memory_space<vmem>>, vector<1x128x128xi8>
    %3 = vector.shape_cast %2 : vector<1x128x128xi8> to vector<128x128xi8>
    %4 = arith.sitofp %3 : vector<128x128xi8> to vector<128x128xf32>
    %c0_5 = arith.constant 0 : index
    %c0_6 = arith.constant 0 : index
    %c0_7 = arith.constant 0 : index
    %5 = vector.load %arg3[%c0_5, %c0_6, %c0_7] : memref<1x8x128xf32, #tpu.memory_space<vmem>>, vector<1x8x128xf32>
    %6 = vector.shape_cast %5 : vector<1x8x128xf32> to vector<8x128xf32>
    %c0_8 = arith.constant 0 : index
    %c0_9 = arith.constant 0 : index
    %7 = vector.load %arg4[%c0_8, %c0_9] : memref<128x128xf32, #tpu.memory_space<vmem>>, vector<128x128xf32>
    %c0_10 = arith.constant 0 : index
    %c0_11 = arith.constant 0 : index
    %8 = vector.load %arg5[%c0_10, %c0_11] : memref<1x128xf32, #tpu.memory_space<vmem>>, vector<1x128xf32>
    %c0_12 = arith.constant 0 : index
    %c0_13 = arith.constant 0 : index
    %9 = vector.load %arg6[%c0_12, %c0_13] : memref<128x128xf32, #tpu.memory_space<vmem>>, vector<128x128xf32>
    %c0_14 = arith.constant 0 : index
    %c0_15 = arith.constant 0 : index
    %10 = vector.load %arg7[%c0_14, %c0_15] : memref<1x128xf32, #tpu.memory_space<vmem>>, vector<1x128xf32>
    %c0_16 = arith.constant 0 : index
    %c0_17 = arith.constant 0 : index
    %11 = vector.load %arg8[%c0_16, %c0_17] : memref<128x128xf32, #tpu.memory_space<vmem>>, vector<128x128xf32>
    %c0_18 = arith.constant 0 : index
    %c0_19 = arith.constant 0 : index
    %12 = vector.load %arg9[%c0_18, %c0_19] : memref<1x128xf32, #tpu.memory_space<vmem>>, vector<1x128xf32>
    %c0_20 = arith.constant 0 : index
    %c0_21 = arith.constant 0 : index
    %13 = vector.load %arg10[%c0_20, %c0_21] : memref<128x128xf32, #tpu.memory_space<vmem>>, vector<128x128xf32>
    %c0_22 = arith.constant 0 : index
    %c0_23 = arith.constant 0 : index
    %14 = vector.load %arg11[%c0_22, %c0_23] : memref<1x128xf32, #tpu.memory_space<vmem>>, vector<1x128xf32>
    %c0_24 = arith.constant 0 : index
    %c0_25 = arith.constant 0 : index
    %15 = vector.load %arg12[%c0_24, %c0_25] : memref<128x128xf32, #tpu.memory_space<vmem>>, vector<128x128xf32>
    %c0_26 = arith.constant 0 : index
    %c0_27 = arith.constant 0 : index
    %16 = vector.load %arg13[%c0_26, %c0_27] : memref<1x128xf32, #tpu.memory_space<vmem>>, vector<1x128xf32>
    %cst = arith.constant dense<0.000000e+00> : vector<128x128xf32>
    %17 = tpu.matmul %1, %7, %cst {dimension_numbers = #tpu.dot_dimension_numbers<[1], [0], [0], [1], [0, 0, 1, 1], [], []>} : vector<128x128xf32>, vector<128x128xf32>, vector<128x128xf32> -> vector<128x128xf32>
    %18 = vector.broadcast %8 : vector<1x128xf32> to vector<128x128xf32>
    %19 = arith.addf %17, %18 : vector<128x128xf32>
    %cst_28 = arith.constant 0.000000e+00 : f32
    %20 = vector.broadcast %cst_28 : f32 to vector<128x128xf32>
    %21 = arith.maximumf %19, %20 : vector<128x128xf32>
    %22 = vector.broadcast %10 : vector<1x128xf32> to vector<128x128xf32>
    %23 = arith.addf %19, %22 : vector<128x128xf32>
    %cst_29 = arith.constant dense<0.000000e+00> : vector<128x128xf32>
    %24 = tpu.matmul %4, %21, %cst_29 {dimension_numbers = #tpu.dot_dimension_numbers<[1], [0], [0], [1], [0, 0, 1, 1], [], []>} : vector<128x128xf32>, vector<128x128xf32>, vector<128x128xf32> -> vector<128x128xf32>
    %cst_30 = arith.constant dense<0.000000e+00> : vector<128x128xf32>
    %25 = tpu.matmul %24, %9, %cst_30 {dimension_numbers = #tpu.dot_dimension_numbers<[1], [0], [0], [1], [0, 0, 1, 1], [], []>} : vector<128x128xf32>, vector<128x128xf32>, vector<128x128xf32> -> vector<128x128xf32>
    %26 = arith.addf %25, %23 : vector<128x128xf32>
    %cst_31 = arith.constant 0.000000e+00 : f32
    %27 = vector.broadcast %cst_31 : f32 to vector<128x128xf32>
    %28 = arith.maximumf %26, %27 : vector<128x128xf32>
    %cst_32 = arith.constant dense<0.000000e+00> : vector<128x128xf32>
    %29 = tpu.matmul %4, %28, %cst_32 {dimension_numbers = #tpu.dot_dimension_numbers<[1], [0], [0], [1], [0, 0, 1, 1], [], []>} : vector<128x128xf32>, vector<128x128xf32>, vector<128x128xf32> -> vector<128x128xf32>
    %cst_33 = arith.constant dense<0.000000e+00> : vector<128x128xf32>
    %30 = tpu.matmul %29, %9, %cst_33 {dimension_numbers = #tpu.dot_dimension_numbers<[1], [0], [0], [1], [0, 0, 1, 1], [], []>} : vector<128x128xf32>, vector<128x128xf32>, vector<128x128xf32> -> vector<128x128xf32>
    %31 = arith.addf %30, %23 : vector<128x128xf32>
    %cst_34 = arith.constant 0.000000e+00 : f32
    %32 = vector.broadcast %cst_34 : f32 to vector<128x128xf32>
    %33 = arith.maximumf %31, %32 : vector<128x128xf32>
    %cst_35 = arith.constant dense<0.000000e+00> : vector<128x128xf32>
    %34 = tpu.matmul %4, %33, %cst_35 {dimension_numbers = #tpu.dot_dimension_numbers<[1], [0], [0], [1], [0, 0, 1, 1], [], []>} : vector<128x128xf32>, vector<128x128xf32>, vector<128x128xf32> -> vector<128x128xf32>
    %cst_36 = arith.constant dense<0.000000e+00> : vector<128x128xf32>
    %35 = tpu.matmul %34, %9, %cst_36 {dimension_numbers = #tpu.dot_dimension_numbers<[1], [0], [0], [1], [0, 0, 1, 1], [], []>} : vector<128x128xf32>, vector<128x128xf32>, vector<128x128xf32> -> vector<128x128xf32>
    %36 = arith.addf %35, %23 : vector<128x128xf32>
    %cst_37 = arith.constant 0.000000e+00 : f32
    %37 = vector.broadcast %cst_37 : f32 to vector<128x128xf32>
    %38 = arith.maximumf %36, %37 : vector<128x128xf32>
    %cst_38 = arith.constant dense<0.000000e+00> : vector<128x128xf32>
    %39 = tpu.matmul %38, %11, %cst_38 {dimension_numbers = #tpu.dot_dimension_numbers<[1], [0], [0], [1], [0, 0, 1, 1], [], []>} : vector<128x128xf32>, vector<128x128xf32>, vector<128x128xf32> -> vector<128x128xf32>
    %40 = vector.broadcast %12 : vector<1x128xf32> to vector<128x128xf32>
    %41 = arith.addf %39, %40 : vector<128x128xf32>
    %cst_39 = arith.constant 0.000000e+00 : f32
    %42 = vector.broadcast %cst_39 : f32 to vector<128x128xf32>
    %43 = arith.maximumf %41, %42 : vector<128x128xf32>
    %cst_40 = arith.constant dense<0.000000e+00> : vector<8x128xf32>
    %44 = tpu.matmul %6, %43, %cst_40 {dimension_numbers = #tpu.dot_dimension_numbers<[1], [0], [0], [1], [0, 0, 1, 1], [], []>} : vector<8x128xf32>, vector<128x128xf32>, vector<8x128xf32> -> vector<8x128xf32>
    %cst_41 = arith.constant 0.000000e+00 : f32
    %45 = vector.broadcast %cst_41 : f32 to vector<8x128xf32>
    %46 = arith.maximumf %44, %45 : vector<8x128xf32>
    %cst_42 = arith.constant dense<0.000000e+00> : vector<8x128xf32>
    %47 = tpu.matmul %46, %13, %cst_42 {dimension_numbers = #tpu.dot_dimension_numbers<[1], [0], [0], [1], [0, 0, 1, 1], [], []>} : vector<8x128xf32>, vector<128x128xf32>, vector<8x128xf32> -> vector<8x128xf32>
    %48 = vector.broadcast %14 : vector<1x128xf32> to vector<8x128xf32>
    %49 = arith.addf %47, %48 : vector<8x128xf32>
    %cst_43 = arith.constant 0.000000e+00 : f32
    %50 = vector.broadcast %cst_43 : f32 to vector<8x128xf32>
    %51 = arith.maximumf %49, %50 : vector<8x128xf32>
    %cst_44 = arith.constant dense<0.000000e+00> : vector<8x128xf32>
    %52 = tpu.matmul %51, %15, %cst_44 {dimension_numbers = #tpu.dot_dimension_numbers<[1], [0], [0], [1], [0, 0, 1, 1], [], []>} : vector<8x128xf32>, vector<128x128xf32>, vector<8x128xf32> -> vector<8x128xf32>
    %53 = vector.broadcast %16 : vector<1x128xf32> to vector<8x128xf32>
    %54 = arith.addf %52, %53 : vector<8x128xf32>
    %55 = tpu.iota {dimensions = array<i32: 1>} : vector<8x128xi32>
    %56 = tpu.iota {dimensions = array<i32: 0>} : vector<8x128xi32>
    %c20_i32 = arith.constant 20 : i32
    %57 = vector.broadcast %c20_i32 : i32 to vector<8x128xi32>
    %58 = arith.cmpi slt, %55, %57 : vector<8x128xi32>
    %c4_i32 = arith.constant 4 : i32
    %59 = vector.broadcast %c4_i32 : i32 to vector<8x128xi32>
    %60 = arith.cmpi slt, %56, %59 : vector<8x128xi32>
    %cst_45 = arith.constant -1.000000e+30 : f32
    %61 = vector.broadcast %cst_45 : f32 to vector<8x128xf32>
    %62 = arith.select %58, %54, %61 : vector<8x128xi1>, vector<8x128xf32>
    %cst_46 = arith.constant dense<0xFF800000> : vector<8xf32>
    %63 = vector.multi_reduction <maximumf>, %62, %cst_46 [1] : vector<8x128xf32> to vector<8xf32>
    %64 = vector.shape_cast %63 : vector<8xf32> to vector<8x1xf32>
    %65 = vector.broadcast %64 : vector<8x1xf32> to vector<8x128xf32>
    %66 = arith.subf %62, %65 : vector<8x128xf32>
    %67 = math.exp %66 : vector<8x128xf32>
    %cst_47 = arith.constant 0.000000e+00 : f32
    %68 = vector.broadcast %cst_47 : f32 to vector<8x128xf32>
    %69 = arith.select %58, %67, %68 : vector<8x128xi1>, vector<8x128xf32>
    %cst_48 = arith.constant dense<0.000000e+00> : vector<8xf32>
    %70 = vector.multi_reduction <add>, %69, %cst_48 [1] : vector<8x128xf32> to vector<8xf32>
    %71 = vector.shape_cast %70 : vector<8xf32> to vector<8x1xf32>
    %72 = math.log %71 : vector<8x1xf32>
    %73 = arith.andi %58, %60 : vector<8x128xi1>
    %74 = vector.broadcast %72 : vector<8x1xf32> to vector<8x128xf32>
    %75 = arith.subf %66, %74 : vector<8x128xf32>
    %cst_49 = arith.constant 0.000000e+00 : f32
    %76 = vector.broadcast %cst_49 : f32 to vector<8x128xf32>
    %77 = arith.select %73, %75, %76 : vector<8x128xi1>, vector<8x128xf32>
    %c0_50 = arith.constant 0 : index
    %c0_51 = arith.constant 0 : index
    %c0_52 = arith.constant 0 : index
    %78 = vector.load %arg14[%c0_50, %c0_51, %c0_52] : memref<1x8x128xf32, #tpu.memory_space<vmem>>, vector<1x8x128xf32>
    %79 = vector.shape_cast %78 : vector<1x8x128xf32> to vector<8x128xf32>
    %80 = vector.shape_cast %77 : vector<8x128xf32> to vector<1x8x128xf32>
    tpu.vector_store %arg14[%c0_50, %c0_51, %c0_52], %80 {strides = array<i32>} : memref<1x8x128xf32, #tpu.memory_space<vmem>>, vector<1x8x128xf32>,
    return
  }
  func.func @transform_0(%arg0: i32) -> (i32, i32, i32) {
    %c0_i32 = arith.constant 0 : i32
    %c0_i32_0 = arith.constant 0 : i32
    %c0_i32_1 = arith.constant 0 : i32
    return %arg0, %c0_i32, %c0_i32_0 : i32, i32, i32
  }
  func.func @transform_1(%arg0: i32) -> (i32, i32, i32) {
    %c0_i32 = arith.constant 0 : i32
    %c0_i32_0 = arith.constant 0 : i32
    %c0_i32_1 = arith.constant 0 : i32
    return %arg0, %c0_i32, %c0_i32_0 : i32, i32, i32
  }
  func.func @transform_2(%arg0: i32) -> (i32, i32, i32) {
    %c0_i32 = arith.constant 0 : i32
    %c0_i32_0 = arith.constant 0 : i32
    %c0_i32_1 = arith.constant 0 : i32
    return %arg0, %c0_i32, %c0_i32_0 : i32, i32, i32
  }
  func.func @transform_3(%arg0: i32) -> (i32, i32) {
    %c0_i32 = arith.constant 0 : i32
    %c0_i32_0 = arith.constant 0 : i32
    %c0_i32_1 = arith.constant 0 : i32
    return %c0_i32, %c0_i32_0 : i32, i32
  }
  func.func @transform_4(%arg0: i32) -> (i32, i32) {
    %c0_i32 = arith.constant 0 : i32
    %c0_i32_0 = arith.constant 0 : i32
    %c0_i32_1 = arith.constant 0 : i32
    return %c0_i32, %c0_i32_0 : i32, i32
  }
  func.func @transform_5(%arg0: i32) -> (i32, i32) {
    %c0_i32 = arith.constant 0 : i32
    %c0_i32_0 = arith.constant 0 : i32
    %c0_i32_1 = arith.constant 0 : i32
    return %c0_i32, %c0_i32_0 : i32, i32
  }
  func.func @transform_6(%arg0: i32) -> (i32, i32) {
    %c0_i32 = arith.constant 0 : i32
    %c0_i32_0 = arith.constant 0 : i32
    %c0_i32_1 = arith.constant 0 : i32
    return %c0_i32, %c0_i32_0 : i32, i32
  }
  func.func @transform_7(%arg0: i32) -> (i32, i32) {
    %c0_i32 = arith.constant 0 : i32
    %c0_i32_0 = arith.constant 0 : i32
    %c0_i32_1 = arith.constant 0 : i32
    return %c0_i32, %c0_i32_0 : i32, i32
  }
  func.func @transform_8(%arg0: i32) -> (i32, i32) {
    %c0_i32 = arith.constant 0 : i32
    %c0_i32_0 = arith.constant 0 : i32
    %c0_i32_1 = arith.constant 0 : i32
    return %c0_i32, %c0_i32_0 : i32, i32
  }
  func.func @transform_9(%arg0: i32) -> (i32, i32) {
    %c0_i32 = arith.constant 0 : i32
    %c0_i32_0 = arith.constant 0 : i32
    %c0_i32_1 = arith.constant 0 : i32
    return %c0_i32, %c0_i32_0 : i32, i32
  }
  func.func @transform_10(%arg0: i32) -> (i32, i32) {
    %c0_i32 = arith.constant 0 : i32
    %c0_i32_0 = arith.constant 0 : i32
    %c0_i32_1 = arith.constant 0 : i32
    return %c0_i32, %c0_i32_0 : i32, i32
  }
  func.func @transform_11(%arg0: i32) -> (i32, i32) {
    %c0_i32 = arith.constant 0 : i32
    %c0_i32_0 = arith.constant 0 : i32
    %c0_i32_1 = arith.constant 0 : i32
    return %c0_i32, %c0_i32_0 : i32, i32
  }
  func.func @transform_12(%arg0: i32) -> (i32, i32) {
    %c0_i32 = arith.constant 0 : i32
    %c0_i32_0 = arith.constant 0 : i32
    %c0_i32_1 = arith.constant 0 : i32
    return %c0_i32, %c0_i32_0 : i32, i32
  }
  func.func @transform_13(%arg0: i32) -> (i32, i32, i32) {
    %c0_i32 = arith.constant 0 : i32
    %c0_i32_0 = arith.constant 0 : i32
    %c0_i32_1 = arith.constant 0 : i32
    return %arg0, %c0_i32, %c0_i32_0 : i32, i32, i32
  }
}

</mosaic_0001>

<bundles_post_ra>
// kernel: tpu_custom_call.1
= control target key start
LH: loop header
LB: loop body
LE: loop exit
PB: predicated region body
PF: predicated region fallthrough
CT: control target
= control target key end

     0   :  { %18 = vsyncpa [#allocation3], 0  ;;  %s3886_s0 = inlined_call_operand.hbm [shape: f32[1,128,128], index: 0, kind: input, shape index: {}]   ;;  %s3887_s1 = inlined_call_operand.hbm [shape: s8[1,128,128], index: 1, kind: input, shape index: {}]   ;;  %s3888_s2 = inlined_call_operand.hbm [shape: f32[1,8,128], index: 2, kind: input, shape index: {}]   ;;  %s3889_s3 = inlined_call_operand.hbm [shape: f32[128,128], index: 3, kind: input, shape index: {}]   ;;  %s3890_s4 = inlined_call_operand.vmem [shape: f32[1,128], index: 4, kind: input, shape index: {}]   ;;  %s3891_s5 = inlined_call_operand.hbm [shape: f32[128,128], index: 5, kind: input, shape index: {}]   ;;  %s3892_s6 = inlined_call_operand.vmem [shape: f32[1,128], index: 6, kind: input, shape index: {}]   ;;  %s3893_s7 = inlined_call_operand.hbm [shape: f32[128,128], index: 7, kind: input, shape index: {}]   ;;  %s3894_s8 = inlined_call_operand.vmem [shape: f32[1,128], index: 8, kind: input, shape index: {}]   ;;  %s3895_s9 = inlined_call_operand.hbm [shape: f32[128,128], index: 9, kind: input, shape index: {}]   ;;  %s3896_s10 = inlined_call_operand.vmem [shape: f32[1,128], index: 10, kind: input, shape index: {}]   ;;  %s3897_s11 = inlined_call_operand.hbm [shape: f32[128,128], index: 11, kind: input, shape index: {}]   ;;  %s3898_s12 = inlined_call_operand.vmem [shape: f32[1,128], index: 12, kind: input, shape index: {}]   ;;  %s3899_s13 = inlined_call_operand.hbm [shape: f32[1,8,128], index: 13, kind: output, shape index: {}]  }
   0x1   :  { %19 = vsyncpa [#allocation6], 0 }
   0x2   :  { %20 = vsyncpa [#allocation9], 0 }
   0x3   :  { %21 = vsyncpa [#allocation12], 0 }
   0x4   :  { %22 = vsyncpa [#allocation15], 0 }
   0x5   :  { %23 = vsyncpa [#allocation4], 0  ;;  %s3249_s25 = smov [#allocation5]   ;;  %s3250_s27 = smov [#allocation8]  }
   0x6   :  { %s41_s26 = sshll.u32 %s3249_s25, 4  ;;  %s63_s28 = sshll.u32 %s3250_s27, 4  ;;  %s42_s26 = int_to_ptr.vmem [resolvable:$true] %s41_s26  ;;  %s3333_s28 = int_to_ptr.vmem [resolvable:$true] %s63_s28 }
   0x7   :  { %s3039_s14 = scalar_lea.hbm %s3887_s1, 512 }
   0x8   :  { %p3040_p0 = scmp.ne.s32.totalorder %s3887_s1, %s3039_s14  ;;  %p3043_p1 = scmp.lt.u32.totalorder %s3039_s14, %s3887_s1 }
   0xa   :  { %p3045_p2 = pnand %p3043_p1, %p3040_p0 }
   0xc   :  { %3048 = shalt.err (!%p3045_p2)
}
   0xd   :  { %s3049_s19 = scalar_lea.vmem %s42_s26, 512  ;;  %p3054_p4 = scmp.lt.s32.totalorder %s42_s26, %s42_s26 }
   0xe   :  { %p3050_p3 = scmp.ne.s32.totalorder %s42_s26, %s3049_s19  ;;  %p3055_p5 = scmp.lt.s32.totalorder %s3049_s19, %s3049_s19 }
  0x10   :  { %p3056_p6 = por %p3055_p5, %p3054_p4 }
  0x12   :  { %p3057_p7 = pnand %p3056_p6, %p3050_p3 }
  0x14   :  { %3060 = shalt.err (!%p3057_p7)
}
  0x15   :  { %s3251_s20 = smov 128   ;;  %s3252_s21 = smov 8  }
  0x16   :  { %47 = dma.hbm_to_vmem [thread:$0]  %s3887_s1, 512, %s42_s26, [#allocation6], %s3251_s20, %s3251_s20, %s3252_s21  }
  0x17   :  { %s3061_s27 = scalar_lea.hbm %s3889_s3, 2048 }
  0x18   :  { %p3062_p8 = scmp.ne.s32.totalorder %s3889_s3, %s3061_s27  ;;  %p3065_p9 = scmp.lt.u32.totalorder %s3061_s27, %s3889_s3 }
  0x1a   :  { %p3067_p10 = pnand %p3065_p9, %p3062_p8 }
  0x1c   :  { %3070 = shalt.err (!%p3067_p10)
}
  0x1d   :  { %s3071_s16 = scalar_lea.vmem %s3333_s28, 2048  ;;  %p3076_p12 = scmp.lt.s32.totalorder %s3333_s28, %s3333_s28 }
  0x1e   :  { %p3072_p11 = scmp.ne.s32.totalorder %s3333_s28, %s3071_s16  ;;  %p3077_p13 = scmp.lt.s32.totalorder %s3071_s16, %s3071_s16 }
  0x20   :  { %p3078_p0 = por %p3077_p13, %p3076_p12 }
  0x22   :  { %p3079_p1 = pnand %p3078_p0, %p3072_p11 }
  0x24   :  { %3082 = shalt.err (!%p3079_p1)
}
  0x25   :  { %69 = dma.hbm_to_vmem [thread:$0]  %s3889_s3, 2048, %s3333_s28, [#allocation9], %s3251_s20, %s3251_s20, %s3252_s21  }
  0x26   :  { %s3253_s17 = smov [#allocation11]   ;;  %s3254_s19 = smov [#allocation2]  }
  0x27   :  { %s91_s18 = sshll.u32 %s3253_s17, 4  ;;  %s29_s22 = sshll.u32 %s3254_s19, 4  ;;  %s92_s18 = int_to_ptr.vmem [resolvable:$true] %s91_s18  ;;  %s3370_s22 = int_to_ptr.vmem [resolvable:$true] %s29_s22 }
  0x28   :  { %s3083_s25 = scalar_lea.hbm %s3893_s7, 2048 }
  0x29   :  { %p3084_p2 = scmp.ne.s32.totalorder %s3893_s7, %s3083_s25  ;;  %p3087_p3 = scmp.lt.u32.totalorder %s3083_s25, %s3893_s7 }
  0x2b   :  { %p3089_p4 = pnand %p3087_p3, %p3084_p2 }
  0x2d   :  { %3092 = shalt.err (!%p3089_p4)
}
  0x2e   :  { %s3093_s3 = scalar_lea.vmem %s92_s18, 2048  ;;  %p3098_p6 = scmp.lt.s32.totalorder %s92_s18, %s92_s18 }
  0x2f   :  { %p3094_p5 = scmp.ne.s32.totalorder %s92_s18, %s3093_s3  ;;  %p3099_p7 = scmp.lt.s32.totalorder %s3093_s3, %s3093_s3 }
  0x31   :  { %p3100_p8 = por %p3099_p7, %p3098_p6 }
  0x33   :  { %p3101_p9 = pnand %p3100_p8, %p3094_p5 }
  0x35   :  { %3104 = shalt.err (!%p3101_p9)
}
  0x36   :  { %97 = dma.hbm_to_vmem [thread:$0]  %s3893_s7, 2048, %s92_s18, [#allocation12], %s3251_s20, %s3251_s20, %s3252_s21  }
  0x37   :  { %s3105_s26 = scalar_lea.hbm %s3886_s0, 2048 }
  0x38   :  { %p3106_p10 = scmp.ne.s32.totalorder %s3886_s0, %s3105_s26  ;;  %p3109_p11 = scmp.lt.u32.totalorder %s3105_s26, %s3886_s0 }
  0x3a   :  { %p3111_p12 = pnand %p3109_p11, %p3106_p10 }
  0x3c   :  { %3114 = shalt.err (!%p3111_p12)
}
  0x3d   :  { %s3115_s25 = scalar_lea.vmem %s3370_s22, 2048  ;;  %p3120_p0 = scmp.lt.s32.totalorder %s3370_s22, %s3370_s22 }
  0x3e   :  { %p3116_p13 = scmp.ne.s32.totalorder %s3370_s22, %s3115_s25  ;;  %p3121_p1 = scmp.lt.s32.totalorder %s3115_s25, %s3115_s25 }
  0x40   :  { %p3122_p2 = por %p3121_p1, %p3120_p0 }
  0x42   :  { %p3123_p3 = pnand %p3122_p2, %p3116_p13 }
  0x44   :  { %3126 = shalt.err (!%p3123_p3)
}
  0x45   :  { %35 = dma.hbm_to_vmem [thread:$0]  %s3886_s0, 2048, %s3370_s22, [#allocation3], %s3251_s20, %s3251_s20, %s3252_s21  }
  0x46   :  { %s3255_s27 = smov [#allocation7]   ;;  %s3256_s30 = smov [#allocation10]  }
  0x47   :  { %s54_s29 = sshll.u32 %s3255_s27, 4  ;;  %s77_s14 = sshll.u32 %s3256_s30, 4  ;;  %s55_s29 = int_to_ptr.vmem [resolvable:$true] %s54_s29  ;;  %s3407_s14 = int_to_ptr.vmem [resolvable:$true] %s77_s14 }
  0x48   :  { %s3127_s15 = scalar_lea.hbm %s3888_s2, 128 }
  0x49   :  { %p3128_p4 = scmp.ne.s32.totalorder %s3888_s2, %s3127_s15  ;;  %p3131_p5 = scmp.lt.u32.totalorder %s3127_s15, %s3888_s2 }
  0x4b   :  { %p3133_p6 = pnand %p3131_p5, %p3128_p4 }
  0x4d   :  { %3136 = shalt.err (!%p3133_p6)
}
  0x4e   :  { %s3137_s0 = scalar_lea.vmem %s55_s29, 128  ;;  %p3142_p8 = scmp.lt.s32.totalorder %s55_s29, %s55_s29 }
  0x4f   :  { %p3138_p7 = scmp.ne.s32.totalorder %s55_s29, %s3137_s0  ;;  %p3143_p9 = scmp.lt.s32.totalorder %s3137_s0, %s3137_s0 }
  0x51   :  { %p3144_p10 = por %p3143_p9, %p3142_p8 }
  0x53   :  { %p3145_p11 = pnand %p3144_p10, %p3138_p7 }
  0x55   :  { %3148 = shalt.err (!%p3145_p11)
}
  0x56   :  { %57 = dma.hbm_to_vmem [thread:$0]  %s3888_s2, 128, %s55_s29, [#allocation6]  }
  0x57   :  { %s3149_s25 = scalar_lea.hbm %s3891_s5, 2048 }
  0x58   :  { %p3150_p12 = scmp.ne.s32.totalorder %s3891_s5, %s3149_s25  ;;  %p3153_p13 = scmp.lt.u32.totalorder %s3149_s25, %s3891_s5 }
  0x5a   :  { %p3155_p0 = pnand %p3153_p13, %p3150_p12 }
  0x5c   :  { %3158 = shalt.err (!%p3155_p0)
}
  0x5d   :  { %s3159_s3 = scalar_lea.vmem %s3407_s14, 2048  ;;  %p3164_p2 = scmp.lt.s32.totalorder %s3407_s14, %s3407_s14 }
  0x5e   :  { %p3160_p1 = scmp.ne.s32.totalorder %s3407_s14, %s3159_s3  ;;  %p3165_p3 = scmp.lt.s32.totalorder %s3159_s3, %s3159_s3 }
  0x60   :  { %p3166_p4 = por %p3165_p3, %p3164_p2 }
  0x62   :  { %p3167_p5 = pnand %p3166_p4, %p3160_p1 }
  0x64   :  { %3170 = shalt.err (!%p3167_p5)
}
  0x65   :  { %83 = dma.hbm_to_vmem [thread:$0]  %s3891_s5, 2048, %s3407_s14, [#allocation9], %s3251_s20, %s3251_s20, %s3252_s21  }
  0x66   :  { %s3257_s28 = smov [#allocation13]   ;;  %s3258_s16 = smov [#allocation14]  }
  0x67   :  { %s105_s15 = sshll.u32 %s3257_s28, 4  ;;  %s119_s1 = sshll.u32 %s3258_s16, 4  ;;  %s106_s15 = int_to_ptr.vmem [resolvable:$true] %s105_s15  ;;  %s3441_s1 = int_to_ptr.vmem [resolvable:$true] %s119_s1 }
  0x68   :  { %s3171_s0 = scalar_lea.hbm %s3895_s9, 2048 }
  0x69   :  { %p3172_p6 = scmp.ne.s32.totalorder %s3895_s9, %s3171_s0  ;;  %p3175_p7 = scmp.lt.u32.totalorder %s3171_s0, %s3895_s9 }
  0x6b   :  { %p3177_p8 = pnand %p3175_p7, %p3172_p6 }
  0x6d   :  { %3180 = shalt.err (!%p3177_p8)
}
  0x6e   :  { %s3181_s5 = scalar_lea.vmem %s106_s15, 2048  ;;  %p3186_p10 = scmp.lt.s32.totalorder %s106_s15, %s106_s15 }
  0x6f   :  { %p3182_p9 = scmp.ne.s32.totalorder %s106_s15, %s3181_s5  ;;  %p3187_p11 = scmp.lt.s32.totalorder %s3181_s5, %s3181_s5 }
  0x71   :  { %p3188_p12 = por %p3187_p11, %p3186_p10 }
  0x73   :  { %p3189_p13 = pnand %p3188_p12, %p3182_p9 }
  0x75   :  { %3192 = shalt.err (!%p3189_p13)
}
  0x76   :  { %111 = dma.hbm_to_vmem [thread:$0]  %s3895_s9, 2048, %s106_s15, [#allocation12], %s3251_s20, %s3251_s20, %s3252_s21  }
  0x77   :  { %s3193_s27 = scalar_lea.hbm %s3897_s11, 2048 }
  0x78   :  { %p3194_p0 = scmp.ne.s32.totalorder %s3897_s11, %s3193_s27  ;;  %p3197_p1 = scmp.lt.u32.totalorder %s3193_s27, %s3897_s11 }
  0x7a   :  { %p3199_p2 = pnand %p3197_p1, %p3194_p0 }
  0x7c   :  { %3202 = shalt.err (!%p3199_p2)
}
  0x7d   :  { %s3203_s28 = scalar_lea.vmem %s3441_s1, 2048  ;;  %p3208_p4 = scmp.lt.s32.totalorder %s3441_s1, %s3441_s1 }
  0x7e   :  { %p3204_p3 = scmp.ne.s32.totalorder %s3441_s1, %s3203_s28  ;;  %p3209_p5 = scmp.lt.s32.totalorder %s3203_s28, %s3203_s28 }
  0x80   :  { %p3210_p6 = por %p3209_p5, %p3208_p4 }
  0x82   :  { %p3211_p7 = pnand %p3210_p6, %p3204_p3 }
  0x84   :  { %3214 = shalt.err (!%p3211_p7)
}
  0x85   :  { %125 = dma.hbm_to_vmem [thread:$0]  %s3897_s11, 2048, %s3441_s1, [#allocation15], %s3251_s20, %s3251_s20, %s3252_s21  }
  0x86   :  { %3237 = dma.done.wait [#allocation3], 2048  }
  0x87   :  { %3238 = vsyncadd [#allocation3], 4294965248 }
  0x88   :  { %3239 = dma.done.wait [#allocation6], 640  }
  0x89   :  { %3240 = vsyncadd [#allocation6], 4294966656 }
  0x8a   :  { %3241 = dma.done.wait [#allocation9], 4096  }
  0x8b   :  { %3242 = vsyncadd [#allocation9], 4294963200 }
  0x8c   :  { %3243 = dma.done.wait [#allocation12], 4096  }
  0x8d   :  { %3244 = vsyncadd [#allocation12], 4294963200 }
  0x8e   :  { %3245 = dma.done.wait [#allocation15], 2048  }
  0x8f   :  { %3246 = vsyncadd [#allocation15], 4294965248  ;;  %v205_v0 = vld [vmem:[#allocation8] sm:$0xff]  ;;  %v206_v1 = vld [vmem:[#allocation8 + $0x8] sm:$0xff]  ;;  %vm3260_vm0 = vmmov 0  }
  0x90   :  { %v207_v2 = vld [vmem:[#allocation8 + $0x10] sm:$0xff]  ;;  %v2693_v3 = vpack.c.bf16 %v206_v1, %v205_v0  ;;  %v208_v4 = vld [vmem:[#allocation8 + $0x18] sm:$0xff]  ;;  %v209_v6 = vld [vmem:[#allocation8 + $0x20] sm:$0xff] }
  0x91   :  { %v2697_v5 = vpack.c.bf16 %v208_v4, %v207_v2  ;;  %v210_v7 = vld [vmem:[#allocation8 + $0x28] sm:$0xff]  ;;  %v152_v9 = vld [vmem:[#allocation2] sm:$0xff]  ;;  %v211_v10 = vld [vmem:[#allocation8 + $0x30] sm:$0xff] }
  0x92   :  { %2694 = vmatprep.subr.bf16.mxu0 %v2693_v3  ;;  %v2701_v8 = vpack.c.bf16 %v210_v7, %v209_v6  ;;  %v212_v11 = vld [vmem:[#allocation8 + $0x38] sm:$0xff]  ;;  %2172 = vmatprep.mubr.f32.mxu0 %v152_v9  ;;  %v213_v13 = vld [vmem:[#allocation8 + $0x40] sm:$0xff]  ;;  %v214_v14 = vld [vmem:[#allocation8 + $0x48] sm:$0xff] }
  0x93   :  { %2696 = vmatpush3.bf16.msra.mxu0 %v2693_v3  ;;  %v2705_v12 = vpack.c.bf16 %v212_v11, %v211_v10  ;;  %v2709_v15 = vpack.c.bf16 %v214_v14, %v213_v13  ;;  %v215_v16 = vld [vmem:[#allocation8 + $0x50] sm:$0xff]  ;;  %v216_v17 = vld [vmem:[#allocation8 + $0x58] sm:$0xff]  ;;  %v217_v19 = vld [vmem:[#allocation8 + $0x60] sm:$0xff] }
  0x94   :  { %2698 = vmatprep.subr.bf16.mxu0 %v2697_v5  ;;  %v2713_v18 = vpack.c.bf16 %v216_v17, %v215_v16  ;;  %v218_v20 = vld [vmem:[#allocation8 + $0x68] sm:$0xff]  ;;  %v219_v22 = vld [vmem:[#allocation8 + $0x70] sm:$0xff]  ;;  %v220_v23 = vld [vmem:[#allocation8 + $0x78] sm:$0xff] }
  0x95   :  { %v2717_v21 = vpack.c.bf16 %v218_v20, %v217_v19  ;;  %v2721_v24 = vpack.c.bf16 %v220_v23, %v219_v22  ;;  %v153_v25 = vld [vmem:[#allocation2 + $0x8] sm:$0xff]  ;;  %v154_v26 = vld [vmem:[#allocation2 + $0x10] sm:$0xff]  ;;  %v155_v27 = vld [vmem:[#allocation2 + $0x18] sm:$0xff] }
  0x96   :  { %v156_v28 = vld [vmem:[#allocation2 + $0x20] sm:$0xff]  ;;  %v157_v29 = vld [vmem:[#allocation2 + $0x28] sm:$0xff]  ;;  %v158_v30 = vld [vmem:[#allocation2 + $0x30] sm:$0xff] }
  0x97   :  { %2700 = vmatpush3.bf16.msra.mxu0 %v2697_v5  ;;  %v159_v31 = vld [vmem:[#allocation2 + $0x38] sm:$0xff]  ;;  %v160_v32 = vld [vmem:[#allocation2 + $0x40] sm:$0xff]  ;;  %v161_v33 = vld [vmem:[#allocation2 + $0x48] sm:$0xff] }
  0x98   :  { %2702 = vmatprep.subr.bf16.mxu0 %v2701_v8  ;;  %v162_v34 = vld [vmem:[#allocation2 + $0x50] sm:$0xff]  ;;  %v163_v35 = vld [vmem:[#allocation2 + $0x58] sm:$0xff]  ;;  %v164_v36 = vld [vmem:[#allocation2 + $0x60] sm:$0xff] }
  0x99   :  { %v165_v37 = vld [vmem:[#allocation2 + $0x68] sm:$0xff]  ;;  %v166_v38 = vld [vmem:[#allocation2 + $0x70] sm:$0xff]  ;;  %v167_v39 = vld [vmem:[#allocation2 + $0x78] sm:$0xff] }
  0x9a   :  { %v3478_v40 = vld [vmem:[#allocation5] sm:$0xff]  ;;  %v222_v43 = vld [vmem:[#allocation10] sm:$0xff]  ;;  %v223_v44 = vld [vmem:[#allocation10 + $0x8] sm:$0xff] }
  0x9b   :  { %2704 = vmatpush3.bf16.msra.mxu0 %v2701_v8  ;;  %v172_v41 = vunpack.c.0.s8 %v3478_v40  ;;  %v224_v45 = vld [vmem:[#allocation10 + $0x10] sm:$0xff]  ;;  %v3484_v46 = vpack.c.bf16 %v223_v44, %v222_v43  ;;  %v225_v47 = vld [vmem:[#allocation10 + $0x18] sm:$0xff]  ;;  %v226_v49 = vld [vmem:[#allocation10 + $0x20] sm:$0xff] }
  0x9c   :  { %2706 = vmatprep.subr.bf16.mxu0 %v2705_v12  ;;  %v3486_v48 = vpack.c.bf16 %v225_v47, %v224_v45  ;;  %v227_v50 = vld [vmem:[#allocation10 + $0x28] sm:$0xff]  ;;  %v228_v52 = vld [vmem:[#allocation10 + $0x30] sm:$0xff]  ;;  %v229_v53 = vld [vmem:[#allocation10 + $0x38] sm:$0xff] }
  0x9d   :  { %v3481_v42 = vcvt.s32.f32 %v172_v41  ;;  %v3491_v51 = vpack.c.bf16 %v227_v50, %v226_v49  ;;  %v3495_v54 = vpack.c.bf16 %v229_v53, %v228_v52  ;;  %v230_v55 = vld [vmem:[#allocation10 + $0x40] sm:$0xff]  ;;  %v231_v56 = vld [vmem:[#allocation10 + $0x48] sm:$0xff]  ;;  %v232_v58 = vld [vmem:[#allocation10 + $0x50] sm:$0xff] }
  0x9e   :  { %v3499_v57 = vpack.c.bf16 %v231_v56, %v230_v55  ;;  %v233_v59 = vld [vmem:[#allocation10 + $0x58] sm:$0xff]  ;;  %v234_v61 = vld [vmem:[#allocation10 + $0x60] sm:$0xff]  ;;  %v235_v62 = vld [vmem:[#allocation10 + $0x68] sm:$0xff] }
  0x9f   :  { %2708 = vmatpush3.bf16.msra.mxu0 %v2705_v12  ;;  %2228 = vmatprep.mubr.f32.mxu1 %v3481_v42  ;;  %v3503_v60 = vpack.c.bf16 %v233_v59, %v232_v58  ;;  %v3507_v63 = vpack.c.bf16 %v235_v62, %v234_v61  ;;  %v236_v0 = vld [vmem:[#allocation10 + $0x70] sm:$0xff]  ;;  %v237_v1 = vld [vmem:[#allocation10 + $0x78] sm:$0xff] }
  0xa0   :  { %2710 = vmatprep.subr.bf16.mxu0 %v2709_v15  ;;  %v3511_v2 = vpack.c.bf16 %v237_v1, %v236_v0  ;;  %v3520_v3 = vld [vmem:[%s3890_s4] ss:$0 sm:$0xff] }
  0xa3   :  { %2712 = vmatpush3.bf16.msra.mxu0 %v2709_v15 }
  0xa4   :  { %2714 = vmatprep.subr.bf16.mxu0 %v2713_v18 }
  0xa7   :  { %2716 = vmatpush3.bf16.msra.mxu0 %v2713_v18 }
  0xa8   :  { %2718 = vmatprep.subr.bf16.mxu0 %v2717_v21 }
  0xab   :  { %2720 = vmatpush3.bf16.msra.mxu0 %v2717_v21 }
  0xac   :  { %2722 = vmatprep.subr.bf16.mxu0 %v2721_v24 }
  0xaf   :  { %2724 = vmatpush3.bf16.msra.mxu0 %v2721_v24 }
  0xb0   :  { %2758 = vmatprep.subr.bf16.mxu0 %v3484_v46 }
  0xb2   :  { %2173 = vmatmul.mubr.f32.vlgmr.msra.gmra.mrb[0].mxu0 %v153_v25 }
  0xb3   :  { %2175 = vmatprep.mubr.f32.mxu0 %v154_v26  ;;  %2760 = vmatpush3.bf16.msra.mxu0 %v3484_v46 }
  0xb4   :  { %2762 = vmatprep.subr.bf16.mxu0 %v3486_v48 }
  0xb6   :  { %2176 = vmatmul.mubr.f32.gmra.mrb[2].mxu0 %v155_v27 }
  0xb7   :  { %2178 = vmatprep.mubr.f32.mxu0 %v156_v28  ;;  %2764 = vmatpush3.bf16.msra.mxu0 %v3486_v48 }
  0xb8   :  { %2766 = vmatprep.subr.bf16.mxu0 %v3491_v51 }
  0xba   :  { %2179 = vmatmul.mubr.f32.gmra.mrb[4].mxu0 %v157_v29 }
  0xbb   :  { %2181 = vmatprep.mubr.f32.mxu0 %v158_v30  ;;  %2768 = vmatpush3.bf16.msra.mxu0 %v3491_v51 }
  0xbc   :  { %2770 = vmatprep.subr.bf16.mxu0 %v3495_v54 }
  0xbe   :  { %2182 = vmatmul.mubr.f32.gmra.mrb[6].mxu0 %v159_v31 }
  0xbf   :  { %2184 = vmatprep.mubr.f32.mxu0 %v160_v32  ;;  %2772 = vmatpush3.bf16.msra.mxu0 %v3495_v54 }
  0xc0   :  { %2774 = vmatprep.subr.bf16.mxu0 %v3499_v57 }
  0xc2   :  { %2185 = vmatmul.mubr.f32.gmra.mrb[8].mxu0 %v161_v33 }
  0xc3   :  { %2187 = vmatprep.mubr.f32.mxu0 %v162_v34  ;;  %2776 = vmatpush3.bf16.msra.mxu0 %v3499_v57 }
  0xc4   :  { %2778 = vmatprep.subr.bf16.mxu0 %v3503_v60 }
  0xc6   :  { %2188 = vmatmul.mubr.f32.gmra.mrb[10].mxu0 %v163_v35 }
  0xc7   :  { %2190 = vmatprep.mubr.f32.mxu0 %v164_v36  ;;  %2780 = vmatpush3.bf16.msra.mxu0 %v3503_v60 }
  0xc8   :  { %2782 = vmatprep.subr.bf16.mxu0 %v3507_v63 }
  0xca   :  { %2191 = vmatmul.mubr.f32.gmra.mrb[12].mxu0 %v165_v37 }
  0xcb   :  { %2193 = vmatprep.mubr.f32.mxu0 %v166_v38  ;;  %2784 = vmatpush3.bf16.msra.mxu0 %v3507_v63 }
  0xcc   :  { %2786 = vmatprep.subr.bf16.mxu0 %v3511_v2 }
  0xce   :  { %2194 = vmatmul.mubr.f32.gmra.mrb[14].mxu0 %v167_v39 }
  0xcf   :  { %2788 = vmatpush3.bf16.msra.mxu0 %v3511_v2 }
  0xd0   :  { %2822 = vmatprep.subr.bf16.mxu0 %v3484_v46 }
 0x185   :  { %v2174_v4 = vpop.f32.mrb[0].mxu0 }
 0x186   :  { %v3523_v5 = vadd.f32 %v2174_v4, %v3520_v3  ;;  %v362_v6 = vpop.f32.mrb[1].mxu0 }
 0x187   :  { %v3526_v7 = vadd.f32 %v3520_v3, %v362_v6 }
 0x188   :  { %v442_v8 = vmax.f32 %v3523_v5, 0.0 }
 0x189   :  { %v441_v9 = vmax.f32 %v3526_v7, 0.0  ;;  %v2177_v10 = vpop.f32.mrb[2].mxu0 }
 0x18a   :  { %v3531_v11 = vadd.f32 %v2177_v10, %v3520_v3  ;;  %v372_v12 = vpop.f32.mrb[3].mxu0 }
 0x18b   :  { %v3534_v13 = vadd.f32 %v3520_v3, %v372_v12  ;;  %v2725_v14 = vpack.c.bf16 %v442_v8, %v441_v9  ;;  %v173_v8 = vunpack.c.1.s8 %v3478_v40  ;;  %v174_v9 = vunpack.c.2.s8 %v3478_v40  ;;  %v169_v12 = vld [vmem:[#allocation5 + $0x8] sm:$0xff] }
 0x18c   :  { %v444_v15 = vmax.f32 %v3531_v11, 0.0 }
 0x18d   :  { %v443_v16 = vmax.f32 %v3534_v13, 0.0  ;;  %v2180_v17 = vpop.f32.mrb[4].mxu0  ;;  %2726 = vmatprep.subr.bf16.mxu1 %v2725_v14 }
 0x18e   :  { %v3539_v18 = vadd.f32 %v2180_v17, %v3520_v3  ;;  %v382_v19 = vpop.f32.mrb[5].mxu0  ;;  %2728 = vmatpush3.bf16.msra.mxu1 %v2725_v14  ;;  %v3588_v14 = vcvt.s32.f32 %v173_v8 }
 0x18f   :  { %v3542_v20 = vadd.f32 %v3520_v3, %v382_v19  ;;  %v2729_v21 = vpack.c.bf16 %v444_v15, %v443_v16  ;;  %v175_v15 = vunpack.c.3.s8 %v3478_v40  ;;  %v176_v16 = vunpack.c.0.s8 %v169_v12 }
 0x190   :  { %v446_v22 = vmax.f32 %v3539_v18, 0.0  ;;  %v177_v19 = vunpack.c.1.s8 %v169_v12  ;;  %v179_v40 = vunpack.c.3.s8 %v169_v12 }
 0x191   :  { %v445_v23 = vmax.f32 %v3542_v20, 0.0  ;;  %v2183_v24 = vpop.f32.mrb[6].mxu0  ;;  %2730 = vmatprep.subr.bf16.mxu1 %v2729_v21  ;;  %v3594_v17 = vcvt.s32.f32 %v175_v15 }
 0x192   :  { %v3547_v25 = vadd.f32 %v2183_v24, %v3520_v3  ;;  %v392_v26 = vpop.f32.mrb[7].mxu0  ;;  %2732 = vmatpush3.bf16.msra.mxu1 %v2729_v21  ;;  %v3597_v21 = vcvt.s32.f32 %v176_v16  ;;  %v3600_v24 = vcvt.s32.f32 %v177_v19 }
 0x193   :  { %v3550_v27 = vadd.f32 %v3520_v3, %v392_v26  ;;  %v2733_v28 = vpack.c.bf16 %v446_v22, %v445_v23  ;;  %v178_v22 = vunpack.c.2.s8 %v169_v12  ;;  %v170_v23 = vld [vmem:[#allocation5 + $0x10] sm:$0xff] }
 0x194   :  { %v448_v29 = vmax.f32 %v3547_v25, 0.0 }
 0x195   :  { %v447_v30 = vmax.f32 %v3550_v27, 0.0  ;;  %v2186_v31 = vpop.f32.mrb[8].mxu0  ;;  %2734 = vmatprep.subr.bf16.mxu1 %v2733_v28  ;;  %v3603_v26 = vcvt.s32.f32 %v178_v22 }
 0x196   :  { %v3555_v32 = vadd.f32 %v2186_v31, %v3520_v3  ;;  %v402_v33 = vpop.f32.mrb[9].mxu0  ;;  %2736 = vmatpush3.bf16.msra.mxu1 %v2733_v28  ;;  %v180_v28 = vunpack.c.0.s8 %v170_v23 }
 0x197   :  { %v3558_v34 = vadd.f32 %v3520_v3, %v402_v33  ;;  %v2737_v35 = vpack.c.bf16 %v448_v29, %v447_v30  ;;  %v3606_v29 = vcvt.s32.f32 %v179_v40  ;;  %v181_v30 = vunpack.c.1.s8 %v170_v23 }
 0x198   :  { %v450_v36 = vmax.f32 %v3555_v32, 0.0  ;;  %v3609_v31 = vcvt.s32.f32 %v180_v28  ;;  %v182_v33 = vunpack.c.2.s8 %v170_v23 }
 0x199   :  { %v449_v37 = vmax.f32 %v3558_v34, 0.0  ;;  %v2189_v38 = vpop.f32.mrb[10].mxu0  ;;  %2738 = vmatprep.subr.bf16.mxu1 %v2737_v35 }
 0x19a   :  { %v3563_v39 = vadd.f32 %v2189_v38, %v3520_v3  ;;  %v412_v41 = vpop.f32.mrb[11].mxu0  ;;  %2740 = vmatpush3.bf16.msra.mxu1 %v2737_v35  ;;  %v171_v35 = vld [vmem:[#allocation5 + $0x18] sm:$0xff]  ;;  %v3615_v38 = vcvt.s32.f32 %v182_v33 }
 0x19b   :  { %v3566_v43 = vadd.f32 %v3520_v3, %v412_v41  ;;  %v2741_v44 = vpack.c.bf16 %v450_v36, %v449_v37  ;;  %v3612_v36 = vcvt.s32.f32 %v181_v30  ;;  %v183_v37 = vunpack.c.3.s8 %v170_v23  ;;  %v3654_v30 = vld [vmem:[%s3892_s6] ss:$0 sm:$0xff] }
 0x19c   :  { %v452_v45 = vmax.f32 %v3563_v39, 0.0  ;;  %v184_v41 = vunpack.c.0.s8 %v171_v35  ;;  %v3658_v33 = vadd.f32 %v3654_v30, %v3523_v5 }
 0x19d   :  { %v451_v47 = vmax.f32 %v3566_v43, 0.0  ;;  %v2192_v49 = vpop.f32.mrb[12].mxu0  ;;  %2742 = vmatprep.subr.bf16.mxu1 %v2741_v44 }
 0x19e   :  { %v3571_v50 = vadd.f32 %v2192_v49, %v3520_v3  ;;  %v422_v52 = vpop.f32.mrb[13].mxu0  ;;  %2744 = vmatpush3.bf16.msra.mxu1 %v2741_v44  ;;  %v3618_v44 = vcvt.s32.f32 %v183_v37  ;;  %v186_v49 = vunpack.c.2.s8 %v171_v35 }
 0x19f   :  { %v3574_v53 = vadd.f32 %v3520_v3, %v422_v52  ;;  %v2745_v55 = vpack.c.bf16 %v452_v45, %v451_v47  ;;  %v185_v45 = vunpack.c.1.s8 %v171_v35  ;;  %v3621_v47 = vcvt.s32.f32 %v184_v41 }
 0x1a0   :  { %v454_v56 = vmax.f32 %v3571_v50, 0.0 }
 0x1a1   :  { %v453_v58 = vmax.f32 %v3574_v53, 0.0  ;;  %v2195_v59 = vpop.f32.mrb[14].mxu0  ;;  %2746 = vmatprep.subr.bf16.mxu1 %v2745_v55  ;;  %v3624_v52 = vcvt.s32.f32 %v185_v45 }
 0x1a2   :  { %v3579_v61 = vadd.f32 %v2195_v59, %v3520_v3  ;;  %v432_v62 = vpop.f32.mrb[15].mxu0  ;;  %2748 = vmatpush3.bf16.msra.mxu1 %v2745_v55  ;;  %v187_v55 = vunpack.c.3.s8 %v171_v35  ;;  %v3662_v35 = vadd.f32 %v3654_v30, %v3526_v7 }
 0x1a3   :  { %v3582_v0 = vadd.f32 %v3520_v3, %v432_v62  ;;  %v2749_v1 = vpack.c.bf16 %v454_v56, %v453_v58  ;;  %v3591_v3 = vcvt.s32.f32 %v174_v9  ;;  %v3627_v56 = vcvt.s32.f32 %v186_v49 }
 0x1a4   :  { %v456_v4 = vmax.f32 %v3579_v61, 0.0  ;;  %v3630_v58 = vcvt.s32.f32 %v187_v55  ;;  %v3668_v55 = vadd.f32 %v3654_v30, %v3531_v11  ;;  %v3682_v11 = vadd.f32 %v3654_v30, %v3542_v20 }
 0x1a5   :  { %v455_v6 = vmax.f32 %v3582_v0, 0.0  ;;  %2750 = vmatprep.subr.bf16.mxu1 %v2749_v1 }
 0x1a6   :  { %2752 = vmatpush3.bf16.msra.mxu1 %v2749_v1 }
 0x1a7   :  { %v2753_v10 = vpack.c.bf16 %v456_v4, %v455_v6 }
 0x1a9   :  { %2754 = vmatprep.subr.bf16.mxu1 %v2753_v10 }
 0x1aa   :  { %2756 = vmatpush3.bf16.msra.mxu1 %v2753_v10 }
 0x1ad   :  { %2229 = vmatmul.mubr.f32.vlgmr.msra.gmra.mrb[0].mxu1 %v3588_v14 }
 0x1ae   :  { %2231 = vmatprep.mubr.f32.mxu1 %v3591_v3 }
 0x1b1   :  { %2232 = vmatmul.mubr.f32.gmra.mrb[2].mxu1 %v3594_v17 }
 0x1b2   :  { %2234 = vmatprep.mubr.f32.mxu1 %v3597_v21 }
 0x1b5   :  { %2235 = vmatmul.mubr.f32.gmra.mrb[4].mxu1 %v3600_v24 }
 0x1b6   :  { %2237 = vmatprep.mubr.f32.mxu1 %v3603_v26 }
 0x1b9   :  { %2238 = vmatmul.mubr.f32.gmra.mrb[6].mxu1 %v3606_v29 }
 0x1ba   :  { %2240 = vmatprep.mubr.f32.mxu1 %v3609_v31 }
 0x1bd   :  { %2241 = vmatmul.mubr.f32.gmra.mrb[8].mxu1 %v3612_v36 }
 0x1be   :  { %2243 = vmatprep.mubr.f32.mxu1 %v3615_v38 }
 0x1c1   :  { %2244 = vmatmul.mubr.f32.gmra.mrb[10].mxu1 %v3618_v44 }
 0x1c2   :  { %2246 = vmatprep.mubr.f32.mxu1 %v3621_v47 }
 0x1c5   :  { %2247 = vmatmul.mubr.f32.gmra.mrb[12].mxu1 %v3624_v52 }
 0x1c6   :  { %2249 = vmatprep.mubr.f32.mxu1 %v3627_v56 }
 0x1c9   :  { %2250 = vmatmul.mubr.f32.gmra.mrb[14].mxu1 %v3630_v58 }
 0x1ca   :  { %2340 = vmatprep.mubr.f32.mxu1 %v3481_v42 }
 0x280   :  { %v2230_v59 = vpop.f32.mrb[0].mxu1 }
 0x281   :  { %v545_v62 = vpop.f32.mrb[1].mxu1 }
 0x282   :  { %2284 = vmatprep.mubr.f32.mxu0 %v545_v62  ;;  %v3672_v62 = vadd.f32 %v3654_v30, %v3534_v13 }
 0x283   :  { %2285 = vmatmul.mubr.f32.vlgmr.msra.gmra.mrb[16].mxu0 %v2230_v59 }
 0x284   :  { %v2233_v1 = vpop.f32.mrb[2].mxu1  ;;  %2824 = vmatpush3.bf16.msra.mxu0 %v3484_v46 }
 0x285   :  { %v555_v4 = vpop.f32.mrb[3].mxu1  ;;  %2826 = vmatprep.subr.bf16.mxu0 %v3486_v48 }
 0x286   :  { %2287 = vmatprep.mubr.f32.mxu0 %v555_v4 }
 0x287   :  { %2288 = vmatmul.mubr.f32.gmra.mrb[18].mxu0 %v2233_v1 }
 0x288   :  { %v2236_v6 = vpop.f32.mrb[4].mxu1  ;;  %2828 = vmatpush3.bf16.msra.mxu0 %v3486_v48 }
 0x289   :  { %v565_v8 = vpop.f32.mrb[5].mxu1  ;;  %2830 = vmatprep.subr.bf16.mxu0 %v3491_v51 }
 0x28a   :  { %2290 = vmatprep.mubr.f32.mxu0 %v565_v8 }
 0x28b   :  { %2291 = vmatmul.mubr.f32.gmra.mrb[20].mxu0 %v2236_v6 }
 0x28c   :  { %v2239_v9 = vpop.f32.mrb[6].mxu1  ;;  %2832 = vmatpush3.bf16.msra.mxu0 %v3491_v51 }
 0x28d   :  { %v575_v10 = vpop.f32.mrb[7].mxu1  ;;  %2834 = vmatprep.subr.bf16.mxu0 %v3495_v54 }
 0x28e   :  { %2293 = vmatprep.mubr.f32.mxu0 %v575_v10 }
 0x28f   :  { %2294 = vmatmul.mubr.f32.gmra.mrb[22].mxu0 %v2239_v9  ;;  %v3678_v9 = vadd.f32 %v3654_v30, %v3539_v18 }
 0x290   :  { %v2242_v12 = vpop.f32.mrb[8].mxu1  ;;  %2836 = vmatpush3.bf16.msra.mxu0 %v3495_v54 }
 0x291   :  { %v585_v15 = vpop.f32.mrb[9].mxu1  ;;  %2838 = vmatprep.subr.bf16.mxu0 %v3499_v57 }
 0x292   :  { %2296 = vmatprep.mubr.f32.mxu0 %v585_v15 }
 0x293   :  { %2297 = vmatmul.mubr.f32.gmra.mrb[24].mxu0 %v2242_v12 }
 0x294   :  { %v2245_v16 = vpop.f32.mrb[10].mxu1  ;;  %2840 = vmatpush3.bf16.msra.mxu0 %v3499_v57 }
 0x295   :  { %v595_v19 = vpop.f32.mrb[11].mxu1  ;;  %2842 = vmatprep.subr.bf16.mxu0 %v3503_v60 }
 0x296   :  { %2299 = vmatprep.mubr.f32.mxu0 %v595_v19 }
 0x297   :  { %2300 = vmatmul.mubr.f32.gmra.mrb[26].mxu0 %v2245_v16 }
 0x298   :  { %v2248_v22 = vpop.f32.mrb[12].mxu1  ;;  %2844 = vmatpush3.bf16.msra.mxu0 %v3503_v60 }
 0x299   :  { %v605_v23 = vpop.f32.mrb[13].mxu1  ;;  %2846 = vmatprep.subr.bf16.mxu0 %v3507_v63 }
 0x29a   :  { %2302 = vmatprep.mubr.f32.mxu0 %v605_v23  ;;  %v3688_v23 = vadd.f32 %v3654_v30, %v3547_v25 }
 0x29b   :  { %2303 = vmatmul.mubr.f32.gmra.mrb[28].mxu0 %v2248_v22 }
 0x29c   :  { %v2251_v40 = vpop.f32.mrb[14].mxu1  ;;  %2848 = vmatpush3.bf16.msra.mxu0 %v3507_v63 }
 0x29d   :  { %v615_v28 = vpop.f32.mrb[15].mxu1  ;;  %2850 = vmatprep.subr.bf16.mxu0 %v3511_v2 }
 0x29e   :  { %2305 = vmatprep.mubr.f32.mxu0 %v615_v28 }
 0x29f   :  { %2306 = vmatmul.mubr.f32.gmra.mrb[30].mxu0 %v2251_v40  ;;  %v3692_v40 = vadd.f32 %v3654_v30, %v3550_v27 }
 0x2a0   :  { %2852 = vmatpush3.bf16.msra.mxu0 %v3511_v2 }
 0x2a1   :  { %2886 = vmatprep.subr.bf16.mxu0 %v3484_v46 }
 0x356   :  { %v2286_v37 = vpop.f32.mrb[16].mxu0 }
 0x357   :  { %v696_v41 = vadd.f32 %v2286_v37, %v3658_v33  ;;  %v690_v45 = vpop.f32.mrb[17].mxu0 }
 0x358   :  { %v691_v49 = vadd.f32 %v690_v45, %v3662_v35 }
 0x359   :  { %v770_v59 = vmax.f32 %v696_v41, 0.0 }
 0x35a   :  { %v769_v5 = vmax.f32 %v691_v49, 0.0  ;;  %v2289_v1 = vpop.f32.mrb[18].mxu0 }
 0x35b   :  { %v706_v7 = vadd.f32 %v2289_v1, %v3668_v55  ;;  %v700_v4 = vpop.f32.mrb[19].mxu0 }
 0x35c   :  { %v2789_v6 = vpack.c.bf16 %v770_v59, %v769_v5  ;;  %v701_v8 = vadd.f32 %v700_v4, %v3672_v62  ;;  %v3698_v59 = vadd.f32 %v3654_v30, %v3555_v32  ;;  %v3702_v5 = vadd.f32 %v3654_v30, %v3558_v34 }
 0x35d   :  { %v772_v10 = vmax.f32 %v706_v7, 0.0 }
 0x35e   :  { %v771_v12 = vmax.f32 %v701_v8, 0.0  ;;  %v2292_v13 = vpop.f32.mrb[20].mxu0  ;;  %2790 = vmatprep.subr.bf16.mxu1 %v2789_v6 }
 0x35f   :  { %v716_v15 = vadd.f32 %v2292_v13, %v3678_v9  ;;  %v710_v16 = vpop.f32.mrb[21].mxu0  ;;  %2792 = vmatpush3.bf16.msra.mxu1 %v2789_v6 }
 0x360   :  { %v2793_v19 = vpack.c.bf16 %v772_v10, %v771_v12  ;;  %v711_v22 = vadd.f32 %v710_v16, %v3682_v11  ;;  %v3708_v10 = vadd.f32 %v3654_v30, %v3563_v39  ;;  %v3712_v12 = vadd.f32 %v3654_v30, %v3566_v43 }
 0x361   :  { %v774_v18 = vmax.f32 %v716_v15, 0.0 }
 0x362   :  { %v773_v20 = vmax.f32 %v711_v22, 0.0  ;;  %v2295_v28 = vpop.f32.mrb[22].mxu0  ;;  %2794 = vmatprep.subr.bf16.mxu1 %v2793_v19 }
 0x363   :  { %v726_v37 = vadd.f32 %v2295_v28, %v3688_v23  ;;  %v720_v41 = vpop.f32.mrb[23].mxu0  ;;  %2796 = vmatpush3.bf16.msra.mxu1 %v2793_v19 }
 0x364   :  { %v2797_v45 = vpack.c.bf16 %v774_v18, %v773_v20  ;;  %v721_v49 = vadd.f32 %v720_v41, %v3692_v40  ;;  %v3718_v18 = vadd.f32 %v3654_v30, %v3571_v50  ;;  %v3722_v20 = vadd.f32 %v3654_v30, %v3574_v53 }
 0x365   :  { %v776_v25 = vmax.f32 %v726_v37, 0.0 }
 0x366   :  { %v775_v27 = vmax.f32 %v721_v49, 0.0  ;;  %v2298_v1 = vpop.f32.mrb[24].mxu0  ;;  %2798 = vmatprep.subr.bf16.mxu1 %v2797_v45 }
 0x367   :  { %v736_v7 = vadd.f32 %v2298_v1, %v3698_v59  ;;  %v730_v4 = vpop.f32.mrb[25].mxu0  ;;  %2800 = vmatpush3.bf16.msra.mxu1 %v2797_v45 }
 0x368   :  { %v2801_v6 = vpack.c.bf16 %v776_v25, %v775_v27  ;;  %v731_v8 = vadd.f32 %v730_v4, %v3702_v5  ;;  %v3728_v25 = vadd.f32 %v3654_v30, %v3579_v61  ;;  %v3732_v27 = vadd.f32 %v3654_v30, %v3582_v0 }
 0x369   :  { %v778_v32 = vmax.f32 %v736_v7, 0.0 }
 0x36a   :  { %v777_v34 = vmax.f32 %v731_v8, 0.0  ;;  %v2301_v13 = vpop.f32.mrb[26].mxu0  ;;  %2802 = vmatprep.subr.bf16.mxu1 %v2801_v6 }
 0x36b   :  { %v746_v15 = vadd.f32 %v2301_v13, %v3708_v10  ;;  %v740_v16 = vpop.f32.mrb[27].mxu0  ;;  %2804 = vmatpush3.bf16.msra.mxu1 %v2801_v6 }
 0x36c   :  { %v2805_v19 = vpack.c.bf16 %v778_v32, %v777_v34  ;;  %v741_v22 = vadd.f32 %v740_v16, %v3712_v12 }
 0x36d   :  { %v780_v39 = vmax.f32 %v746_v15, 0.0 }
 0x36e   :  { %v779_v43 = vmax.f32 %v741_v22, 0.0  ;;  %v2304_v28 = vpop.f32.mrb[28].mxu0  ;;  %2806 = vmatprep.subr.bf16.mxu1 %v2805_v19 }
 0x36f   :  { %v756_v37 = vadd.f32 %v2304_v28, %v3718_v18  ;;  %v750_v41 = vpop.f32.mrb[29].mxu0  ;;  %2808 = vmatpush3.bf16.msra.mxu1 %v2805_v19 }
 0x370   :  { %v2809_v45 = vpack.c.bf16 %v780_v39, %v779_v43  ;;  %v751_v49 = vadd.f32 %v750_v41, %v3722_v20 }
 0x371   :  { %v782_v50 = vmax.f32 %v756_v37, 0.0 }
 0x372   :  { %v781_v53 = vmax.f32 %v751_v49, 0.0  ;;  %v2307_v1 = vpop.f32.mrb[30].mxu0  ;;  %2810 = vmatprep.subr.bf16.mxu1 %v2809_v45 }
 0x373   :  { %v766_v7 = vadd.f32 %v2307_v1, %v3728_v25  ;;  %v760_v4 = vpop.f32.mrb[31].mxu0  ;;  %2812 = vmatpush3.bf16.msra.mxu1 %v2809_v45 }
 0x374   :  { %v2813_v6 = vpack.c.bf16 %v782_v50, %v781_v53  ;;  %v761_v8 = vadd.f32 %v760_v4, %v3732_v27 }
 0x375   :  { %v784_v32 = vmax.f32 %v766_v7, 0.0 }
 0x376   :  { %v783_v34 = vmax.f32 %v761_v8, 0.0  ;;  %2814 = vmatprep.subr.bf16.mxu1 %v2813_v6 }
 0x377   :  { %2816 = vmatpush3.bf16.msra.mxu1 %v2813_v6 }
 0x378   :  { %v2817_v61 = vpack.c.bf16 %v784_v32, %v783_v34 }
 0x37a   :  { %2818 = vmatprep.subr.bf16.mxu1 %v2817_v61 }
 0x37b   :  { %2820 = vmatpush3.bf16.msra.mxu1 %v2817_v61 }
 0x37e   :  { %2341 = vmatmul.mubr.f32.vlgmr.msra.gmra.mrb[16].mxu1 %v3588_v14 }
 0x37f   :  { %2343 = vmatprep.mubr.f32.mxu1 %v3591_v3 }
 0x382   :  { %2344 = vmatmul.mubr.f32.gmra.mrb[18].mxu1 %v3594_v17 }
 0x383   :  { %2346 = vmatprep.mubr.f32.mxu1 %v3597_v21 }
 0x386   :  { %2347 = vmatmul.mubr.f32.gmra.mrb[20].mxu1 %v3600_v24 }
 0x387   :  { %2349 = vmatprep.mubr.f32.mxu1 %v3603_v26 }
 0x38a   :  { %2350 = vmatmul.mubr.f32.gmra.mrb[22].mxu1 %v3606_v29 }
 0x38b   :  { %2352 = vmatprep.mubr.f32.mxu1 %v3609_v31 }
 0x38e   :  { %2353 = vmatmul.mubr.f32.gmra.mrb[24].mxu1 %v3612_v36 }
 0x38f   :  { %2355 = vmatprep.mubr.f32.mxu1 %v3615_v38 }
 0x392   :  { %2356 = vmatmul.mubr.f32.gmra.mrb[26].mxu1 %v3618_v44 }
 0x393   :  { %2358 = vmatprep.mubr.f32.mxu1 %v3621_v47 }
 0x396   :  { %2359 = vmatmul.mubr.f32.gmra.mrb[28].mxu1 %v3624_v52 }
 0x397   :  { %2361 = vmatprep.mubr.f32.mxu1 %v3627_v56 }
 0x39a   :  { %2362 = vmatmul.mubr.f32.gmra.mrb[30].mxu1 %v3630_v58 }
 0x39b   :  { %2452 = vmatprep.mubr.f32.mxu1 %v3481_v42 }
 0x451   :  { %v2342_v0 = vpop.f32.mrb[16].mxu1 }
 0x452   :  { %v851_v30 = vpop.f32.mrb[17].mxu1 }
 0x453   :  { %2396 = vmatprep.mubr.f32.mxu0 %v851_v30 }
 0x454   :  { %2397 = vmatmul.mubr.f32.vlgmr.msra.gmra.mrb[32].mxu0 %v2342_v0 }
 0x455   :  { %v2345_v13 = vpop.f32.mrb[18].mxu1  ;;  %2888 = vmatpush3.bf16.msra.mxu0 %v3484_v46 }
 0x456   :  { %v861_v15 = vpop.f32.mrb[19].mxu1  ;;  %2890 = vmatprep.subr.bf16.mxu0 %v3486_v48 }
 0x457   :  { %2399 = vmatprep.mubr.f32.mxu0 %v861_v15 }
 0x458   :  { %2400 = vmatmul.mubr.f32.gmra.mrb[34].mxu0 %v2345_v13 }
 0x459   :  { %v2348_v16 = vpop.f32.mrb[20].mxu1  ;;  %2892 = vmatpush3.bf16.msra.mxu0 %v3486_v48 }
 0x45a   :  { %v871_v19 = vpop.f32.mrb[21].mxu1  ;;  %2894 = vmatprep.subr.bf16.mxu0 %v3491_v51 }
 0x45b   :  { %2402 = vmatprep.mubr.f32.mxu0 %v871_v19 }
 0x45c   :  { %2403 = vmatmul.mubr.f32.gmra.mrb[36].mxu0 %v2348_v16 }
 0x45d   :  { %v2351_v42 = vpop.f32.mrb[22].mxu1  ;;  %2896 = vmatpush3.bf16.msra.mxu0 %v3491_v51 }
 0x45e   :  { %v881_v22 = vpop.f32.mrb[23].mxu1  ;;  %2898 = vmatprep.subr.bf16.mxu0 %v3495_v54 }
 0x45f   :  { %2405 = vmatprep.mubr.f32.mxu0 %v881_v22 }
 0x460   :  { %2406 = vmatmul.mubr.f32.gmra.mrb[38].mxu0 %v2351_v42 }
 0x461   :  { %v2354_v46 = vpop.f32.mrb[24].mxu1  ;;  %2900 = vmatpush3.bf16.msra.mxu0 %v3495_v54 }
 0x462   :  { %v891_v39 = vpop.f32.mrb[25].mxu1  ;;  %2902 = vmatprep.subr.bf16.mxu0 %v3499_v57 }
 0x463   :  { %2408 = vmatprep.mubr.f32.mxu0 %v891_v39 }
 0x464   :  { %2409 = vmatmul.mubr.f32.gmra.mrb[40].mxu0 %v2354_v46 }
 0x465   :  { %v2357_v48 = vpop.f32.mrb[26].mxu1  ;;  %2904 = vmatpush3.bf16.msra.mxu0 %v3499_v57 }
 0x466   :  { %v901_v43 = vpop.f32.mrb[27].mxu1  ;;  %2906 = vmatprep.subr.bf16.mxu0 %v3503_v60 }
 0x467   :  { %2411 = vmatprep.mubr.f32.mxu0 %v901_v43 }
 0x468   :  { %2412 = vmatmul.mubr.f32.gmra.mrb[42].mxu0 %v2357_v48 }
 0x469   :  { %v2360_v51 = vpop.f32.mrb[28].mxu1  ;;  %2908 = vmatpush3.bf16.msra.mxu0 %v3503_v60 }
 0x46a   :  { %v911_v28 = vpop.f32.mrb[29].mxu1  ;;  %2910 = vmatprep.subr.bf16.mxu0 %v3507_v63 }
 0x46b   :  { %2414 = vmatprep.mubr.f32.mxu0 %v911_v28 }
 0x46c   :  { %2415 = vmatmul.mubr.f32.gmra.mrb[44].mxu0 %v2360_v51 }
 0x46d   :  { %v2363_v54 = vpop.f32.mrb[30].mxu1  ;;  %2912 = vmatpush3.bf16.msra.mxu0 %v3507_v63 }
 0x46e   :  { %v921_v37 = vpop.f32.mrb[31].mxu1  ;;  %2914 = vmatprep.subr.bf16.mxu0 %v3511_v2 }
 0x46f   :  { %2417 = vmatprep.mubr.f32.mxu0 %v921_v37 }
 0x470   :  { %2418 = vmatmul.mubr.f32.gmra.mrb[46].mxu0 %v2363_v54 }
 0x471   :  { %2916 = vmatpush3.bf16.msra.mxu0 %v3511_v2 }
 0x527   :  { %v2398_v57 = vpop.f32.mrb[32].mxu0 }
 0x528   :  { %v1002_v41 = vadd.f32 %v2398_v57, %v3658_v33  ;;  %v996_v45 = vpop.f32.mrb[33].mxu0 }
 0x529   :  { %v997_v60 = vadd.f32 %v996_v45, %v3662_v35 }
 0x52a   :  { %v1076_v49 = vmax.f32 %v1002_v41, 0.0 }
 0x52b   :  { %v1075_v50 = vmax.f32 %v997_v60, 0.0  ;;  %v2401_v53 = vpop.f32.mrb[34].mxu0 }
 0x52c   :  { %v1012_v1 = vadd.f32 %v2401_v53, %v3668_v55  ;;  %v1006_v7 = vpop.f32.mrb[35].mxu0 }
 0x52d   :  { %v2853_v63 = vpack.c.bf16 %v1076_v49, %v1075_v50  ;;  %v1007_v4 = vadd.f32 %v1006_v7, %v3672_v62 }
 0x52e   :  { %v1078_v6 = vmax.f32 %v1012_v1, 0.0 }
 0x52f   :  { %v1077_v8 = vmax.f32 %v1007_v4, 0.0  ;;  %v2404_v32 = vpop.f32.mrb[36].mxu0  ;;  %2854 = vmatprep.subr.bf16.mxu1 %v2853_v63 }
 0x530   :  { %v1022_v2 = vadd.f32 %v2404_v32, %v3678_v9  ;;  %v1016_v34 = vpop.f32.mrb[37].mxu0  ;;  %2856 = vmatpush3.bf16.msra.mxu1 %v2853_v63 }
 0x531   :  { %v2857_v61 = vpack.c.bf16 %v1078_v6, %v1077_v8  ;;  %v1017_v0 = vadd.f32 %v1016_v34, %v3682_v11 }
 0x532   :  { %v1080_v30 = vmax.f32 %v1022_v2, 0.0 }
 0x533   :  { %v1079_v13 = vmax.f32 %v1017_v0, 0.0  ;;  %v2407_v15 = vpop.f32.mrb[38].mxu0  ;;  %2858 = vmatprep.subr.bf16.mxu1 %v2857_v61 }
 0x534   :  { %v1032_v16 = vadd.f32 %v2407_v15, %v3688_v23  ;;  %v1026_v19 = vpop.f32.mrb[39].mxu0  ;;  %2860 = vmatpush3.bf16.msra.mxu1 %v2857_v61 }
 0x535   :  { %v2861_v42 = vpack.c.bf16 %v1080_v30, %v1079_v13  ;;  %v1027_v22 = vadd.f32 %v1026_v19, %v3692_v40 }
 0x536   :  { %v1082_v46 = vmax.f32 %v1032_v16, 0.0 }
 0x537   :  { %v1081_v39 = vmax.f32 %v1027_v22, 0.0  ;;  %v2410_v48 = vpop.f32.mrb[40].mxu0  ;;  %2862 = vmatprep.subr.bf16.mxu1 %v2861_v42  ;;  %v250_v22 = vld [vmem:[#allocation11 + $0x58] sm:$0xff] }
 0x538   :  { %v1042_v43 = vadd.f32 %v2410_v48, %v3698_v59  ;;  %v1036_v51 = vpop.f32.mrb[41].mxu0  ;;  %2864 = vmatpush3.bf16.msra.mxu1 %v2861_v42  ;;  %v249_v42 = vld [vmem:[#allocation11 + $0x50] sm:$0xff]  ;;  %v252_v48 = vld [vmem:[#allocation11 + $0x68] sm:$0xff] }
 0x539   :  { %v2865_v28 = vpack.c.bf16 %v1082_v46, %v1081_v39  ;;  %v1037_v54 = vadd.f32 %v1036_v51, %v3702_v5  ;;  %v2937_v46 = vpack.c.bf16 %v250_v22, %v249_v42  ;;  %v251_v39 = vld [vmem:[#allocation11 + $0x60] sm:$0xff] }
 0x53a   :  { %v1084_v37 = vmax.f32 %v1042_v43, 0.0  ;;  %v2941_v43 = vpack.c.bf16 %v252_v48, %v251_v39 }
 0x53b   :  { %v1083_v57 = vmax.f32 %v1037_v54, 0.0  ;;  %v2413_v41 = vpop.f32.mrb[42].mxu0  ;;  %2866 = vmatprep.subr.bf16.mxu1 %v2865_v28 }
 0x53c   :  { %v1052_v45 = vadd.f32 %v2413_v41, %v3708_v10  ;;  %v1046_v60 = vpop.f32.mrb[43].mxu0  ;;  %2868 = vmatpush3.bf16.msra.mxu1 %v2865_v28 }
 0x53d   :  { %v2869_v49 = vpack.c.bf16 %v1084_v37, %v1083_v57  ;;  %v1047_v50 = vadd.f32 %v1046_v60, %v3712_v12 }
 0x53e   :  { %v1086_v53 = vmax.f32 %v1052_v45, 0.0 }
 0x53f   :  { %v1085_v1 = vmax.f32 %v1047_v50, 0.0  ;;  %v2416_v7 = vpop.f32.mrb[44].mxu0  ;;  %2870 = vmatprep.subr.bf16.mxu1 %v2869_v49 }
 0x540   :  { %v1062_v63 = vadd.f32 %v2416_v7, %v3718_v18  ;;  %v1056_v4 = vpop.f32.mrb[45].mxu0  ;;  %2872 = vmatpush3.bf16.msra.mxu1 %v2869_v49 }
 0x541   :  { %v2873_v6 = vpack.c.bf16 %v1086_v53, %v1085_v1  ;;  %v1057_v8 = vadd.f32 %v1056_v4, %v3722_v20 }
 0x542   :  { %v1088_v32 = vmax.f32 %v1062_v63, 0.0 }
 0x543   :  { %v1087_v2 = vmax.f32 %v1057_v8, 0.0  ;;  %v2419_v34 = vpop.f32.mrb[46].mxu0  ;;  %2874 = vmatprep.subr.bf16.mxu1 %v2873_v6  ;;  %v253_v8 = vld [vmem:[#allocation11 + $0x70] sm:$0xff] }
 0x544   :  { %v1072_v61 = vadd.f32 %v2419_v34, %v3728_v25  ;;  %v1066_v0 = vpop.f32.mrb[47].mxu0  ;;  %2876 = vmatpush3.bf16.msra.mxu1 %v2873_v6 }
 0x545   :  { %v2877_v30 = vpack.c.bf16 %v1088_v32, %v1087_v2  ;;  %v1067_v13 = vadd.f32 %v1066_v0, %v3732_v27  ;;  %v254_v32 = vld [vmem:[#allocation11 + $0x78] sm:$0xff] }
 0x546   :  { %v1090_v15 = vmax.f32 %v1072_v61, 0.0  ;;  %v2945_v2 = vpack.c.bf16 %v254_v32, %v253_v8  ;;  %v264_v32 = vld [vmem:[#allocation13 + $0x40] sm:$0xff] }
 0x547   :  { %v1089_v16 = vmax.f32 %v1067_v13, 0.0  ;;  %2878 = vmatprep.subr.bf16.mxu1 %v2877_v30 }
 0x548   :  { %2880 = vmatpush3.bf16.msra.mxu1 %v2877_v30 }
 0x549   :  { %v2881_v19 = vpack.c.bf16 %v1090_v15, %v1089_v16 }
 0x54b   :  { %2882 = vmatprep.subr.bf16.mxu1 %v2881_v19 }
 0x54c   :  { %2884 = vmatpush3.bf16.msra.mxu1 %v2881_v19 }
 0x54f   :  { %2453 = vmatmul.mubr.f32.vlgmr.msra.gmra.mrb[32].mxu1 %v3588_v14  ;;  %v239_v14 = vld [vmem:[#allocation11] sm:$0xff] }
 0x550   :  { %2455 = vmatprep.mubr.f32.mxu1 %v3591_v3  ;;  %v240_v3 = vld [vmem:[#allocation11 + $0x8] sm:$0xff] }
 0x553   :  { %2456 = vmatmul.mubr.f32.gmra.mrb[34].mxu1 %v3594_v17  ;;  %v241_v17 = vld [vmem:[#allocation11 + $0x10] sm:$0xff] }
 0x554   :  { %2458 = vmatprep.mubr.f32.mxu1 %v3597_v21  ;;  %v2917_v21 = vpack.c.bf16 %v240_v3, %v239_v14 }
 0x556   :  { %2918 = vmatprep.subr.bf16.mxu1 %v2917_v21 }
 0x557   :  { %2459 = vmatmul.mubr.f32.gmra.mrb[36].mxu1 %v3600_v24  ;;  %v242_v24 = vld [vmem:[#allocation11 + $0x18] sm:$0xff] }
 0x558   :  { %2461 = vmatprep.mubr.f32.mxu1 %v3603_v26  ;;  %v2921_v26 = vpack.c.bf16 %v242_v24, %v241_v17  ;;  %2920 = vmatpush3.bf16.msra.mxu1 %v2917_v21 }
 0x55a   :  { %2922 = vmatprep.subr.bf16.mxu1 %v2921_v26 }
 0x55b   :  { %2462 = vmatmul.mubr.f32.gmra.mrb[38].mxu1 %v3606_v29  ;;  %v243_v29 = vld [vmem:[#allocation11 + $0x20] sm:$0xff] }
 0x55c   :  { %2464 = vmatprep.mubr.f32.mxu1 %v3609_v31  ;;  %v244_v31 = vld [vmem:[#allocation11 + $0x28] sm:$0xff]  ;;  %2924 = vmatpush3.bf16.msra.mxu1 %v2921_v26 }
 0x55f   :  { %2465 = vmatmul.mubr.f32.gmra.mrb[40].mxu1 %v3612_v36  ;;  %v2925_v36 = vpack.c.bf16 %v244_v31, %v243_v29 }
 0x560   :  { %2467 = vmatprep.mubr.f32.mxu1 %v3615_v38  ;;  %v245_v38 = vld [vmem:[#allocation11 + $0x30] sm:$0xff] }
 0x561   :  { %2926 = vmatprep.subr.bf16.mxu1 %v2925_v36 }
 0x562   :  { %2928 = vmatpush3.bf16.msra.mxu1 %v2925_v36 }
 0x563   :  { %2468 = vmatmul.mubr.f32.gmra.mrb[42].mxu1 %v3618_v44  ;;  %v246_v44 = vld [vmem:[#allocation11 + $0x38] sm:$0xff] }
 0x564   :  { %2470 = vmatprep.mubr.f32.mxu1 %v3621_v47  ;;  %v2929_v47 = vpack.c.bf16 %v246_v44, %v245_v38 }
 0x566   :  { %2930 = vmatprep.subr.bf16.mxu1 %v2929_v47 }
 0x567   :  { %2471 = vmatmul.mubr.f32.gmra.mrb[44].mxu1 %v3624_v52  ;;  %v247_v52 = vld [vmem:[#allocation11 + $0x40] sm:$0xff] }
 0x568   :  { %2473 = vmatprep.mubr.f32.mxu1 %v3627_v56  ;;  %v248_v56 = vld [vmem:[#allocation11 + $0x48] sm:$0xff]  ;;  %2932 = vmatpush3.bf16.msra.mxu1 %v2929_v47 }
 0x56b   :  { %2474 = vmatmul.mubr.f32.gmra.mrb[46].mxu1 %v3630_v58  ;;  %v2933_v58 = vpack.c.bf16 %v248_v56, %v247_v52 }
 0x56d   :  { %2934 = vmatprep.subr.bf16.mxu1 %v2933_v58 }
 0x56e   :  { %2936 = vmatpush3.bf16.msra.mxu1 %v2933_v58 }
 0x56f   :  { %2938 = vmatprep.subr.bf16.mxu1 %v2937_v46 }
 0x572   :  { %2940 = vmatpush3.bf16.msra.mxu1 %v2937_v46 }
 0x573   :  { %2942 = vmatprep.subr.bf16.mxu1 %v2941_v43 }
 0x576   :  { %2944 = vmatpush3.bf16.msra.mxu1 %v2941_v43 }
 0x577   :  { %2946 = vmatprep.subr.bf16.mxu1 %v2945_v2 }
 0x57a   :  { %2948 = vmatpush3.bf16.msra.mxu1 %v2945_v2  ;;  %v265_v2 = vld [vmem:[#allocation13 + $0x48] sm:$0xff] }
 0x622   :  { %v2454_v51 = vpop.f32.mrb[32].mxu1 }
 0x623   :  { %v1157_v28 = vpop.f32.mrb[33].mxu1 }
 0x624   :  { %2508 = vmatprep.mubr.f32.mxu0 %v1157_v28 }
 0x625   :  { %2509 = vmatmul.mubr.f32.vlgmr.msra.gmra.mrb[48].mxu0 %v2454_v51 }
 0x626   :  { %v2457_v54 = vpop.f32.mrb[34].mxu1 }
 0x627   :  { %v1167_v37 = vpop.f32.mrb[35].mxu1 }
 0x628   :  { %2511 = vmatprep.mubr.f32.mxu0 %v1167_v37 }
 0x629   :  { %2512 = vmatmul.mubr.f32.gmra.mrb[50].mxu0 %v2457_v54 }
 0x62a   :  { %v2460_v57 = vpop.f32.mrb[36].mxu1 }
 0x62b   :  { %v1177_v41 = vpop.f32.mrb[37].mxu1 }
 0x62c   :  { %2514 = vmatprep.mubr.f32.mxu0 %v1177_v41 }
 0x62d   :  { %2515 = vmatmul.mubr.f32.gmra.mrb[52].mxu0 %v2460_v57 }
 0x62e   :  { %v2463_v45 = vpop.f32.mrb[38].mxu1 }
 0x62f   :  { %v1187_v60 = vpop.f32.mrb[39].mxu1 }
 0x630   :  { %2517 = vmatprep.mubr.f32.mxu0 %v1187_v60  ;;  %v258_v60 = vld [vmem:[#allocation13 + $0x10] sm:$0xff] }
 0x631   :  { %2518 = vmatmul.mubr.f32.gmra.mrb[54].mxu0 %v2463_v45 }
 0x632   :  { %v2466_v49 = vpop.f32.mrb[40].mxu1 }
 0x633   :  { %v1197_v50 = vpop.f32.mrb[41].mxu1 }
 0x634   :  { %2520 = vmatprep.mubr.f32.mxu0 %v1197_v50  ;;  %v259_v50 = vld [vmem:[#allocation13 + $0x18] sm:$0xff] }
 0x635   :  { %2521 = vmatmul.mubr.f32.gmra.mrb[56].mxu0 %v2466_v49 }
 0x636   :  { %v2469_v53 = vpop.f32.mrb[42].mxu1 }
 0x637   :  { %v1207_v1 = vpop.f32.mrb[43].mxu1 }
 0x638   :  { %2523 = vmatprep.mubr.f32.mxu0 %v1207_v1  ;;  %v260_v1 = vld [vmem:[#allocation13 + $0x20] sm:$0xff] }
 0x639   :  { %2524 = vmatmul.mubr.f32.gmra.mrb[58].mxu0 %v2469_v53  ;;  %v2977_v53 = vpack.c.bf16 %v259_v50, %v258_v60 }
 0x63a   :  { %v2472_v7 = vpop.f32.mrb[44].mxu1 }
 0x63b   :  { %v1217_v63 = vpop.f32.mrb[45].mxu1 }
 0x63c   :  { %2526 = vmatprep.mubr.f32.mxu0 %v1217_v63 }
 0x63d   :  { %2527 = vmatmul.mubr.f32.gmra.mrb[60].mxu0 %v2472_v7  ;;  %v261_v7 = vld [vmem:[#allocation13 + $0x28] sm:$0xff] }
 0x63e   :  { %v2475_v4 = vpop.f32.mrb[46].mxu1  ;;  %v2980_v63 = vpack.c.bf16 %v261_v7, %v260_v1 }
 0x63f   :  { %v1227_v6 = vpop.f32.mrb[47].mxu1 }
 0x640   :  { %2529 = vmatprep.mubr.f32.mxu0 %v1227_v6  ;;  %v263_v6 = vld [vmem:[#allocation13 + $0x38] sm:$0xff] }
 0x641   :  { %2530 = vmatmul.mubr.f32.gmra.mrb[62].mxu0 %v2475_v4  ;;  %v262_v4 = vld [vmem:[#allocation13 + $0x30] sm:$0xff] }
 0x642   :  { %v2983_v8 = vpack.c.bf16 %v263_v6, %v262_v4 }
 0x6f8   :  { %v2510_v34 = vpop.f32.mrb[48].mxu0 }
 0x6f9   :  { %v1308_v61 = vadd.f32 %v2510_v34, %v3658_v33  ;;  %v1302_v0 = vpop.f32.mrb[49].mxu0  ;;  %v2986_v34 = vpack.c.bf16 %v265_v2, %v264_v32 }
 0x6fa   :  { %v1303_v30 = vadd.f32 %v1302_v0, %v3662_v35  ;;  %v267_v0 = vld [vmem:[#allocation13 + $0x58] sm:$0xff] }
 0x6fb   :  { %v1382_v16 = vmax.f32 %v1308_v61, 0.0  ;;  %v266_v61 = vld [vmem:[#allocation13 + $0x50] sm:$0xff] }
 0x6fc   :  { %v1381_v13 = vmax.f32 %v1303_v30, 0.0  ;;  %v2513_v15 = vpop.f32.mrb[50].mxu0  ;;  %v2989_v30 = vpack.c.bf16 %v267_v0, %v266_v61  ;;  %v204_v0 = vld [vmem:[#allocation7] sm:$0xff] }
 0x6fd   :  { %v1318_v19 = vadd.f32 %v2513_v15, %v3668_v55  ;;  %v1312_v14 = vpop.f32.mrb[51].mxu0  ;;  %v269_v15 = vld [vmem:[#allocation13 + $0x68] sm:$0xff] }
 0x6fe   :  { %v1313_v3 = vadd.f32 %v1312_v14, %v3672_v62  ;;  %2564 = vmatprep.mubr.f32.mxu1 %v1381_v13  ;;  %v268_v13 = vld [vmem:[#allocation13 + $0x60] sm:$0xff] }
 0x6ff   :  { %2565 = vmatmul.mubr.f32.vlgmr.msra.gmra.mrb[48].mxu1 %v1382_v16  ;;  %v1384_v24 = vmax.f32 %v1318_v19, 0.0  ;;  %v2992_v16 = vpack.c.bf16 %v269_v15, %v268_v13  ;;  %v3830_v19 = vld [vmem:[%s3894_s8] ss:$0 sm:$0xff] }
 0x700   :  { %v1383_v17 = vmax.f32 %v1313_v3, 0.0  ;;  %v2516_v21 = vpop.f32.mrb[52].mxu0  ;;  %v271_v13 = vld [vmem:[#allocation13 + $0x78] sm:$0xff] }
 0x701   :  { %v1328_v26 = vadd.f32 %v2516_v21, %v3678_v9  ;;  %v1322_v29 = vpop.f32.mrb[53].mxu0 }
 0x702   :  { %v1323_v33 = vadd.f32 %v1322_v29, %v3682_v11  ;;  %2567 = vmatprep.mubr.f32.mxu1 %v1383_v17 }
 0x703   :  { %2568 = vmatmul.mubr.f32.gmra.mrb[50].mxu1 %v1384_v24  ;;  %v1386_v36 = vmax.f32 %v1328_v26, 0.0 }
 0x704   :  { %v1385_v35 = vmax.f32 %v1323_v33, 0.0  ;;  %v2519_v31 = vpop.f32.mrb[54].mxu0 }
 0x705   :  { %v1338_v55 = vadd.f32 %v2519_v31, %v3688_v23  ;;  %v1332_v38 = vpop.f32.mrb[55].mxu0 }
 0x706   :  { %v1333_v62 = vadd.f32 %v1332_v38, %v3692_v40  ;;  %2570 = vmatprep.mubr.f32.mxu1 %v1385_v35 }
 0x707   :  { %2571 = vmatmul.mubr.f32.gmra.mrb[52].mxu1 %v1386_v36  ;;  %v1388_v52 = vmax.f32 %v1338_v55, 0.0 }
 0x708   :  { %v1387_v44 = vmax.f32 %v1333_v62, 0.0  ;;  %v2522_v47 = vpop.f32.mrb[56].mxu0 }
 0x709   :  { %v1348_v9 = vadd.f32 %v2522_v47, %v3698_v59  ;;  %v1342_v56 = vpop.f32.mrb[57].mxu0 }
 0x70a   :  { %v1343_v11 = vadd.f32 %v1342_v56, %v3702_v5  ;;  %2573 = vmatprep.mubr.f32.mxu1 %v1387_v44 }
 0x70b   :  { %2574 = vmatmul.mubr.f32.gmra.mrb[54].mxu1 %v1388_v52  ;;  %v1390_v22 = vmax.f32 %v1348_v9, 0.0 }
 0x70c   :  { %v1389_v58 = vmax.f32 %v1343_v11, 0.0  ;;  %v2525_v42 = vpop.f32.mrb[58].mxu0 }
 0x70d   :  { %v1358_v23 = vadd.f32 %v2525_v42, %v3708_v10  ;;  %v1352_v46 = vpop.f32.mrb[59].mxu0 }
 0x70e   :  { %v1353_v40 = vadd.f32 %v1352_v46, %v3712_v12  ;;  %2576 = vmatprep.mubr.f32.mxu1 %v1389_v58 }
 0x70f   :  { %2577 = vmatmul.mubr.f32.gmra.mrb[56].mxu1 %v1390_v22  ;;  %v1392_v43 = vmax.f32 %v1358_v23, 0.0 }
 0x710   :  { %v1391_v39 = vmax.f32 %v1353_v40, 0.0  ;;  %v2528_v48 = vpop.f32.mrb[60].mxu0 }
 0x711   :  { %v1368_v59 = vadd.f32 %v2528_v48, %v3718_v18  ;;  %v1362_v51 = vpop.f32.mrb[61].mxu0  ;;  %v3259_v18 = vmov 0.0|0.0  }
 0x712   :  { %v1363_v5 = vadd.f32 %v1362_v51, %v3722_v20  ;;  %2579 = vmatprep.mubr.f32.mxu1 %v1391_v39  ;;  %2949 = vmatprep.subr.bf16.mxu0 %v3259_v18  ;;  %v3261_v20 = vmov 0.0  }
 0x713   :  { %2580 = vmatmul.mubr.f32.gmra.mrb[58].mxu1 %v1392_v43  ;;  %v1394_v37 = vmax.f32 %v1368_v59, 0.0  ;;  %2973 = vmatprep.subr.bf16.mxu1 %v3259_v18 }
 0x714   :  { %v1393_v28 = vmax.f32 %v1363_v5, 0.0  ;;  %v2531_v54 = vpop.f32.mrb[62].mxu0  ;;  %2620 = vmatprep.mubr.msk.f32.mxu0 %vm3260_vm0, %v3261_v20 }
 0x715   :  { %v1378_v10 = vadd.f32 %v2531_v54, %v3728_v25  ;;  %v1372_v57 = vpop.f32.mrb[63].mxu0  ;;  %v256_v25 = vld [vmem:[#allocation13] sm:$0xff] }
 0x716   :  { %v1373_v12 = vadd.f32 %v1372_v57, %v3732_v27  ;;  %2582 = vmatprep.mubr.f32.mxu1 %v1393_v28  ;;  %v257_v27 = vld [vmem:[#allocation13 + $0x8] sm:$0xff] }
 0x717   :  { %2583 = vmatmul.mubr.f32.gmra.mrb[60].mxu1 %v1394_v37  ;;  %v1396_v45 = vmax.f32 %v1378_v10, 0.0  ;;  %v2974_v49 = vpack.c.bf16 %v257_v27, %v256_v25 }
 0x718   :  { %v1395_v41 = vmax.f32 %v1373_v12, 0.0 }
 0x719   :  { %2975 = vmatpush3.bf16.msra.mxu1 %v2974_v49 }
 0x71a   :  { %2585 = vmatprep.mubr.f32.mxu1 %v1395_v41  ;;  %2976 = vmatprep.subr.bf16.mxu1 %v3259_v18 }
 0x71b   :  { %2586 = vmatmul.mubr.f32.gmra.mrb[62].mxu1 %v1396_v45 }
 0x71c   :  { %2655 = vmatprep.mubr.msk.f32.mxu1 %vm3260_vm0, %v3261_v20 }
 0x71d   :  { %2978 = vmatpush3.bf16.msra.mxu1 %v2977_v53 }
 0x71e   :  { %2979 = vmatprep.subr.bf16.mxu1 %v3259_v18 }
 0x721   :  { %2981 = vmatpush3.bf16.msra.mxu1 %v2980_v63 }
 0x722   :  { %2982 = vmatprep.subr.bf16.mxu1 %v3259_v18 }
 0x725   :  { %2984 = vmatpush3.bf16.msra.mxu1 %v2983_v8 }
 0x726   :  { %2985 = vmatprep.subr.bf16.mxu1 %v3259_v18 }
 0x729   :  { %2987 = vmatpush3.bf16.msra.mxu1 %v2986_v34 }
 0x72a   :  { %2988 = vmatprep.subr.bf16.mxu1 %v3259_v18 }
 0x72d   :  { %2990 = vmatpush3.bf16.msra.mxu1 %v2989_v30  ;;  %v270_v30 = vld [vmem:[#allocation13 + $0x70] sm:$0xff] }
 0x72e   :  { %2991 = vmatprep.subr.bf16.mxu1 %v3259_v18  ;;  %v2995_v15 = vpack.c.bf16 %v271_v13, %v270_v30 }
 0x731   :  { %2993 = vmatpush3.bf16.msra.mxu1 %v2992_v16  ;;  %v273_v16 = vld [vmem:[#allocation14] sm:$0xff] }
 0x732   :  { %2994 = vmatprep.subr.bf16.mxu1 %v3259_v18 }
 0x735   :  { %2996 = vmatpush3.bf16.msra.mxu1 %v2995_v15 }
 0x7d2   :  { %v2566_v14 = vpop.f32.mrb[48].mxu1 }
 0x7d3   :  { %v1475_v3 = vadd.f32 %v2566_v14, %v3830_v19  ;;  %v1469_v17 = vpop.f32.mrb[49].mxu1  ;;  %v275_v14 = vld [vmem:[#allocation14 + $0x10] sm:$0xff] }
 0x7d4   :  { %v1470_v21 = vadd.f32 %v3830_v19, %v1469_v17  ;;  %v276_v17 = vld [vmem:[#allocation14 + $0x18] sm:$0xff] }
 0x7d5   :  { %v1549_v24 = vmax.f32 %v1475_v3, 0.0 }
 0x7d6   :  { %v1548_v26 = vmax.f32 %v1470_v21, 0.0  ;;  %v2569_v29 = vpop.f32.mrb[50].mxu1  ;;  %v3001_v21 = vpack.c.bf16 %v276_v17, %v275_v14 }
 0x7d7   :  { %v1485_v33 = vadd.f32 %v2569_v29, %v3830_v19  ;;  %v1479_v35 = vpop.f32.mrb[51].mxu1 }
 0x7d8   :  { %v2950_v31 = vpack.c.bf16 %v1549_v24, %v1548_v26  ;;  %v1480_v36 = vadd.f32 %v3830_v19, %v1479_v35  ;;  %v277_v24 = vld [vmem:[#allocation14 + $0x20] sm:$0xff]  ;;  %v278_v26 = vld [vmem:[#allocation14 + $0x28] sm:$0xff] }
 0x7d9   :  { %v1551_v55 = vmax.f32 %v1485_v33, 0.0  ;;  %v3004_v29 = vpack.c.bf16 %v278_v26, %v277_v24  ;;  %v280_v33 = vld [vmem:[#allocation14 + $0x38] sm:$0xff] }
 0x7da   :  { %v1550_v38 = vmax.f32 %v1480_v36, 0.0  ;;  %v2572_v62 = vpop.f32.mrb[52].mxu1  ;;  %2951 = vmatpush3.bf16.msra.mxu0 %v2950_v31  ;;  %v281_v31 = vld [vmem:[#allocation14 + $0x40] sm:$0xff]  ;;  %v282_v36 = vld [vmem:[#allocation14 + $0x48] sm:$0xff] }
 0x7db   :  { %v1495_v44 = vadd.f32 %v2572_v62, %v3830_v19  ;;  %v1489_v47 = vpop.f32.mrb[53].mxu1  ;;  %2952 = vmatprep.subr.bf16.mxu0 %v3259_v18  ;;  %v284_v62 = vld [vmem:[#allocation14 + $0x58] sm:$0xff] }
 0x7dc   :  { %v2953_v52 = vpack.c.bf16 %v1551_v55, %v1550_v38  ;;  %v1490_v9 = vadd.f32 %v3830_v19, %v1489_v47  ;;  %v3010_v55 = vpack.c.bf16 %v282_v36, %v281_v31  ;;  %v283_v38 = vld [vmem:[#allocation14 + $0x50] sm:$0xff]  ;;  %v285_v47 = vld [vmem:[#allocation14 + $0x60] sm:$0xff] }
 0x7dd   :  { %v1553_v56 = vmax.f32 %v1495_v44, 0.0  ;;  %v3013_v44 = vpack.c.bf16 %v284_v62, %v283_v38 }
 0x7de   :  { %v1552_v11 = vmax.f32 %v1490_v9, 0.0  ;;  %v2575_v58 = vpop.f32.mrb[54].mxu1  ;;  %2954 = vmatpush3.bf16.msra.mxu0 %v2953_v52  ;;  %v286_v52 = vld [vmem:[#allocation14 + $0x68] sm:$0xff] }
 0x7df   :  { %v1505_v42 = vadd.f32 %v2575_v58, %v3830_v19  ;;  %v1499_v22 = vpop.f32.mrb[55].mxu1  ;;  %2955 = vmatprep.subr.bf16.mxu0 %v3259_v18  ;;  %v3016_v9 = vpack.c.bf16 %v286_v52, %v285_v47 }
 0x7e0   :  { %v2956_v23 = vpack.c.bf16 %v1553_v56, %v1552_v11  ;;  %v1500_v46 = vadd.f32 %v3830_v19, %v1499_v22  ;;  %v288_v22 = vld [vmem:[#allocation14 + $0x78] sm:$0xff] }
 0x7e1   :  { %v1555_v40 = vmax.f32 %v1505_v42, 0.0  ;;  %v287_v42 = vld [vmem:[#allocation14 + $0x70] sm:$0xff] }
 0x7e2   :  { %v1554_v39 = vmax.f32 %v1500_v46, 0.0  ;;  %v2578_v48 = vpop.f32.mrb[56].mxu1  ;;  %2957 = vmatpush3.bf16.msra.mxu0 %v2956_v23  ;;  %v3019_v23 = vpack.c.bf16 %v288_v22, %v287_v42  ;;  %v1831_v46 = vld [vmem:[%s3896_s10] ss:$0 sm:$0xff]  ;;  %s3262_s10 = smov [#allocation16]  }
 0x7e3   :  { %v1515_v43 = vadd.f32 %v2578_v48, %v3830_v19  ;;  %v1509_v59 = vpop.f32.mrb[57].mxu1  ;;  %2958 = vmatprep.subr.bf16.mxu0 %v3259_v18 }
 0x7e4   :  { %v2959_v51 = vpack.c.bf16 %v1555_v40, %v1554_v39  ;;  %v1510_v5 = vadd.f32 %v3830_v19, %v1509_v59  ;;  %v1788_v59 = vlaneseq }
 0x7e5   :  { %v1557_v28 = vmax.f32 %v1515_v43, 0.0 }
 0x7e6   :  { %v1556_v54 = vmax.f32 %v1510_v5, 0.0  ;;  %v2581_v37 = vpop.f32.mrb[58].mxu1  ;;  %2960 = vmatpush3.bf16.msra.mxu0 %v2959_v51  ;;  %v1789_v51 = vand.u32 127, %v1788_v59 }
 0x7e7   :  { %v1525_v10 = vadd.f32 %v2581_v37, %v3830_v19  ;;  %v1519_v57 = vpop.f32.mrb[59].mxu1  ;;  %2961 = vmatprep.subr.bf16.mxu0 %v3259_v18 }
 0x7e8   :  { %v2962_v12 = vpack.c.bf16 %v1557_v28, %v1556_v54  ;;  %v1520_v41 = vadd.f32 %v3830_v19, %v1519_v57  ;;  %vm1792_vm1 = vcmp.lt.s32.totalorder %v1789_v51, 20 }
 0x7e9   :  { %v1559_v45 = vmax.f32 %v1525_v10, 0.0 }
 0x7ea   :  { %v1558_v25 = vmax.f32 %v1520_v41, 0.0  ;;  %v2584_v27 = vpop.f32.mrb[60].mxu1  ;;  %2963 = vmatpush3.bf16.msra.mxu0 %v2962_v12 }
 0x7eb   :  { %v1535_v60 = vadd.f32 %v2584_v27, %v3830_v19  ;;  %v1529_v49 = vpop.f32.mrb[61].mxu1  ;;  %2964 = vmatprep.subr.bf16.mxu0 %v3259_v18  ;;  %v1791_v27 = vshrl.u32 %v1788_v59, 7 }
 0x7ec   :  { %v2965_v50 = vpack.c.bf16 %v1559_v45, %v1558_v25  ;;  %v1530_v53 = vadd.f32 %v3830_v19, %v1529_v49 }
 0x7ed   :  { %v1561_v1 = vmax.f32 %v1535_v60, 0.0  ;;  %vm1793_vm2 = vcmp.lt.s32.totalorder %v1791_v27, 4 }
 0x7ee   :  { %v1560_v7 = vmax.f32 %v1530_v53, 0.0  ;;  %v2587_v63 = vpop.f32.mrb[62].mxu1  ;;  %2966 = vmatpush3.bf16.msra.mxu0 %v2965_v50  ;;  %vm1805_vm3 = vmand %vm1792_vm1, %vm1793_vm2 }
 0x7ef   :  { %v1545_v4 = vadd.f32 %v2587_v63, %v3830_v19  ;;  %v1539_v6 = vpop.f32.mrb[63].mxu1  ;;  %2967 = vmatprep.subr.bf16.mxu0 %v3259_v18 }
 0x7f0   :  { %v2968_v8 = vpack.c.bf16 %v1561_v1, %v1560_v7  ;;  %v1540_v32 = vadd.f32 %v3830_v19, %v1539_v6  ;;  %v274_v19 = vld [vmem:[#allocation14 + $0x8] sm:$0xff] }
 0x7f1   :  { %v1563_v2 = vmax.f32 %v1545_v4, 0.0  ;;  %v2998_v3 = vpack.c.bf16 %v274_v19, %v273_v16 }
 0x7f2   :  { %v1562_v34 = vmax.f32 %v1540_v32, 0.0  ;;  %2969 = vmatpush3.bf16.msra.mxu0 %v2968_v8 }
 0x7f3   :  { %2970 = vmatprep.subr.bf16.mxu0 %v3259_v18 }
 0x7f4   :  { %v2971_v61 = vpack.c.bf16 %v1563_v2, %v1562_v34 }
 0x7f6   :  { %2972 = vmatpush3.bf16.msra.mxu0 %v2971_v61 }
 0x7f7   :  { %2997 = vmatprep.subr.bf16.mxu0 %v3259_v18 }
 0x7f9   :  { %2621 = vmatmul.mubr.f32.vlgmr.msra.gmra.mrb[64].mxu0 %v204_v0 }
 0x7fa   :  { %2690 = vmatprep.mubr.msk.f32.mxu0 %vm3260_vm0, %v3261_v20  ;;  %2999 = vmatpush3.bf16.msra.mxu0 %v2998_v3  ;;  %v279_v20 = vld [vmem:[#allocation14 + $0x30] sm:$0xff] }
 0x7fb   :  { %3000 = vmatprep.subr.bf16.mxu0 %v3259_v18  ;;  %v3007_v35 = vpack.c.bf16 %v280_v33, %v279_v20 }
 0x7fe   :  { %3002 = vmatpush3.bf16.msra.mxu0 %v3001_v21 }
 0x7ff   :  { %3003 = vmatprep.subr.bf16.mxu0 %v3259_v18 }
 0x802   :  { %3005 = vmatpush3.bf16.msra.mxu0 %v3004_v29 }
 0x803   :  { %3006 = vmatprep.subr.bf16.mxu0 %v3259_v18 }
 0x806   :  { %3008 = vmatpush3.bf16.msra.mxu0 %v3007_v35 }
 0x807   :  { %3009 = vmatprep.subr.bf16.mxu0 %v3259_v18 }
 0x80a   :  { %3011 = vmatpush3.bf16.msra.mxu0 %v3010_v55 }
 0x80b   :  { %3012 = vmatprep.subr.bf16.mxu0 %v3259_v18 }
 0x80e   :  { %3014 = vmatpush3.bf16.msra.mxu0 %v3013_v44 }
 0x80f   :  { %3015 = vmatprep.subr.bf16.mxu0 %v3259_v18 }
 0x812   :  { %3017 = vmatpush3.bf16.msra.mxu0 %v3016_v9 }
 0x813   :  { %3018 = vmatprep.subr.bf16.mxu0 %v3259_v18  ;;  %v1832_v18 = vld [vmem:[%s3898_s12] ss:$0 sm:$0xff]  ;;  %s1815_s12 = sshll.u32 %s3262_s10, 4  ;;  %s1816_s12 = int_to_ptr.vmem [resolvable:$true] %s1815_s12 }
 0x814   :  { %s3215_s0 = scalar_lea.vmem %s1816_s12, 128  ;;  %p3220_p9 = scmp.lt.s32.totalorder %s1816_s12, %s1816_s12 }
 0x815   :  { %p3216_p8 = scmp.ne.s32.totalorder %s1816_s12, %s3215_s0  ;;  %p3221_p10 = scmp.lt.s32.totalorder %s3215_s0, %s3215_s0 }
 0x816   :  { %3020 = vmatpush3.bf16.msra.mxu0 %v3019_v23 }
 0x817   :  { %p3222_p11 = por %p3221_p10, %p3220_p9 }
 0x819   :  { %p3223_p12 = pnand %p3222_p11, %p3216_p8 }
 0x8cc   :  { %v1630_v56 = vpop.f32.mrb[64].mxu0 }
 0x8cd   :  { %v1634_v11 = vmax.f32 %v1630_v56, 0.0  ;;  %v2622_v58 = vpop.f32.mrb[65].mxu0 }
 0x8cf   :  { %2656 = vmatmul.mubr.f32.vlgmr.msra.gmra.mrb[64].mxu1 %v1634_v11 }
 0x9a2   :  { %v1707_v40 = vpop.f32.mrb[64].mxu1 }
 0x9a3   :  { %v1708_v39 = vadd.f32 %v1831_v46, %v1707_v40  ;;  %v2657_v48 = vpop.f32.mrb[65].mxu1 }
 0x9a5   :  { %v1711_v43 = vmax.f32 %v1708_v39, 0.0 }
 0x9a7   :  { %2691 = vmatmul.mubr.f32.vlgmr.msra.gmra.mrb[66].mxu0 %v1711_v43 }
 0xa7a   :  { %v1784_v5 = vpop.f32.mrb[66].mxu0 }
 0xa7b   :  { %v1785_v28 = vadd.f32 %v1832_v18, %v1784_v5  ;;  %v2692_v54 = vpop.f32.mrb[67].mxu0 }
 0xa7d   :  { %v1794_v37 = vsel %vm1792_vm1, %v1785_v28, -1e+30 }
 0xa7e   :  { %1795 = vmax.xlane.f32.xlu0 %v1794_v37 }
 0xb0b   :  { %v1796_v10 = vpop.xlane.xlu0 %1795 }
 0xb0c   :  { %v1797_v57 = vsub.f32 %v1794_v37, %v1796_v10 }
 0xb0e   :  { %v1798_v12 = vmul.f32 1.442695, %v1797_v57 }
 0xb10   :  { %3035 = vpow2.f32 %v1798_v12 }
 0xb1a   :  { %v3036_v41 = vpop.eup %3035 }
 0xb1b   :  { %v1800_v45 = vsel %vm1792_vm1, %v3036_v41, 0.0 }
 0xb1c   :  { %1801 = vadd.xlane.f32.xlu0 %v1800_v45 }
 0xba9   :  { %v1802_v25 = vpop.xlane.xlu0 %1801 }
 0xbaa   :  { %3037 = vlog2.f32 %v1802_v25 }
 0xbb4   :  { %v3038_v60 = vpop.eup %3037 }
 0xbb5   :  { %v1804_v49 = vmul.f32 0.6931472, %v3038_v60 }
 0xbb7   :  { %v1806_v50 = vsub.f32 %v1797_v57, %v1804_v49 }
 0xbb9   :  { %v1807_v53 = vsel %vm1805_vm3, %v1806_v50, 0.0 }
 0xbba   :  { %1808 = vst [vmem:[#allocation16] sm:$0xff] %v1807_v53 }
 0xbbb   :  { %3226 = shalt.err (!%p3223_p12)
}
 0xbbc   :  { %s3227_s23 = scalar_lea.hbm %s3899_s13, 128 }
 0xbbd   :  { %p3228_p13 = scmp.ne.s32.totalorder %s3899_s13, %s3227_s23  ;;  %p3231_p0 = scmp.lt.u32.totalorder %s3227_s23, %s3899_s13 }
 0xbbf   :  { %p3233_p1 = pnand %p3231_p0, %p3228_p13 }
 0xbc1   :  { %3236 = shalt.err (!%p3233_p1)
}
 0xbc2   :  { %1818 = dma.vmem_to_hbm [thread:$0]  %s1816_s12, 128, %s3899_s13, [#allocation4]  }
 0xbc3   :  { %3247 = dma.done.wait [#allocation4], 128  }
 0xbc4   :  { %3248 = vsyncadd [#allocation4], 4294967168 }
 0xbc5   :  { %1822 = vsyncpa [#allocation3], 1 }
 0xbc6   :  { %1823 = vsyncpa [#allocation6], 1 }
 0xbc7   :  { %1824 = vsyncpa [#allocation9], 1 }
 0xbc8   :  { %1825 = vsyncpa [#allocation12], 1 }
 0xbc9   :  { %1826 = vsyncpa [#allocation15], 1 }
 0xbca   :  { %1827 = vsyncpa [#allocation4], 1 }

// kernel: tpu_custom_call.1
= control target key start
LH: loop header
LB: loop body
LE: loop exit
PB: predicated region body
PF: predicated region fallthrough
CT: control target
= control target key end

     0   :  { %18 = vsyncpa [#allocation3], 0  ;;  %s3886_s0 = inlined_call_operand.hbm [shape: f32[1,128,128], index: 0, kind: input, shape index: {}]   ;;  %s3887_s1 = inlined_call_operand.hbm [shape: s8[1,128,128], index: 1, kind: input, shape index: {}]   ;;  %s3888_s2 = inlined_call_operand.hbm [shape: f32[1,8,128], index: 2, kind: input, shape index: {}]   ;;  %s3889_s3 = inlined_call_operand.hbm [shape: f32[128,128], index: 3, kind: input, shape index: {}]   ;;  %s3890_s4 = inlined_call_operand.vmem [shape: f32[1,128], index: 4, kind: input, shape index: {}]   ;;  %s3891_s5 = inlined_call_operand.hbm [shape: f32[128,128], index: 5, kind: input, shape index: {}]   ;;  %s3892_s6 = inlined_call_operand.vmem [shape: f32[1,128], index: 6, kind: input, shape index: {}]   ;;  %s3893_s7 = inlined_call_operand.hbm [shape: f32[128,128], index: 7, kind: input, shape index: {}]   ;;  %s3894_s8 = inlined_call_operand.vmem [shape: f32[1,128], index: 8, kind: input, shape index: {}]   ;;  %s3895_s9 = inlined_call_operand.hbm [shape: f32[128,128], index: 9, kind: input, shape index: {}]   ;;  %s3896_s10 = inlined_call_operand.vmem [shape: f32[1,128], index: 10, kind: input, shape index: {}]   ;;  %s3897_s11 = inlined_call_operand.hbm [shape: f32[128,128], index: 11, kind: input, shape index: {}]   ;;  %s3898_s12 = inlined_call_operand.vmem [shape: f32[1,128], index: 12, kind: input, shape index: {}]   ;;  %s3899_s13 = inlined_call_operand.hbm [shape: f32[1,8,128], index: 13, kind: output, shape index: {}]  }
   0x1   :  { %19 = vsyncpa [#allocation6], 0 }
   0x2   :  { %20 = vsyncpa [#allocation9], 0 }
   0x3   :  { %21 = vsyncpa [#allocation12], 0 }
   0x4   :  { %22 = vsyncpa [#allocation15], 0 }
   0x5   :  { %23 = vsyncpa [#allocation4], 0  ;;  %s3249_s25 = smov [#allocation5]   ;;  %s3250_s27 = smov [#allocation8]  }
   0x6   :  { %s41_s26 = sshll.u32 %s3249_s25, 4  ;;  %s63_s28 = sshll.u32 %s3250_s27, 4  ;;  %s42_s26 = int_to_ptr.vmem [resolvable:$true] %s41_s26  ;;  %s3333_s28 = int_to_ptr.vmem [resolvable:$true] %s63_s28 }
   0x7   :  { %s3039_s14 = scalar_lea.hbm %s3887_s1, 512 }
   0x8   :  { %p3040_p0 = scmp.ne.s32.totalorder %s3887_s1, %s3039_s14  ;;  %p3043_p1 = scmp.lt.u32.totalorder %s3039_s14, %s3887_s1 }
   0xa   :  { %p3045_p2 = pnand %p3043_p1, %p3040_p0 }
   0xc   :  { %3048 = shalt.err (!%p3045_p2)
}
   0xd   :  { %s3049_s19 = scalar_lea.vmem %s42_s26, 512  ;;  %p3054_p4 = scmp.lt.s32.totalorder %s42_s26, %s42_s26 }
   0xe   :  { %p3050_p3 = scmp.ne.s32.totalorder %s42_s26, %s3049_s19  ;;  %p3055_p5 = scmp.lt.s32.totalorder %s3049_s19, %s3049_s19 }
  0x10   :  { %p3056_p6 = por %p3055_p5, %p3054_p4 }
  0x12   :  { %p3057_p7 = pnand %p3056_p6, %p3050_p3 }
  0x14   :  { %3060 = shalt.err (!%p3057_p7)
}
  0x15   :  { %s3251_s20 = smov 128   ;;  %s3252_s21 = smov 8  }
  0x16   :  { %47 = dma.hbm_to_vmem [thread:$0]  %s3887_s1, 512, %s42_s26, [#allocation6], %s3251_s20, %s3251_s20, %s3252_s21  }
  0x17   :  { %s3061_s27 = scalar_lea.hbm %s3889_s3, 2048 }
  0x18   :  { %p3062_p8 = scmp.ne.s32.totalorder %s3889_s3, %s3061_s27  ;;  %p3065_p9 = scmp.lt.u32.totalorder %s3061_s27, %s3889_s3 }
  0x1a   :  { %p3067_p10 = pnand %p3065_p9, %p3062_p8 }
  0x1c   :  { %3070 = shalt.err (!%p3067_p10)
}
  0x1d   :  { %s3071_s16 = scalar_lea.vmem %s3333_s28, 2048  ;;  %p3076_p12 = scmp.lt.s32.totalorder %s3333_s28, %s3333_s28 }
  0x1e   :  { %p3072_p11 = scmp.ne.s32.totalorder %s3333_s28, %s3071_s16  ;;  %p3077_p13 = scmp.lt.s32.totalorder %s3071_s16, %s3071_s16 }
  0x20   :  { %p3078_p0 = por %p3077_p13, %p3076_p12 }
  0x22   :  { %p3079_p1 = pnand %p3078_p0, %p3072_p11 }
  0x24   :  { %3082 = shalt.err (!%p3079_p1)
}
  0x25   :  { %69 = dma.hbm_to_vmem [thread:$0]  %s3889_s3, 2048, %s3333_s28, [#allocation9], %s3251_s20, %s3251_s20, %s3252_s21  }
  0x26   :  { %s3253_s17 = smov [#allocation11]   ;;  %s3254_s19 = smov [#allocation2]  }
  0x27   :  { %s91_s18 = sshll.u32 %s3253_s17, 4  ;;  %s29_s22 = sshll.u32 %s3254_s19, 4  ;;  %s92_s18 = int_to_ptr.vmem [resolvable:$true] %s91_s18  ;;  %s3370_s22 = int_to_ptr.vmem [resolvable:$true] %s29_s22 }
  0x28   :  { %s3083_s25 = scalar_lea.hbm %s3893_s7, 2048 }
  0x29   :  { %p3084_p2 = scmp.ne.s32.totalorder %s3893_s7, %s3083_s25  ;;  %p3087_p3 = scmp.lt.u32.totalorder %s3083_s25, %s3893_s7 }
  0x2b   :  { %p3089_p4 = pnand %p3087_p3, %p3084_p2 }
  0x2d   :  { %3092 = shalt.err (!%p3089_p4)
}
  0x2e   :  { %s3093_s3 = scalar_lea.vmem %s92_s18, 2048  ;;  %p3098_p6 = scmp.lt.s32.totalorder %s92_s18, %s92_s18 }
  0x2f   :  { %p3094_p5 = scmp.ne.s32.totalorder %s92_s18, %s3093_s3  ;;  %p3099_p7 = scmp.lt.s32.totalorder %s3093_s3, %s3093_s3 }
  0x31   :  { %p3100_p8 = por %p3099_p7, %p3098_p6 }
  0x33   :  { %p3101_p9 = pnand %p3100_p8, %p3094_p5 }
  0x35   :  { %3104 = shalt.err (!%p3101_p9)
}
  0x36   :  { %97 = dma.hbm_to_vmem [thread:$0]  %s3893_s7, 2048, %s92_s18, [#allocation12], %s3251_s20, %s3251_s20, %s3252_s21  }
  0x37   :  { %s3105_s26 = scalar_lea.hbm %s3886_s0, 2048 }
  0x38   :  { %p3106_p10 = scmp.ne.s32.totalorder %s3886_s0, %s3105_s26  ;;  %p3109_p11 = scmp.lt.u32.totalorder %s3105_s26, %s3886_s0 }
  0x3a   :  { %p3111_p12 = pnand %p3109_p11, %p3106_p10 }
  0x3c   :  { %3114 = shalt.err (!%p3111_p12)
}
  0x3d   :  { %s3115_s25 = scalar_lea.vmem %s3370_s22, 2048  ;;  %p3120_p0 = scmp.lt.s32.totalorder %s3370_s22, %s3370_s22 }
  0x3e   :  { %p3116_p13 = scmp.ne.s32.totalorder %s3370_s22, %s3115_s25  ;;  %p3121_p1 = scmp.lt.s32.totalorder %s3115_s25, %s3115_s25 }
  0x40   :  { %p3122_p2 = por %p3121_p1, %p3120_p0 }
  0x42   :  { %p3123_p3 = pnand %p3122_p2, %p3116_p13 }
  0x44   :  { %3126 = shalt.err (!%p3123_p3)
}
  0x45   :  { %35 = dma.hbm_to_vmem [thread:$0]  %s3886_s0, 2048, %s3370_s22, [#allocation3], %s3251_s20, %s3251_s20, %s3252_s21  }
  0x46   :  { %s3255_s27 = smov [#allocation7]   ;;  %s3256_s30 = smov [#allocation10]  }
  0x47   :  { %s54_s29 = sshll.u32 %s3255_s27, 4  ;;  %s77_s14 = sshll.u32 %s3256_s30, 4  ;;  %s55_s29 = int_to_ptr.vmem [resolvable:$true] %s54_s29  ;;  %s3407_s14 = int_to_ptr.vmem [resolvable:$true] %s77_s14 }
  0x48   :  { %s3127_s15 = scalar_lea.hbm %s3888_s2, 128 }
  0x49   :  { %p3128_p4 = scmp.ne.s32.totalorder %s3888_s2, %s3127_s15  ;;  %p3131_p5 = scmp.lt.u32.totalorder %s3127_s15, %s3888_s2 }
  0x4b   :  { %p3133_p6 = pnand %p3131_p5, %p3128_p4 }
  0x4d   :  { %3136 = shalt.err (!%p3133_p6)
}
  0x4e   :  { %s3137_s0 = scalar_lea.vmem %s55_s29, 128  ;;  %p3142_p8 = scmp.lt.s32.totalorder %s55_s29, %s55_s29 }
  0x4f   :  { %p3138_p7 = scmp.ne.s32.totalorder %s55_s29, %s3137_s0  ;;  %p3143_p9 = scmp.lt.s32.totalorder %s3137_s0, %s3137_s0 }
  0x51   :  { %p3144_p10 = por %p3143_p9, %p3142_p8 }
  0x53   :  { %p3145_p11 = pnand %p3144_p10, %p3138_p7 }
  0x55   :  { %3148 = shalt.err (!%p3145_p11)
}
  0x56   :  { %57 = dma.hbm_to_vmem [thread:$0]  %s3888_s2, 128, %s55_s29, [#allocation6]  }
  0x57   :  { %s3149_s25 = scalar_lea.hbm %s3891_s5, 2048 }
  0x58   :  { %p3150_p12 = scmp.ne.s32.totalorder %s3891_s5, %s3149_s25  ;;  %p3153_p13 = scmp.lt.u32.totalorder %s3149_s25, %s3891_s5 }
  0x5a   :  { %p3155_p0 = pnand %p3153_p13, %p3150_p12 }
  0x5c   :  { %3158 = shalt.err (!%p3155_p0)
}
  0x5d   :  { %s3159_s3 = scalar_lea.vmem %s3407_s14, 2048  ;;  %p3164_p2 = scmp.lt.s32.totalorder %s3407_s14, %s3407_s14 }
  0x5e   :  { %p3160_p1 = scmp.ne.s32.totalorder %s3407_s14, %s3159_s3  ;;  %p3165_p3 = scmp.lt.s32.totalorder %s3159_s3, %s3159_s3 }
  0x60   :  { %p3166_p4 = por %p3165_p3, %p3164_p2 }
  0x62   :  { %p3167_p5 = pnand %p3166_p4, %p3160_p1 }
  0x64   :  { %3170 = shalt.err (!%p3167_p5)
}
  0x65   :  { %83 = dma.hbm_to_vmem [thread:$0]  %s3891_s5, 2048, %s3407_s14, [#allocation9], %s3251_s20, %s3251_s20, %s3252_s21  }
  0x66   :  { %s3257_s28 = smov [#allocation13]   ;;  %s3258_s16 = smov [#allocation14]  }
  0x67   :  { %s105_s15 = sshll.u32 %s3257_s28, 4  ;;  %s119_s1 = sshll.u32 %s3258_s16, 4  ;;  %s106_s15 = int_to_ptr.vmem [resolvable:$true] %s105_s15  ;;  %s3441_s1 = int_to_ptr.vmem [resolvable:$true] %s119_s1 }
  0x68   :  { %s3171_s0 = scalar_lea.hbm %s3895_s9, 2048 }
  0x69   :  { %p3172_p6 = scmp.ne.s32.totalorder %s3895_s9, %s3171_s0  ;;  %p3175_p7 = scmp.lt.u32.totalorder %s3171_s0, %s3895_s9 }
  0x6b   :  { %p3177_p8 = pnand %p3175_p7, %p3172_p6 }
  0x6d   :  { %3180 = shalt.err (!%p3177_p8)
}
  0x6e   :  { %s3181_s5 = scalar_lea.vmem %s106_s15, 2048  ;;  %p3186_p10 = scmp.lt.s32.totalorder %s106_s15, %s106_s15 }
  0x6f   :  { %p3182_p9 = scmp.ne.s32.totalorder %s106_s15, %s3181_s5  ;;  %p3187_p11 = scmp.lt.s32.totalorder %s3181_s5, %s3181_s5 }
  0x71   :  { %p3188_p12 = por %p3187_p11, %p3186_p10 }
  0x73   :  { %p3189_p13 = pnand %p3188_p12, %p3182_p9 }
  0x75   :  { %3192 = shalt.err (!%p3189_p13)
}
  0x76   :  { %111 = dma.hbm_to_vmem [thread:$0]  %s3895_s9, 2048, %s106_s15, [#allocation12], %s3251_s20, %s3251_s20, %s3252_s21  }
  0x77   :  { %s3193_s27 = scalar_lea.hbm %s3897_s11, 2048 }
  0x78   :  { %p3194_p0 = scmp.ne.s32.totalorder %s3897_s11, %s3193_s27  ;;  %p3197_p1 = scmp.lt.u32.totalorder %s3193_s27, %s3897_s11 }
  0x7a   :  { %p3199_p2 = pnand %p3197_p1, %p3194_p0 }
  0x7c   :  { %3202 = shalt.err (!%p3199_p2)
}
  0x7d   :  { %s3203_s28 = scalar_lea.vmem %s3441_s1, 2048  ;;  %p3208_p4 = scmp.lt.s32.totalorder %s3441_s1, %s3441_s1 }
  0x7e   :  { %p3204_p3 = scmp.ne.s32.totalorder %s3441_s1, %s3203_s28  ;;  %p3209_p5 = scmp.lt.s32.totalorder %s3203_s28, %s3203_s28 }
  0x80   :  { %p3210_p6 = por %p3209_p5, %p3208_p4 }
  0x82   :  { %p3211_p7 = pnand %p3210_p6, %p3204_p3 }
  0x84   :  { %3214 = shalt.err (!%p3211_p7)
}
  0x85   :  { %125 = dma.hbm_to_vmem [thread:$0]  %s3897_s11, 2048, %s3441_s1, [#allocation15], %s3251_s20, %s3251_s20, %s3252_s21  }
  0x86   :  { %3237 = dma.done.wait [#allocation3], 2048  }
  0x87   :  { %3238 = vsyncadd [#allocation3], 4294965248 }
  0x88   :  { %3239 = dma.done.wait [#allocation6], 640  }
  0x89   :  { %3240 = vsyncadd [#allocation6], 4294966656 }
  0x8a   :  { %3241 = dma.done.wait [#allocation9], 4096  }
  0x8b   :  { %3242 = vsyncadd [#allocation9], 4294963200 }
  0x8c   :  { %3243 = dma.done.wait [#allocation12], 4096  }
  0x8d   :  { %3244 = vsyncadd [#allocation12], 4294963200 }
  0x8e   :  { %3245 = dma.done.wait [#allocation15], 2048  }
  0x8f   :  { %3246 = vsyncadd [#allocation15], 4294965248  ;;  %v205_v0 = vld [vmem:[#allocation8] sm:$0xff]  ;;  %v206_v1 = vld [vmem:[#allocation8 + $0x8] sm:$0xff]  ;;  %vm3260_vm0 = vmmov 0  }
  0x90   :  { %v207_v2 = vld [vmem:[#allocation8 + $0x10] sm:$0xff]  ;;  %v2693_v3 = vpack.c.bf16 %v206_v1, %v205_v0  ;;  %v208_v4 = vld [vmem:[#allocation8 + $0x18] sm:$0xff]  ;;  %v209_v6 = vld [vmem:[#allocation8 + $0x20] sm:$0xff] }
  0x91   :  { %v2697_v5 = vpack.c.bf16 %v208_v4, %v207_v2  ;;  %v210_v7 = vld [vmem:[#allocation8 + $0x28] sm:$0xff]  ;;  %v152_v9 = vld [vmem:[#allocation2] sm:$0xff]  ;;  %v211_v10 = vld [vmem:[#allocation8 + $0x30] sm:$0xff] }
  0x92   :  { %2694 = vmatprep.subr.bf16.mxu0 %v2693_v3  ;;  %v2701_v8 = vpack.c.bf16 %v210_v7, %v209_v6  ;;  %v212_v11 = vld [vmem:[#allocation8 + $0x38] sm:$0xff]  ;;  %2172 = vmatprep.mubr.f32.mxu0 %v152_v9  ;;  %v213_v13 = vld [vmem:[#allocation8 + $0x40] sm:$0xff]  ;;  %v214_v14 = vld [vmem:[#allocation8 + $0x48] sm:$0xff] }
  0x93   :  { %2696 = vmatpush3.bf16.msra.mxu0 %v2693_v3  ;;  %v2705_v12 = vpack.c.bf16 %v212_v11, %v211_v10  ;;  %v2709_v15 = vpack.c.bf16 %v214_v14, %v213_v13  ;;  %v215_v16 = vld [vmem:[#allocation8 + $0x50] sm:$0xff]  ;;  %v216_v17 = vld [vmem:[#allocation8 + $0x58] sm:$0xff]  ;;  %v217_v19 = vld [vmem:[#allocation8 + $0x60] sm:$0xff] }
  0x94   :  { %2698 = vmatprep.subr.bf16.mxu0 %v2697_v5  ;;  %v2713_v18 = vpack.c.bf16 %v216_v17, %v215_v16  ;;  %v218_v20 = vld [vmem:[#allocation8 + $0x68] sm:$0xff]  ;;  %v219_v22 = vld [vmem:[#allocation8 + $0x70] sm:$0xff]  ;;  %v220_v23 = vld [vmem:[#allocation8 + $0x78] sm:$0xff] }
  0x95   :  { %v2717_v21 = vpack.c.bf16 %v218_v20, %v217_v19  ;;  %v2721_v24 = vpack.c.bf16 %v220_v23, %v219_v22  ;;  %v153_v25 = vld [vmem:[#allocation2 + $0x8] sm:$0xff]  ;;  %v154_v26 = vld [vmem:[#allocation2 + $0x10] sm:$0xff]  ;;  %v155_v27 = vld [vmem:[#allocation2 + $0x18] sm:$0xff] }
  0x96   :  { %v156_v28 = vld [vmem:[#allocation2 + $0x20] sm:$0xff]  ;;  %v157_v29 = vld [vmem:[#allocation2 + $0x28] sm:$0xff]  ;;  %v158_v30 = vld [vmem:[#allocation2 + $0x30] sm:$0xff] }
  0x97   :  { %2700 = vmatpush3.bf16.msra.mxu0 %v2697_v5  ;;  %v159_v31 = vld [vmem:[#allocation2 + $0x38] sm:$0xff]  ;;  %v160_v32 = vld [vmem:[#allocation2 + $0x40] sm:$0xff]  ;;  %v161_v33 = vld [vmem:[#allocation2 + $0x48] sm:$0xff] }
  0x98   :  { %2702 = vmatprep.subr.bf16.mxu0 %v2701_v8  ;;  %v162_v34 = vld [vmem:[#allocation2 + $0x50] sm:$0xff]  ;;  %v163_v35 = vld [vmem:[#allocation2 + $0x58] sm:$0xff]  ;;  %v164_v36 = vld [vmem:[#allocation2 + $0x60] sm:$0xff] }
  0x99   :  { %v165_v37 = vld [vmem:[#allocation2 + $0x68] sm:$0xff]  ;;  %v166_v38 = vld [vmem:[#allocation2 + $0x70] sm:$0xff]  ;;  %v167_v39 = vld [vmem:[#allocation2 + $0x78] sm:$0xff] }
  0x9a   :  { %v3478_v40 = vld [vmem:[#allocation5] sm:$0xff]  ;;  %v222_v43 = vld [vmem:[#allocation10] sm:$0xff]  ;;  %v223_v44 = vld [vmem:[#allocation10 + $0x8] sm:$0xff] }
  0x9b   :  { %2704 = vmatpush3.bf16.msra.mxu0 %v2701_v8  ;;  %v172_v41 = vunpack.c.0.s8 %v3478_v40  ;;  %v224_v45 = vld [vmem:[#allocation10 + $0x10] sm:$0xff]  ;;  %v3484_v46 = vpack.c.bf16 %v223_v44, %v222_v43  ;;  %v225_v47 = vld [vmem:[#allocation10 + $0x18] sm:$0xff]  ;;  %v226_v49 = vld [vmem:[#allocation10 + $0x20] sm:$0xff] }
  0x9c   :  { %2706 = vmatprep.subr.bf16.mxu0 %v2705_v12  ;;  %v3486_v48 = vpack.c.bf16 %v225_v47, %v224_v45  ;;  %v227_v50 = vld [vmem:[#allocation10 + $0x28] sm:$0xff]  ;;  %v228_v52 = vld [vmem:[#allocation10 + $0x30] sm:$0xff]  ;;  %v229_v53 = vld [vmem:[#allocation10 + $0x38] sm:$0xff] }
  0x9d   :  { %v3481_v42 = vcvt.s32.f32 %v172_v41  ;;  %v3491_v51 = vpack.c.bf16 %v227_v50, %v226_v49  ;;  %v3495_v54 = vpack.c.bf16 %v229_v53, %v228_v52  ;;  %v230_v55 = vld [vmem:[#allocation10 + $0x40] sm:$0xff]  ;;  %v231_v56 = vld [vmem:[#allocation10 + $0x48] sm:$0xff]  ;;  %v232_v58 = vld [vmem:[#allocation10 + $0x50] sm:$0xff] }
  0x9e   :  { %v3499_v57 = vpack.c.bf16 %v231_v56, %v230_v55  ;;  %v233_v59 = vld [vmem:[#allocation10 + $0x58] sm:$0xff]  ;;  %v234_v61 = vld [vmem:[#allocation10 + $0x60] sm:$0xff]  ;;  %v235_v62 = vld [vmem:[#allocation10 + $0x68] sm:$0xff] }
  0x9f   :  { %2708 = vmatpush3.bf16.msra.mxu0 %v2705_v12  ;;  %2228 = vmatprep.mubr.f32.mxu1 %v3481_v42  ;;  %v3503_v60 = vpack.c.bf16 %v233_v59, %v232_v58  ;;  %v3507_v63 = vpack.c.bf16 %v235_v62, %v234_v61  ;;  %v236_v0 = vld [vmem:[#allocation10 + $0x70] sm:$0xff]  ;;  %v237_v1 = vld [vmem:[#allocation10 + $0x78] sm:$0xff] }
  0xa0   :  { %2710 = vmatprep.subr.bf16.mxu0 %v2709_v15  ;;  %v3511_v2 = vpack.c.bf16 %v237_v1, %v236_v0  ;;  %v3520_v3 = vld [vmem:[%s3890_s4] ss:$0 sm:$0xff] }
  0xa3   :  { %2712 = vmatpush3.bf16.msra.mxu0 %v2709_v15 }
  0xa4   :  { %2714 = vmatprep.subr.bf16.mxu0 %v2713_v18 }
  0xa7   :  { %2716 = vmatpush3.bf16.msra.mxu0 %v2713_v18 }
  0xa8   :  { %2718 = vmatprep.subr.bf16.mxu0 %v2717_v21 }
  0xab   :  { %2720 = vmatpush3.bf16.msra.mxu0 %v2717_v21 }
  0xac   :  { %2722 = vmatprep.subr.bf16.mxu0 %v2721_v24 }
  0xaf   :  { %2724 = vmatpush3.bf16.msra.mxu0 %v2721_v24 }
  0xb0   :  { %2758 = vmatprep.subr.bf16.mxu0 %v3484_v46 }
  0xb2   :  { %2173 = vmatmul.mubr.f32.vlgmr.msra.gmra.mrb[0].mxu0 %v153_v25 }
  0xb3   :  { %2175 = vmatprep.mubr.f32.mxu0 %v154_v26  ;;  %2760 = vmatpush3.bf16.msra.mxu0 %v3484_v46 }
  0xb4   :  { %2762 = vmatprep.subr.bf16.mxu0 %v3486_v48 }
  0xb6   :  { %2176 = vmatmul.mubr.f32.gmra.mrb[2].mxu0 %v155_v27 }
  0xb7   :  { %2178 = vmatprep.mubr.f32.mxu0 %v156_v28  ;;  %2764 = vmatpush3.bf16.msra.mxu0 %v3486_v48 }
  0xb8   :  { %2766 = vmatprep.subr.bf16.mxu0 %v3491_v51 }
  0xba   :  { %2179 = vmatmul.mubr.f32.gmra.mrb[4].mxu0 %v157_v29 }
  0xbb   :  { %2181 = vmatprep.mubr.f32.mxu0 %v158_v30  ;;  %2768 = vmatpush3.bf16.msra.mxu0 %v3491_v51 }
  0xbc   :  { %2770 = vmatprep.subr.bf16.mxu0 %v3495_v54 }
  0xbe   :  { %2182 = vmatmul.mubr.f32.gmra.mrb[6].mxu0 %v159_v31 }
  0xbf   :  { %2184 = vmatprep.mubr.f32.mxu0 %v160_v32  ;;  %2772 = vmatpush3.bf16.msra.mxu0 %v3495_v54 }
  0xc0   :  { %2774 = vmatprep.subr.bf16.mxu0 %v3499_v57 }
  0xc2   :  { %2185 = vmatmul.mubr.f32.gmra.mrb[8].mxu0 %v161_v33 }
  0xc3   :  { %2187 = vmatprep.mubr.f32.mxu0 %v162_v34  ;;  %2776 = vmatpush3.bf16.msra.mxu0 %v3499_v57 }
  0xc4   :  { %2778 = vmatprep.subr.bf16.mxu0 %v3503_v60 }
  0xc6   :  { %2188 = vmatmul.mubr.f32.gmra.mrb[10].mxu0 %v163_v35 }
  0xc7   :  { %2190 = vmatprep.mubr.f32.mxu0 %v164_v36  ;;  %2780 = vmatpush3.bf16.msra.mxu0 %v3503_v60 }
  0xc8   :  { %2782 = vmatprep.subr.bf16.mxu0 %v3507_v63 }
  0xca   :  { %2191 = vmatmul.mubr.f32.gmra.mrb[12].mxu0 %v165_v37 }
  0xcb   :  { %2193 = vmatprep.mubr.f32.mxu0 %v166_v38  ;;  %2784 = vmatpush3.bf16.msra.mxu0 %v3507_v63 }
  0xcc   :  { %2786 = vmatprep.subr.bf16.mxu0 %v3511_v2 }
  0xce   :  { %2194 = vmatmul.mubr.f32.gmra.mrb[14].mxu0 %v167_v39 }
  0xcf   :  { %2788 = vmatpush3.bf16.msra.mxu0 %v3511_v2 }
  0xd0   :  { %2822 = vmatprep.subr.bf16.mxu0 %v3484_v46 }
 0x185   :  { %v2174_v4 = vpop.f32.mrb[0].mxu0 }
 0x186   :  { %v3523_v5 = vadd.f32 %v2174_v4, %v3520_v3  ;;  %v362_v6 = vpop.f32.mrb[1].mxu0 }
 0x187   :  { %v3526_v7 = vadd.f32 %v3520_v3, %v362_v6 }
 0x188   :  { %v442_v8 = vmax.f32 %v3523_v5, 0.0 }
 0x189   :  { %v441_v9 = vmax.f32 %v3526_v7, 0.0  ;;  %v2177_v10 = vpop.f32.mrb[2].mxu0 }
 0x18a   :  { %v3531_v11 = vadd.f32 %v2177_v10, %v3520_v3  ;;  %v372_v12 = vpop.f32.mrb[3].mxu0 }
 0x18b   :  { %v3534_v13 = vadd.f32 %v3520_v3, %v372_v12  ;;  %v2725_v14 = vpack.c.bf16 %v442_v8, %v441_v9  ;;  %v173_v8 = vunpack.c.1.s8 %v3478_v40  ;;  %v174_v9 = vunpack.c.2.s8 %v3478_v40  ;;  %v169_v12 = vld [vmem:[#allocation5 + $0x8] sm:$0xff] }
 0x18c   :  { %v444_v15 = vmax.f32 %v3531_v11, 0.0 }
 0x18d   :  { %v443_v16 = vmax.f32 %v3534_v13, 0.0  ;;  %v2180_v17 = vpop.f32.mrb[4].mxu0  ;;  %2726 = vmatprep.subr.bf16.mxu1 %v2725_v14 }
 0x18e   :  { %v3539_v18 = vadd.f32 %v2180_v17, %v3520_v3  ;;  %v382_v19 = vpop.f32.mrb[5].mxu0  ;;  %2728 = vmatpush3.bf16.msra.mxu1 %v2725_v14  ;;  %v3588_v14 = vcvt.s32.f32 %v173_v8 }
 0x18f   :  { %v3542_v20 = vadd.f32 %v3520_v3, %v382_v19  ;;  %v2729_v21 = vpack.c.bf16 %v444_v15, %v443_v16  ;;  %v175_v15 = vunpack.c.3.s8 %v3478_v40  ;;  %v176_v16 = vunpack.c.0.s8 %v169_v12 }
 0x190   :  { %v446_v22 = vmax.f32 %v3539_v18, 0.0  ;;  %v177_v19 = vunpack.c.1.s8 %v169_v12  ;;  %v179_v40 = vunpack.c.3.s8 %v169_v12 }
 0x191   :  { %v445_v23 = vmax.f32 %v3542_v20, 0.0  ;;  %v2183_v24 = vpop.f32.mrb[6].mxu0  ;;  %2730 = vmatprep.subr.bf16.mxu1 %v2729_v21  ;;  %v3594_v17 = vcvt.s32.f32 %v175_v15 }
 0x192   :  { %v3547_v25 = vadd.f32 %v2183_v24, %v3520_v3  ;;  %v392_v26 = vpop.f32.mrb[7].mxu0  ;;  %2732 = vmatpush3.bf16.msra.mxu1 %v2729_v21  ;;  %v3597_v21 = vcvt.s32.f32 %v176_v16  ;;  %v3600_v24 = vcvt.s32.f32 %v177_v19 }
 0x193   :  { %v3550_v27 = vadd.f32 %v3520_v3, %v392_v26  ;;  %v2733_v28 = vpack.c.bf16 %v446_v22, %v445_v23  ;;  %v178_v22 = vunpack.c.2.s8 %v169_v12  ;;  %v170_v23 = vld [vmem:[#allocation5 + $0x10] sm:$0xff] }
 0x194   :  { %v448_v29 = vmax.f32 %v3547_v25, 0.0 }
 0x195   :  { %v447_v30 = vmax.f32 %v3550_v27, 0.0  ;;  %v2186_v31 = vpop.f32.mrb[8].mxu0  ;;  %2734 = vmatprep.subr.bf16.mxu1 %v2733_v28  ;;  %v3603_v26 = vcvt.s32.f32 %v178_v22 }
 0x196   :  { %v3555_v32 = vadd.f32 %v2186_v31, %v3520_v3  ;;  %v402_v33 = vpop.f32.mrb[9].mxu0  ;;  %2736 = vmatpush3.bf16.msra.mxu1 %v2733_v28  ;;  %v180_v28 = vunpack.c.0.s8 %v170_v23 }
 0x197   :  { %v3558_v34 = vadd.f32 %v3520_v3, %v402_v33  ;;  %v2737_v35 = vpack.c.bf16 %v448_v29, %v447_v30  ;;  %v3606_v29 = vcvt.s32.f32 %v179_v40  ;;  %v181_v30 = vunpack.c.1.s8 %v170_v23 }
 0x198   :  { %v450_v36 = vmax.f32 %v3555_v32, 0.0  ;;  %v3609_v31 = vcvt.s32.f32 %v180_v28  ;;  %v182_v33 = vunpack.c.2.s8 %v170_v23 }
 0x199   :  { %v449_v37 = vmax.f32 %v3558_v34, 0.0  ;;  %v2189_v38 = vpop.f32.mrb[10].mxu0  ;;  %2738 = vmatprep.subr.bf16.mxu1 %v2737_v35 }
 0x19a   :  { %v3563_v39 = vadd.f32 %v2189_v38, %v3520_v3  ;;  %v412_v41 = vpop.f32.mrb[11].mxu0  ;;  %2740 = vmatpush3.bf16.msra.mxu1 %v2737_v35  ;;  %v171_v35 = vld [vmem:[#allocation5 + $0x18] sm:$0xff]  ;;  %v3615_v38 = vcvt.s32.f32 %v182_v33 }
 0x19b   :  { %v3566_v43 = vadd.f32 %v3520_v3, %v412_v41  ;;  %v2741_v44 = vpack.c.bf16 %v450_v36, %v449_v37  ;;  %v3612_v36 = vcvt.s32.f32 %v181_v30  ;;  %v183_v37 = vunpack.c.3.s8 %v170_v23  ;;  %v3654_v30 = vld [vmem:[%s3892_s6] ss:$0 sm:$0xff] }
 0x19c   :  { %v452_v45 = vmax.f32 %v3563_v39, 0.0  ;;  %v184_v41 = vunpack.c.0.s8 %v171_v35  ;;  %v3658_v33 = vadd.f32 %v3654_v30, %v3523_v5 }
 0x19d   :  { %v451_v47 = vmax.f32 %v3566_v43, 0.0  ;;  %v2192_v49 = vpop.f32.mrb[12].mxu0  ;;  %2742 = vmatprep.subr.bf16.mxu1 %v2741_v44 }
 0x19e   :  { %v3571_v50 = vadd.f32 %v2192_v49, %v3520_v3  ;;  %v422_v52 = vpop.f32.mrb[13].mxu0  ;;  %2744 = vmatpush3.bf16.msra.mxu1 %v2741_v44  ;;  %v3618_v44 = vcvt.s32.f32 %v183_v37  ;;  %v186_v49 = vunpack.c.2.s8 %v171_v35 }
 0x19f   :  { %v3574_v53 = vadd.f32 %v3520_v3, %v422_v52  ;;  %v2745_v55 = vpack.c.bf16 %v452_v45, %v451_v47  ;;  %v185_v45 = vunpack.c.1.s8 %v171_v35  ;;  %v3621_v47 = vcvt.s32.f32 %v184_v41 }
 0x1a0   :  { %v454_v56 = vmax.f32 %v3571_v50, 0.0 }
 0x1a1   :  { %v453_v58 = vmax.f32 %v3574_v53, 0.0  ;;  %v2195_v59 = vpop.f32.mrb[14].mxu0  ;;  %2746 = vmatprep.subr.bf16.mxu1 %v2745_v55  ;;  %v3624_v52 = vcvt.s32.f32 %v185_v45 }
 0x1a2   :  { %v3579_v61 = vadd.f32 %v2195_v59, %v3520_v3  ;;  %v432_v62 = vpop.f32.mrb[15].mxu0  ;;  %2748 = vmatpush3.bf16.msra.mxu1 %v2745_v55  ;;  %v187_v55 = vunpack.c.3.s8 %v171_v35  ;;  %v3662_v35 = vadd.f32 %v3654_v30, %v3526_v7 }
 0x1a3   :  { %v3582_v0 = vadd.f32 %v3520_v3, %v432_v62  ;;  %v2749_v1 = vpack.c.bf16 %v454_v56, %v453_v58  ;;  %v3591_v3 = vcvt.s32.f32 %v174_v9  ;;  %v3627_v56 = vcvt.s32.f32 %v186_v49 }
 0x1a4   :  { %v456_v4 = vmax.f32 %v3579_v61, 0.0  ;;  %v3630_v58 = vcvt.s32.f32 %v187_v55  ;;  %v3668_v55 = vadd.f32 %v3654_v30, %v3531_v11  ;;  %v3682_v11 = vadd.f32 %v3654_v30, %v3542_v20 }
 0x1a5   :  { %v455_v6 = vmax.f32 %v3582_v0, 0.0  ;;  %2750 = vmatprep.subr.bf16.mxu1 %v2749_v1 }
 0x1a6   :  { %2752 = vmatpush3.bf16.msra.mxu1 %v2749_v1 }
 0x1a7   :  { %v2753_v10 = vpack.c.bf16 %v456_v4, %v455_v6 }
 0x1a9   :  { %2754 = vmatprep.subr.bf16.mxu1 %v2753_v10 }
 0x1aa   :  { %2756 = vmatpush3.bf16.msra.mxu1 %v2753_v10 }
 0x1ad   :  { %2229 = vmatmul.mubr.f32.vlgmr.msra.gmra.mrb[0].mxu1 %v3588_v14 }
 0x1ae   :  { %2231 = vmatprep.mubr.f32.mxu1 %v3591_v3 }
 0x1b1   :  { %2232 = vmatmul.mubr.f32.gmra.mrb[2].mxu1 %v3594_v17 }
 0x1b2   :  { %2234 = vmatprep.mubr.f32.mxu1 %v3597_v21 }
 0x1b5   :  { %2235 = vmatmul.mubr.f32.gmra.mrb[4].mxu1 %v3600_v24 }
 0x1b6   :  { %2237 = vmatprep.mubr.f32.mxu1 %v3603_v26 }
 0x1b9   :  { %2238 = vmatmul.mubr.f32.gmra.mrb[6].mxu1 %v3606_v29 }
 0x1ba   :  { %2240 = vmatprep.mubr.f32.mxu1 %v3609_v31 }
 0x1bd   :  { %2241 = vmatmul.mubr.f32.gmra.mrb[8].mxu1 %v3612_v36 }
 0x1be   :  { %2243 = vmatprep.mubr.f32.mxu1 %v3615_v38 }
 0x1c1   :  { %2244 = vmatmul.mubr.f32.gmra.mrb[10].mxu1 %v3618_v44 }
 0x1c2   :  { %2246 = vmatprep.mubr.f32.mxu1 %v3621_v47 }
 0x1c5   :  { %2247 = vmatmul.mubr.f32.gmra.mrb[12].mxu1 %v3624_v52 }
 0x1c6   :  { %2249 = vmatprep.mubr.f32.mxu1 %v3627_v56 }
 0x1c9   :  { %2250 = vmatmul.mubr.f32.gmra.mrb[14].mxu1 %v3630_v58 }
 0x1ca   :  { %2340 = vmatprep.mubr.f32.mxu1 %v3481_v42 }
 0x280   :  { %v2230_v59 = vpop.f32.mrb[0].mxu1 }
 0x281   :  { %v545_v62 = vpop.f32.mrb[1].mxu1 }
 0x282   :  { %2284 = vmatprep.mubr.f32.mxu0 %v545_v62  ;;  %v3672_v62 = vadd.f32 %v3654_v30, %v3534_v13 }
 0x283   :  { %2285 = vmatmul.mubr.f32.vlgmr.msra.gmra.mrb[16].mxu0 %v2230_v59 }
 0x284   :  { %v2233_v1 = vpop.f32.mrb[2].mxu1  ;;  %2824 = vmatpush3.bf16.msra.mxu0 %v3484_v46 }
 0x285   :  { %v555_v4 = vpop.f32.mrb[3].mxu1  ;;  %2826 = vmatprep.subr.bf16.mxu0 %v3486_v48 }
 0x286   :  { %2287 = vmatprep.mubr.f32.mxu0 %v555_v4 }
 0x287   :  { %2288 = vmatmul.mubr.f32.gmra.mrb[18].mxu0 %v2233_v1 }
 0x288   :  { %v2236_v6 = vpop.f32.mrb[4].mxu1  ;;  %2828 = vmatpush3.bf16.msra.mxu0 %v3486_v48 }
 0x289   :  { %v565_v8 = vpop.f32.mrb[5].mxu1  ;;  %2830 = vmatprep.subr.bf16.mxu0 %v3491_v51 }
 0x28a   :  { %2290 = vmatprep.mubr.f32.mxu0 %v565_v8 }
 0x28b   :  { %2291 = vmatmul.mubr.f32.gmra.mrb[20].mxu0 %v2236_v6 }
 0x28c   :  { %v2239_v9 = vpop.f32.mrb[6].mxu1  ;;  %2832 = vmatpush3.bf16.msra.mxu0 %v3491_v51 }
 0x28d   :  { %v575_v10 = vpop.f32.mrb[7].mxu1  ;;  %2834 = vmatprep.subr.bf16.mxu0 %v3495_v54 }
 0x28e   :  { %2293 = vmatprep.mubr.f32.mxu0 %v575_v10 }
 0x28f   :  { %2294 = vmatmul.mubr.f32.gmra.mrb[22].mxu0 %v2239_v9  ;;  %v3678_v9 = vadd.f32 %v3654_v30, %v3539_v18 }
 0x290   :  { %v2242_v12 = vpop.f32.mrb[8].mxu1  ;;  %2836 = vmatpush3.bf16.msra.mxu0 %v3495_v54 }
 0x291   :  { %v585_v15 = vpop.f32.mrb[9].mxu1  ;;  %2838 = vmatprep.subr.bf16.mxu0 %v3499_v57 }
 0x292   :  { %2296 = vmatprep.mubr.f32.mxu0 %v585_v15 }
 0x293   :  { %2297 = vmatmul.mubr.f32.gmra.mrb[24].mxu0 %v2242_v12 }
 0x294   :  { %v2245_v16 = vpop.f32.mrb[10].mxu1  ;;  %2840 = vmatpush3.bf16.msra.mxu0 %v3499_v57 }
 0x295   :  { %v595_v19 = vpop.f32.mrb[11].mxu1  ;;  %2842 = vmatprep.subr.bf16.mxu0 %v3503_v60 }
 0x296   :  { %2299 = vmatprep.mubr.f32.mxu0 %v595_v19 }
 0x297   :  { %2300 = vmatmul.mubr.f32.gmra.mrb[26].mxu0 %v2245_v16 }
 0x298   :  { %v2248_v22 = vpop.f32.mrb[12].mxu1  ;;  %2844 = vmatpush3.bf16.msra.mxu0 %v3503_v60 }
 0x299   :  { %v605_v23 = vpop.f32.mrb[13].mxu1  ;;  %2846 = vmatprep.subr.bf16.mxu0 %v3507_v63 }
 0x29a   :  { %2302 = vmatprep.mubr.f32.mxu0 %v605_v23  ;;  %v3688_v23 = vadd.f32 %v3654_v30, %v3547_v25 }
 0x29b   :  { %2303 = vmatmul.mubr.f32.gmra.mrb[28].mxu0 %v2248_v22 }
 0x29c   :  { %v2251_v40 = vpop.f32.mrb[14].mxu1  ;;  %2848 = vmatpush3.bf16.msra.mxu0 %v3507_v63 }
 0x29d   :  { %v615_v28 = vpop.f32.mrb[15].mxu1  ;;  %2850 = vmatprep.subr.bf16.mxu0 %v3511_v2 }
 0x29e   :  { %2305 = vmatprep.mubr.f32.mxu0 %v615_v28 }
 0x29f   :  { %2306 = vmatmul.mubr.f32.gmra.mrb[30].mxu0 %v2251_v40  ;;  %v3692_v40 = vadd.f32 %v3654_v30, %v3550_v27 }
 0x2a0   :  { %2852 = vmatpush3.bf16.msra.mxu0 %v3511_v2 }
 0x2a1   :  { %2886 = vmatprep.subr.bf16.mxu0 %v3484_v46 }
 0x356   :  { %v2286_v37 = vpop.f32.mrb[16].mxu0 }
 0x357   :  { %v696_v41 = vadd.f32 %v2286_v37, %v3658_v33  ;;  %v690_v45 = vpop.f32.mrb[17].mxu0 }
 0x358   :  { %v691_v49 = vadd.f32 %v690_v45, %v3662_v35 }
 0x359   :  { %v770_v59 = vmax.f32 %v696_v41, 0.0 }
 0x35a   :  { %v769_v5 = vmax.f32 %v691_v49, 0.0  ;;  %v2289_v1 = vpop.f32.mrb[18].mxu0 }
 0x35b   :  { %v706_v7 = vadd.f32 %v2289_v1, %v3668_v55  ;;  %v700_v4 = vpop.f32.mrb[19].mxu0 }
 0x35c   :  { %v2789_v6 = vpack.c.bf16 %v770_v59, %v769_v5  ;;  %v701_v8 = vadd.f32 %v700_v4, %v3672_v62  ;;  %v3698_v59 = vadd.f32 %v3654_v30, %v3555_v32  ;;  %v3702_v5 = vadd.f32 %v3654_v30, %v3558_v34 }
 0x35d   :  { %v772_v10 = vmax.f32 %v706_v7, 0.0 }
 0x35e   :  { %v771_v12 = vmax.f32 %v701_v8, 0.0  ;;  %v2292_v13 = vpop.f32.mrb[20].mxu0  ;;  %2790 = vmatprep.subr.bf16.mxu1 %v2789_v6 }
 0x35f   :  { %v716_v15 = vadd.f32 %v2292_v13, %v3678_v9  ;;  %v710_v16 = vpop.f32.mrb[21].mxu0  ;;  %2792 = vmatpush3.bf16.msra.mxu1 %v2789_v6 }
 0x360   :  { %v2793_v19 = vpack.c.bf16 %v772_v10, %v771_v12  ;;  %v711_v22 = vadd.f32 %v710_v16, %v3682_v11  ;;  %v3708_v10 = vadd.f32 %v3654_v30, %v3563_v39  ;;  %v3712_v12 = vadd.f32 %v3654_v30, %v3566_v43 }
 0x361   :  { %v774_v18 = vmax.f32 %v716_v15, 0.0 }
 0x362   :  { %v773_v20 = vmax.f32 %v711_v22, 0.0  ;;  %v2295_v28 = vpop.f32.mrb[22].mxu0  ;;  %2794 = vmatprep.subr.bf16.mxu1 %v2793_v19 }
 0x363   :  { %v726_v37 = vadd.f32 %v2295_v28, %v3688_v23  ;;  %v720_v41 = vpop.f32.mrb[23].mxu0  ;;  %2796 = vmatpush3.bf16.msra.mxu1 %v2793_v19 }
 0x364   :  { %v2797_v45 = vpack.c.bf16 %v774_v18, %v773_v20  ;;  %v721_v49 = vadd.f32 %v720_v41, %v3692_v40  ;;  %v3718_v18 = vadd.f32 %v3654_v30, %v3571_v50  ;;  %v3722_v20 = vadd.f32 %v3654_v30, %v3574_v53 }
 0x365   :  { %v776_v25 = vmax.f32 %v726_v37, 0.0 }
 0x366   :  { %v775_v27 = vmax.f32 %v721_v49, 0.0  ;;  %v2298_v1 = vpop.f32.mrb[24].mxu0  ;;  %2798 = vmatprep.subr.bf16.mxu1 %v2797_v45 }
 0x367   :  { %v736_v7 = vadd.f32 %v2298_v1, %v3698_v59  ;;  %v730_v4 = vpop.f32.mrb[25].mxu0  ;;  %2800 = vmatpush3.bf16.msra.mxu1 %v2797_v45 }
 0x368   :  { %v2801_v6 = vpack.c.bf16 %v776_v25, %v775_v27  ;;  %v731_v8 = vadd.f32 %v730_v4, %v3702_v5  ;;  %v3728_v25 = vadd.f32 %v3654_v30, %v3579_v61  ;;  %v3732_v27 = vadd.f32 %v3654_v30, %v3582_v0 }
 0x369   :  { %v778_v32 = vmax.f32 %v736_v7, 0.0 }
 0x36a   :  { %v777_v34 = vmax.f32 %v731_v8, 0.0  ;;  %v2301_v13 = vpop.f32.mrb[26].mxu0  ;;  %2802 = vmatprep.subr.bf16.mxu1 %v2801_v6 }
 0x36b   :  { %v746_v15 = vadd.f32 %v2301_v13, %v3708_v10  ;;  %v740_v16 = vpop.f32.mrb[27].mxu0  ;;  %2804 = vmatpush3.bf16.msra.mxu1 %v2801_v6 }
 0x36c   :  { %v2805_v19 = vpack.c.bf16 %v778_v32, %v777_v34  ;;  %v741_v22 = vadd.f32 %v740_v16, %v3712_v12 }
 0x36d   :  { %v780_v39 = vmax.f32 %v746_v15, 0.0 }
 0x36e   :  { %v779_v43 = vmax.f32 %v741_v22, 0.0  ;;  %v2304_v28 = vpop.f32.mrb[28].mxu0  ;;  %2806 = vmatprep.subr.bf16.mxu1 %v2805_v19 }
 0x36f   :  { %v756_v37 = vadd.f32 %v2304_v28, %v3718_v18  ;;  %v750_v41 = vpop.f32.mrb[29].mxu0  ;;  %2808 = vmatpush3.bf16.msra.mxu1 %v2805_v19 }
 0x370   :  { %v2809_v45 = vpack.c.bf16 %v780_v39, %v779_v43  ;;  %v751_v49 = vadd.f32 %v750_v41, %v3722_v20 }
 0x371   :  { %v782_v50 = vmax.f32 %v756_v37, 0.0 }
 0x372   :  { %v781_v53 = vmax.f32 %v751_v49, 0.0  ;;  %v2307_v1 = vpop.f32.mrb[30].mxu0  ;;  %2810 = vmatprep.subr.bf16.mxu1 %v2809_v45 }
 0x373   :  { %v766_v7 = vadd.f32 %v2307_v1, %v3728_v25  ;;  %v760_v4 = vpop.f32.mrb[31].mxu0  ;;  %2812 = vmatpush3.bf16.msra.mxu1 %v2809_v45 }
 0x374   :  { %v2813_v6 = vpack.c.bf16 %v782_v50, %v781_v53  ;;  %v761_v8 = vadd.f32 %v760_v4, %v3732_v27 }
 0x375   :  { %v784_v32 = vmax.f32 %v766_v7, 0.0 }
 0x376   :  { %v783_v34 = vmax.f32 %v761_v8, 0.0  ;;  %2814 = vmatprep.subr.bf16.mxu1 %v2813_v6 }
 0x377   :  { %2816 = vmatpush3.bf16.msra.mxu1 %v2813_v6 }
 0x378   :  { %v2817_v61 = vpack.c.bf16 %v784_v32, %v783_v34 }
 0x37a   :  { %2818 = vmatprep.subr.bf16.mxu1 %v2817_v61 }
 0x37b   :  { %2820 = vmatpush3.bf16.msra.mxu1 %v2817_v61 }
 0x37e   :  { %2341 = vmatmul.mubr.f32.vlgmr.msra.gmra.mrb[16].mxu1 %v3588_v14 }
 0x37f   :  { %2343 = vmatprep.mubr.f32.mxu1 %v3591_v3 }
 0x382   :  { %2344 = vmatmul.mubr.f32.gmra.mrb[18].mxu1 %v3594_v17 }
 0x383   :  { %2346 = vmatprep.mubr.f32.mxu1 %v3597_v21 }
 0x386   :  { %2347 = vmatmul.mubr.f32.gmra.mrb[20].mxu1 %v3600_v24 }
 0x387   :  { %2349 = vmatprep.mubr.f32.mxu1 %v3603_v26 }
 0x38a   :  { %2350 = vmatmul.mubr.f32.gmra.mrb[22].mxu1 %v3606_v29 }
 0x38b   :  { %2352 = vmatprep.mubr.f32.mxu1 %v3609_v31 }
 0x38e   :  { %2353 = vmatmul.mubr.f32.gmra.mrb[24].mxu1 %v3612_v36 }
 0x38f   :  { %2355 = vmatprep.mubr.f32.mxu1 %v3615_v38 }
 0x392   :  { %2356 = vmatmul.mubr.f32.gmra.mrb[26].mxu1 %v3618_v44 }
 0x393   :  { %2358 = vmatprep.mubr.f32.mxu1 %v3621_v47 }
 0x396   :  { %2359 = vmatmul.mubr.f32.gmra.mrb[28].mxu1 %v3624_v52 }
 0x397   :  { %2361 = vmatprep.mubr.f32.mxu1 %v3627_v56 }
 0x39a   :  { %2362 = vmatmul.mubr.f32.gmra.mrb[30].mxu1 %v3630_v58 }
 0x39b   :  { %2452 = vmatprep.mubr.f32.mxu1 %v3481_v42 }
 0x451   :  { %v2342_v0 = vpop.f32.mrb[16].mxu1 }
 0x452   :  { %v851_v30 = vpop.f32.mrb[17].mxu1 }
 0x453   :  { %2396 = vmatprep.mubr.f32.mxu0 %v851_v30 }
 0x454   :  { %2397 = vmatmul.mubr.f32.vlgmr.msra.gmra.mrb[32].mxu0 %v2342_v0 }
 0x455   :  { %v2345_v13 = vpop.f32.mrb[18].mxu1  ;;  %2888 = vmatpush3.bf16.msra.mxu0 %v3484_v46 }
 0x456   :  { %v861_v15 = vpop.f32.mrb[19].mxu1  ;;  %2890 = vmatprep.subr.bf16.mxu0 %v3486_v48 }
 0x457   :  { %2399 = vmatprep.mubr.f32.mxu0 %v861_v15 }
 0x458   :  { %2400 = vmatmul.mubr.f32.gmra.mrb[34].mxu0 %v2345_v13 }
 0x459   :  { %v2348_v16 = vpop.f32.mrb[20].mxu1  ;;  %2892 = vmatpush3.bf16.msra.mxu0 %v3486_v48 }
 0x45a   :  { %v871_v19 = vpop.f32.mrb[21].mxu1  ;;  %2894 = vmatprep.subr.bf16.mxu0 %v3491_v51 }
 0x45b   :  { %2402 = vmatprep.mubr.f32.mxu0 %v871_v19 }
 0x45c   :  { %2403 = vmatmul.mubr.f32.gmra.mrb[36].mxu0 %v2348_v16 }
 0x45d   :  { %v2351_v42 = vpop.f32.mrb[22].mxu1  ;;  %2896 = vmatpush3.bf16.msra.mxu0 %v3491_v51 }
 0x45e   :  { %v881_v22 = vpop.f32.mrb[23].mxu1  ;;  %2898 = vmatprep.subr.bf16.mxu0 %v3495_v54 }
 0x45f   :  { %2405 = vmatprep.mubr.f32.mxu0 %v881_v22 }
 0x460   :  { %2406 = vmatmul.mubr.f32.gmra.mrb[38].mxu0 %v2351_v42 }
 0x461   :  { %v2354_v46 = vpop.f32.mrb[24].mxu1  ;;  %2900 = vmatpush3.bf16.msra.mxu0 %v3495_v54 }
 0x462   :  { %v891_v39 = vpop.f32.mrb[25].mxu1  ;;  %2902 = vmatprep.subr.bf16.mxu0 %v3499_v57 }
 0x463   :  { %2408 = vmatprep.mubr.f32.mxu0 %v891_v39 }
 0x464   :  { %2409 = vmatmul.mubr.f32.gmra.mrb[40].mxu0 %v2354_v46 }
 0x465   :  { %v2357_v48 = vpop.f32.mrb[26].mxu1  ;;  %2904 = vmatpush3.bf16.msra.mxu0 %v3499_v57 }
 0x466   :  { %v901_v43 = vpop.f32.mrb[27].mxu1  ;;  %2906 = vmatprep.subr.bf16.mxu0 %v3503_v60 }
 0x467   :  { %2411 = vmatprep.mubr.f32.mxu0 %v901_v43 }
 0x468   :  { %2412 = vmatmul.mubr.f32.gmra.mrb[42].mxu0 %v2357_v48 }
 0x469   :  { %v2360_v51 = vpop.f32.mrb[28].mxu1  ;;  %2908 = vmatpush3.bf16.msra.mxu0 %v3503_v60 }
 0x46a   :  { %v911_v28 = vpop.f32.mrb[29].mxu1  ;;  %2910 = vmatprep.subr.bf16.mxu0 %v3507_v63 }
 0x46b   :  { %2414 = vmatprep.mubr.f32.mxu0 %v911_v28 }
 0x46c   :  { %2415 = vmatmul.mubr.f32.gmra.mrb[44].mxu0 %v2360_v51 }
 0x46d   :  { %v2363_v54 = vpop.f32.mrb[30].mxu1  ;;  %2912 = vmatpush3.bf16.msra.mxu0 %v3507_v63 }
 0x46e   :  { %v921_v37 = vpop.f32.mrb[31].mxu1  ;;  %2914 = vmatprep.subr.bf16.mxu0 %v3511_v2 }
 0x46f   :  { %2417 = vmatprep.mubr.f32.mxu0 %v921_v37 }
 0x470   :  { %2418 = vmatmul.mubr.f32.gmra.mrb[46].mxu0 %v2363_v54 }
 0x471   :  { %2916 = vmatpush3.bf16.msra.mxu0 %v3511_v2 }
 0x527   :  { %v2398_v57 = vpop.f32.mrb[32].mxu0 }
 0x528   :  { %v1002_v41 = vadd.f32 %v2398_v57, %v3658_v33  ;;  %v996_v45 = vpop.f32.mrb[33].mxu0 }
 0x529   :  { %v997_v60 = vadd.f32 %v996_v45, %v3662_v35 }
 0x52a   :  { %v1076_v49 = vmax.f32 %v1002_v41, 0.0 }
 0x52b   :  { %v1075_v50 = vmax.f32 %v997_v60, 0.0  ;;  %v2401_v53 = vpop.f32.mrb[34].mxu0 }
 0x52c   :  { %v1012_v1 = vadd.f32 %v2401_v53, %v3668_v55  ;;  %v1006_v7 = vpop.f32.mrb[35].mxu0 }
 0x52d   :  { %v2853_v63 = vpack.c.bf16 %v1076_v49, %v1075_v50  ;;  %v1007_v4 = vadd.f32 %v1006_v7, %v3672_v62 }
 0x52e   :  { %v1078_v6 = vmax.f32 %v1012_v1, 0.0 }
 0x52f   :  { %v1077_v8 = vmax.f32 %v1007_v4, 0.0  ;;  %v2404_v32 = vpop.f32.mrb[36].mxu0  ;;  %2854 = vmatprep.subr.bf16.mxu1 %v2853_v63 }
 0x530   :  { %v1022_v2 = vadd.f32 %v2404_v32, %v3678_v9  ;;  %v1016_v34 = vpop.f32.mrb[37].mxu0  ;;  %2856 = vmatpush3.bf16.msra.mxu1 %v2853_v63 }
 0x531   :  { %v2857_v61 = vpack.c.bf16 %v1078_v6, %v1077_v8  ;;  %v1017_v0 = vadd.f32 %v1016_v34, %v3682_v11 }
 0x532   :  { %v1080_v30 = vmax.f32 %v1022_v2, 0.0 }
 0x533   :  { %v1079_v13 = vmax.f32 %v1017_v0, 0.0  ;;  %v2407_v15 = vpop.f32.mrb[38].mxu0  ;;  %2858 = vmatprep.subr.bf16.mxu1 %v2857_v61 }
 0x534   :  { %v1032_v16 = vadd.f32 %v2407_v15, %v3688_v23  ;;  %v1026_v19 = vpop.f32.mrb[39].mxu0  ;;  %2860 = vmatpush3.bf16.msra.mxu1 %v2857_v61 }
 0x535   :  { %v2861_v42 = vpack.c.bf16 %v1080_v30, %v1079_v13  ;;  %v1027_v22 = vadd.f32 %v1026_v19, %v3692_v40 }
 0x536   :  { %v1082_v46 = vmax.f32 %v1032_v16, 0.0 }
 0x537   :  { %v1081_v39 = vmax.f32 %v1027_v22, 0.0  ;;  %v2410_v48 = vpop.f32.mrb[40].mxu0  ;;  %2862 = vmatprep.subr.bf16.mxu1 %v2861_v42  ;;  %v250_v22 = vld [vmem:[#allocation11 + $0x58] sm:$0xff] }
 0x538   :  { %v1042_v43 = vadd.f32 %v2410_v48, %v3698_v59  ;;  %v1036_v51 = vpop.f32.mrb[41].mxu0  ;;  %2864 = vmatpush3.bf16.msra.mxu1 %v2861_v42  ;;  %v249_v42 = vld [vmem:[#allocation11 + $0x50] sm:$0xff]  ;;  %v252_v48 = vld [vmem:[#allocation11 + $0x68] sm:$0xff] }
 0x539   :  { %v2865_v28 = vpack.c.bf16 %v1082_v46, %v1081_v39  ;;  %v1037_v54 = vadd.f32 %v1036_v51, %v3702_v5  ;;  %v2937_v46 = vpack.c.bf16 %v250_v22, %v249_v42  ;;  %v251_v39 = vld [vmem:[#allocation11 + $0x60] sm:$0xff] }
 0x53a   :  { %v1084_v37 = vmax.f32 %v1042_v43, 0.0  ;;  %v2941_v43 = vpack.c.bf16 %v252_v48, %v251_v39 }
 0x53b   :  { %v1083_v57 = vmax.f32 %v1037_v54, 0.0  ;;  %v2413_v41 = vpop.f32.mrb[42].mxu0  ;;  %2866 = vmatprep.subr.bf16.mxu1 %v2865_v28 }
 0x53c   :  { %v1052_v45 = vadd.f32 %v2413_v41, %v3708_v10  ;;  %v1046_v60 = vpop.f32.mrb[43].mxu0  ;;  %2868 = vmatpush3.bf16.msra.mxu1 %v2865_v28 }
 0x53d   :  { %v2869_v49 = vpack.c.bf16 %v1084_v37, %v1083_v57  ;;  %v1047_v50 = vadd.f32 %v1046_v60, %v3712_v12 }
 0x53e   :  { %v1086_v53 = vmax.f32 %v1052_v45, 0.0 }
 0x53f   :  { %v1085_v1 = vmax.f32 %v1047_v50, 0.0  ;;  %v2416_v7 = vpop.f32.mrb[44].mxu0  ;;  %2870 = vmatprep.subr.bf16.mxu1 %v2869_v49 }
 0x540   :  { %v1062_v63 = vadd.f32 %v2416_v7, %v3718_v18  ;;  %v1056_v4 = vpop.f32.mrb[45].mxu0  ;;  %2872 = vmatpush3.bf16.msra.mxu1 %v2869_v49 }
 0x541   :  { %v2873_v6 = vpack.c.bf16 %v1086_v53, %v1085_v1  ;;  %v1057_v8 = vadd.f32 %v1056_v4, %v3722_v20 }
 0x542   :  { %v1088_v32 = vmax.f32 %v1062_v63, 0.0 }
 0x543   :  { %v1087_v2 = vmax.f32 %v1057_v8, 0.0  ;;  %v2419_v34 = vpop.f32.mrb[46].mxu0  ;;  %2874 = vmatprep.subr.bf16.mxu1 %v2873_v6  ;;  %v253_v8 = vld [vmem:[#allocation11 + $0x70] sm:$0xff] }
 0x544   :  { %v1072_v61 = vadd.f32 %v2419_v34, %v3728_v25  ;;  %v1066_v0 = vpop.f32.mrb[47].mxu0  ;;  %2876 = vmatpush3.bf16.msra.mxu1 %v2873_v6 }
 0x545   :  { %v2877_v30 = vpack.c.bf16 %v1088_v32, %v1087_v2  ;;  %v1067_v13 = vadd.f32 %v1066_v0, %v3732_v27  ;;  %v254_v32 = vld [vmem:[#allocation11 + $0x78] sm:$0xff] }
 0x546   :  { %v1090_v15 = vmax.f32 %v1072_v61, 0.0  ;;  %v2945_v2 = vpack.c.bf16 %v254_v32, %v253_v8  ;;  %v264_v32 = vld [vmem:[#allocation13 + $0x40] sm:$0xff] }
 0x547   :  { %v1089_v16 = vmax.f32 %v1067_v13, 0.0  ;;  %2878 = vmatprep.subr.bf16.mxu1 %v2877_v30 }
 0x548   :  { %2880 = vmatpush3.bf16.msra.mxu1 %v2877_v30 }
 0x549   :  { %v2881_v19 = vpack.c.bf16 %v1090_v15, %v1089_v16 }
 0x54b   :  { %2882 = vmatprep.subr.bf16.mxu1 %v2881_v19 }
 0x54c   :  { %2884 = vmatpush3.bf16.msra.mxu1 %v2881_v19 }
 0x54f   :  { %2453 = vmatmul.mubr.f32.vlgmr.msra.gmra.mrb[32].mxu1 %v3588_v14  ;;  %v239_v14 = vld [vmem:[#allocation11] sm:$0xff] }
 0x550   :  { %2455 = vmatprep.mubr.f32.mxu1 %v3591_v3  ;;  %v240_v3 = vld [vmem:[#allocation11 + $0x8] sm:$0xff] }
 0x553   :  { %2456 = vmatmul.mubr.f32.gmra.mrb[34].mxu1 %v3594_v17  ;;  %v241_v17 = vld [vmem:[#allocation11 + $0x10] sm:$0xff] }
 0x554   :  { %2458 = vmatprep.mubr.f32.mxu1 %v3597_v21  ;;  %v2917_v21 = vpack.c.bf16 %v240_v3, %v239_v14 }
 0x556   :  { %2918 = vmatprep.subr.bf16.mxu1 %v2917_v21 }
 0x557   :  { %2459 = vmatmul.mubr.f32.gmra.mrb[36].mxu1 %v3600_v24  ;;  %v242_v24 = vld [vmem:[#allocation11 + $0x18] sm:$0xff] }
 0x558   :  { %2461 = vmatprep.mubr.f32.mxu1 %v3603_v26  ;;  %v2921_v26 = vpack.c.bf16 %v242_v24, %v241_v17  ;;  %2920 = vmatpush3.bf16.msra.mxu1 %v2917_v21 }
 0x55a   :  { %2922 = vmatprep.subr.bf16.mxu1 %v2921_v26 }
 0x55b   :  { %2462 = vmatmul.mubr.f32.gmra.mrb[38].mxu1 %v3606_v29  ;;  %v243_v29 = vld [vmem:[#allocation11 + $0x20] sm:$0xff] }
 0x55c   :  { %2464 = vmatprep.mubr.f32.mxu1 %v3609_v31  ;;  %v244_v31 = vld [vmem:[#allocation11 + $0x28] sm:$0xff]  ;;  %2924 = vmatpush3.bf16.msra.mxu1 %v2921_v26 }
 0x55f   :  { %2465 = vmatmul.mubr.f32.gmra.mrb[40].mxu1 %v3612_v36  ;;  %v2925_v36 = vpack.c.bf16 %v244_v31, %v243_v29 }
 0x560   :  { %2467 = vmatprep.mubr.f32.mxu1 %v3615_v38  ;;  %v245_v38 = vld [vmem:[#allocation11 + $0x30] sm:$0xff] }
 0x561   :  { %2926 = vmatprep.subr.bf16.mxu1 %v2925_v36 }
 0x562   :  { %2928 = vmatpush3.bf16.msra.mxu1 %v2925_v36 }
 0x563   :  { %2468 = vmatmul.mubr.f32.gmra.mrb[42].mxu1 %v3618_v44  ;;  %v246_v44 = vld [vmem:[#allocation11 + $0x38] sm:$0xff] }
 0x564   :  { %2470 = vmatprep.mubr.f32.mxu1 %v3621_v47  ;;  %v2929_v47 = vpack.c.bf16 %v246_v44, %v245_v38 }
 0x566   :  { %2930 = vmatprep.subr.bf16.mxu1 %v2929_v47 }
 0x567   :  { %2471 = vmatmul.mubr.f32.gmra.mrb[44].mxu1 %v3624_v52  ;;  %v247_v52 = vld [vmem:[#allocation11 + $0x40] sm:$0xff] }
 0x568   :  { %2473 = vmatprep.mubr.f32.mxu1 %v3627_v56  ;;  %v248_v56 = vld [vmem:[#allocation11 + $0x48] sm:$0xff]  ;;  %2932 = vmatpush3.bf16.msra.mxu1 %v2929_v47 }
 0x56b   :  { %2474 = vmatmul.mubr.f32.gmra.mrb[46].mxu1 %v3630_v58  ;;  %v2933_v58 = vpack.c.bf16 %v248_v56, %v247_v52 }
 0x56d   :  { %2934 = vmatprep.subr.bf16.mxu1 %v2933_v58 }
 0x56e   :  { %2936 = vmatpush3.bf16.msra.mxu1 %v2933_v58 }
 0x56f   :  { %2938 = vmatprep.subr.bf16.mxu1 %v2937_v46 }
 0x572   :  { %2940 = vmatpush3.bf16.msra.mxu1 %v2937_v46 }
 0x573   :  { %2942 = vmatprep.subr.bf16.mxu1 %v2941_v43 }
 0x576   :  { %2944 = vmatpush3.bf16.msra.mxu1 %v2941_v43 }
 0x577   :  { %2946 = vmatprep.subr.bf16.mxu1 %v2945_v2 }
 0x57a   :  { %2948 = vmatpush3.bf16.msra.mxu1 %v2945_v2  ;;  %v265_v2 = vld [vmem:[#allocation13 + $0x48] sm:$0xff] }
 0x622   :  { %v2454_v51 = vpop.f32.mrb[32].mxu1 }
 0x623   :  { %v1157_v28 = vpop.f32.mrb[33].mxu1 }
 0x624   :  { %2508 = vmatprep.mubr.f32.mxu0 %v1157_v28 }
 0x625   :  { %2509 = vmatmul.mubr.f32.vlgmr.msra.gmra.mrb[48].mxu0 %v2454_v51 }
 0x626   :  { %v2457_v54 = vpop.f32.mrb[34].mxu1 }
 0x627   :  { %v1167_v37 = vpop.f32.mrb[35].mxu1 }
 0x628   :  { %2511 = vmatprep.mubr.f32.mxu0 %v1167_v37 }
 0x629   :  { %2512 = vmatmul.mubr.f32.gmra.mrb[50].mxu0 %v2457_v54 }
 0x62a   :  { %v2460_v57 = vpop.f32.mrb[36].mxu1 }
 0x62b   :  { %v1177_v41 = vpop.f32.mrb[37].mxu1 }
 0x62c   :  { %2514 = vmatprep.mubr.f32.mxu0 %v1177_v41 }
 0x62d   :  { %2515 = vmatmul.mubr.f32.gmra.mrb[52].mxu0 %v2460_v57 }
 0x62e   :  { %v2463_v45 = vpop.f32.mrb[38].mxu1 }
 0x62f   :  { %v1187_v60 = vpop.f32.mrb[39].mxu1 }
 0x630   :  { %2517 = vmatprep.mubr.f32.mxu0 %v1187_v60  ;;  %v258_v60 = vld [vmem:[#allocation13 + $0x10] sm:$0xff] }
 0x631   :  { %2518 = vmatmul.mubr.f32.gmra.mrb[54].mxu0 %v2463_v45 }
 0x632   :  { %v2466_v49 = vpop.f32.mrb[40].mxu1 }
 0x633   :  { %v1197_v50 = vpop.f32.mrb[41].mxu1 }
 0x634   :  { %2520 = vmatprep.mubr.f32.mxu0 %v1197_v50  ;;  %v259_v50 = vld [vmem:[#allocation13 + $0x18] sm:$0xff] }
 0x635   :  { %2521 = vmatmul.mubr.f32.gmra.mrb[56].mxu0 %v2466_v49 }
 0x636   :  { %v2469_v53 = vpop.f32.mrb[42].mxu1 }
 0x637   :  { %v1207_v1 = vpop.f32.mrb[43].mxu1 }
 0x638   :  { %2523 = vmatprep.mubr.f32.mxu0 %v1207_v1  ;;  %v260_v1 = vld [vmem:[#allocation13 + $0x20] sm:$0xff] }
 0x639   :  { %2524 = vmatmul.mubr.f32.gmra.mrb[58].mxu0 %v2469_v53  ;;  %v2977_v53 = vpack.c.bf16 %v259_v50, %v258_v60 }
 0x63a   :  { %v2472_v7 = vpop.f32.mrb[44].mxu1 }
 0x63b   :  { %v1217_v63 = vpop.f32.mrb[45].mxu1 }
 0x63c   :  { %2526 = vmatprep.mubr.f32.mxu0 %v1217_v63 }
 0x63d   :  { %2527 = vmatmul.mubr.f32.gmra.mrb[60].mxu0 %v2472_v7  ;;  %v261_v7 = vld [vmem:[#allocation13 + $0x28] sm:$0xff] }
 0x63e   :  { %v2475_v4 = vpop.f32.mrb[46].mxu1  ;;  %v2980_v63 = vpack.c.bf16 %v261_v7, %v260_v1 }
 0x63f   :  { %v1227_v6 = vpop.f32.mrb[47].mxu1 }
 0x640   :  { %2529 = vmatprep.mubr.f32.mxu0 %v1227_v6  ;;  %v263_v6 = vld [vmem:[#allocation13 + $0x38] sm:$0xff] }
 0x641   :  { %2530 = vmatmul.mubr.f32.gmra.mrb[62].mxu0 %v2475_v4  ;;  %v262_v4 = vld [vmem:[#allocation13 + $0x30] sm:$0xff] }
 0x642   :  { %v2983_v8 = vpack.c.bf16 %v263_v6, %v262_v4 }
 0x6f8   :  { %v2510_v34 = vpop.f32.mrb[48].mxu0 }
 0x6f9   :  { %v1308_v61 = vadd.f32 %v2510_v34, %v3658_v33  ;;  %v1302_v0 = vpop.f32.mrb[49].mxu0  ;;  %v2986_v34 = vpack.c.bf16 %v265_v2, %v264_v32 }
 0x6fa   :  { %v1303_v30 = vadd.f32 %v1302_v0, %v3662_v35  ;;  %v267_v0 = vld [vmem:[#allocation13 + $0x58] sm:$0xff] }
 0x6fb   :  { %v1382_v16 = vmax.f32 %v1308_v61, 0.0  ;;  %v266_v61 = vld [vmem:[#allocation13 + $0x50] sm:$0xff] }
 0x6fc   :  { %v1381_v13 = vmax.f32 %v1303_v30, 0.0  ;;  %v2513_v15 = vpop.f32.mrb[50].mxu0  ;;  %v2989_v30 = vpack.c.bf16 %v267_v0, %v266_v61  ;;  %v204_v0 = vld [vmem:[#allocation7] sm:$0xff] }
 0x6fd   :  { %v1318_v19 = vadd.f32 %v2513_v15, %v3668_v55  ;;  %v1312_v14 = vpop.f32.mrb[51].mxu0  ;;  %v269_v15 = vld [vmem:[#allocation13 + $0x68] sm:$0xff] }
 0x6fe   :  { %v1313_v3 = vadd.f32 %v1312_v14, %v3672_v62  ;;  %2564 = vmatprep.mubr.f32.mxu1 %v1381_v13  ;;  %v268_v13 = vld [vmem:[#allocation13 + $0x60] sm:$0xff] }
 0x6ff   :  { %2565 = vmatmul.mubr.f32.vlgmr.msra.gmra.mrb[48].mxu1 %v1382_v16  ;;  %v1384_v24 = vmax.f32 %v1318_v19, 0.0  ;;  %v2992_v16 = vpack.c.bf16 %v269_v15, %v268_v13  ;;  %v3830_v19 = vld [vmem:[%s3894_s8] ss:$0 sm:$0xff] }
 0x700   :  { %v1383_v17 = vmax.f32 %v1313_v3, 0.0  ;;  %v2516_v21 = vpop.f32.mrb[52].mxu0  ;;  %v271_v13 = vld [vmem:[#allocation13 + $0x78] sm:$0xff] }
 0x701   :  { %v1328_v26 = vadd.f32 %v2516_v21, %v3678_v9  ;;  %v1322_v29 = vpop.f32.mrb[53].mxu0 }
 0x702   :  { %v1323_v33 = vadd.f32 %v1322_v29, %v3682_v11  ;;  %2567 = vmatprep.mubr.f32.mxu1 %v1383_v17 }
 0x703   :  { %2568 = vmatmul.mubr.f32.gmra.mrb[50].mxu1 %v1384_v24  ;;  %v1386_v36 = vmax.f32 %v1328_v26, 0.0 }
 0x704   :  { %v1385_v35 = vmax.f32 %v1323_v33, 0.0  ;;  %v2519_v31 = vpop.f32.mrb[54].mxu0 }
 0x705   :  { %v1338_v55 = vadd.f32 %v2519_v31, %v3688_v23  ;;  %v1332_v38 = vpop.f32.mrb[55].mxu0 }
 0x706   :  { %v1333_v62 = vadd.f32 %v1332_v38, %v3692_v40  ;;  %2570 = vmatprep.mubr.f32.mxu1 %v1385_v35 }
 0x707   :  { %2571 = vmatmul.mubr.f32.gmra.mrb[52].mxu1 %v1386_v36  ;;  %v1388_v52 = vmax.f32 %v1338_v55, 0.0 }
 0x708   :  { %v1387_v44 = vmax.f32 %v1333_v62, 0.0  ;;  %v2522_v47 = vpop.f32.mrb[56].mxu0 }
 0x709   :  { %v1348_v9 = vadd.f32 %v2522_v47, %v3698_v59  ;;  %v1342_v56 = vpop.f32.mrb[57].mxu0 }
 0x70a   :  { %v1343_v11 = vadd.f32 %v1342_v56, %v3702_v5  ;;  %2573 = vmatprep.mubr.f32.mxu1 %v1387_v44 }
 0x70b   :  { %2574 = vmatmul.mubr.f32.gmra.mrb[54].mxu1 %v1388_v52  ;;  %v1390_v22 = vmax.f32 %v1348_v9, 0.0 }
 0x70c   :  { %v1389_v58 = vmax.f32 %v1343_v11, 0.0  ;;  %v2525_v42 = vpop.f32.mrb[58].mxu0 }
 0x70d   :  { %v1358_v23 = vadd.f32 %v2525_v42, %v3708_v10  ;;  %v1352_v46 = vpop.f32.mrb[59].mxu0 }
 0x70e   :  { %v1353_v40 = vadd.f32 %v1352_v46, %v3712_v12  ;;  %2576 = vmatprep.mubr.f32.mxu1 %v1389_v58 }
 0x70f   :  { %2577 = vmatmul.mubr.f32.gmra.mrb[56].mxu1 %v1390_v22  ;;  %v1392_v43 = vmax.f32 %v1358_v23, 0.0 }
 0x710   :  { %v1391_v39 = vmax.f32 %v1353_v40, 0.0  ;;  %v2528_v48 = vpop.f32.mrb[60].mxu0 }
 0x711   :  { %v1368_v59 = vadd.f32 %v2528_v48, %v3718_v18  ;;  %v1362_v51 = vpop.f32.mrb[61].mxu0  ;;  %v3259_v18 = vmov 0.0|0.0  }
 0x712   :  { %v1363_v5 = vadd.f32 %v1362_v51, %v3722_v20  ;;  %2579 = vmatprep.mubr.f32.mxu1 %v1391_v39  ;;  %2949 = vmatprep.subr.bf16.mxu0 %v3259_v18  ;;  %v3261_v20 = vmov 0.0  }
 0x713   :  { %2580 = vmatmul.mubr.f32.gmra.mrb[58].mxu1 %v1392_v43  ;;  %v1394_v37 = vmax.f32 %v1368_v59, 0.0  ;;  %2973 = vmatprep.subr.bf16.mxu1 %v3259_v18 }
 0x714   :  { %v1393_v28 = vmax.f32 %v1363_v5, 0.0  ;;  %v2531_v54 = vpop.f32.mrb[62].mxu0  ;;  %2620 = vmatprep.mubr.msk.f32.mxu0 %vm3260_vm0, %v3261_v20 }
 0x715   :  { %v1378_v10 = vadd.f32 %v2531_v54, %v3728_v25  ;;  %v1372_v57 = vpop.f32.mrb[63].mxu0  ;;  %v256_v25 = vld [vmem:[#allocation13] sm:$0xff] }
 0x716   :  { %v1373_v12 = vadd.f32 %v1372_v57, %v3732_v27  ;;  %2582 = vmatprep.mubr.f32.mxu1 %v1393_v28  ;;  %v257_v27 = vld [vmem:[#allocation13 + $0x8] sm:$0xff] }
 0x717   :  { %2583 = vmatmul.mubr.f32.gmra.mrb[60].mxu1 %v1394_v37  ;;  %v1396_v45 = vmax.f32 %v1378_v10, 0.0  ;;  %v2974_v49 = vpack.c.bf16 %v257_v27, %v256_v25 }
 0x718   :  { %v1395_v41 = vmax.f32 %v1373_v12, 0.0 }
 0x719   :  { %2975 = vmatpush3.bf16.msra.mxu1 %v2974_v49 }
 0x71a   :  { %2585 = vmatprep.mubr.f32.mxu1 %v1395_v41  ;;  %2976 = vmatprep.subr.bf16.mxu1 %v3259_v18 }
 0x71b   :  { %2586 = vmatmul.mubr.f32.gmra.mrb[62].mxu1 %v1396_v45 }
 0x71c   :  { %2655 = vmatprep.mubr.msk.f32.mxu1 %vm3260_vm0, %v3261_v20 }
 0x71d   :  { %2978 = vmatpush3.bf16.msra.mxu1 %v2977_v53 }
 0x71e   :  { %2979 = vmatprep.subr.bf16.mxu1 %v3259_v18 }
 0x721   :  { %2981 = vmatpush3.bf16.msra.mxu1 %v2980_v63 }
 0x722   :  { %2982 = vmatprep.subr.bf16.mxu1 %v3259_v18 }
 0x725   :  { %2984 = vmatpush3.bf16.msra.mxu1 %v2983_v8 }
 0x726   :  { %2985 = vmatprep.subr.bf16.mxu1 %v3259_v18 }
 0x729   :  { %2987 = vmatpush3.bf16.msra.mxu1 %v2986_v34 }
 0x72a   :  { %2988 = vmatprep.subr.bf16.mxu1 %v3259_v18 }
 0x72d   :  { %2990 = vmatpush3.bf16.msra.mxu1 %v2989_v30  ;;  %v270_v30 = vld [vmem:[#allocation13 + $0x70] sm:$0xff] }
 0x72e   :  { %2991 = vmatprep.subr.bf16.mxu1 %v3259_v18  ;;  %v2995_v15 = vpack.c.bf16 %v271_v13, %v270_v30 }
 0x731   :  { %2993 = vmatpush3.bf16.msra.mxu1 %v2992_v16  ;;  %v273_v16 = vld [vmem:[#allocation14] sm:$0xff] }
 0x732   :  { %2994 = vmatprep.subr.bf16.mxu1 %v3259_v18 }
 0x735   :  { %2996 = vmatpush3.bf16.msra.mxu1 %v2995_v15 }
 0x7d2   :  { %v2566_v14 = vpop.f32.mrb[48].mxu1 }
 0x7d3   :  { %v1475_v3 = vadd.f32 %v2566_v14, %v3830_v19  ;;  %v1469_v17 = vpop.f32.mrb[49].mxu1  ;;  %v275_v14 = vld [vmem:[#allocation14 + $0x10] sm:$0xff] }
 0x7d4   :  { %v1470_v21 = vadd.f32 %v3830_v19, %v1469_v17  ;;  %v276_v17 = vld [vmem:[#allocation14 + $0x18] sm:$0xff] }
 0x7d5   :  { %v1549_v24 = vmax.f32 %v1475_v3, 0.0 }
 0x7d6   :  { %v1548_v26 = vmax.f32 %v1470_v21, 0.0  ;;  %v2569_v29 = vpop.f32.mrb[50].mxu1  ;;  %v3001_v21 = vpack.c.bf16 %v276_v17, %v275_v14 }
 0x7d7   :  { %v1485_v33 = vadd.f32 %v2569_v29, %v3830_v19  ;;  %v1479_v35 = vpop.f32.mrb[51].mxu1 }
 0x7d8   :  { %v2950_v31 = vpack.c.bf16 %v1549_v24, %v1548_v26  ;;  %v1480_v36 = vadd.f32 %v3830_v19, %v1479_v35  ;;  %v277_v24 = vld [vmem:[#allocation14 + $0x20] sm:$0xff]  ;;  %v278_v26 = vld [vmem:[#allocation14 + $0x28] sm:$0xff] }
 0x7d9   :  { %v1551_v55 = vmax.f32 %v1485_v33, 0.0  ;;  %v3004_v29 = vpack.c.bf16 %v278_v26, %v277_v24  ;;  %v280_v33 = vld [vmem:[#allocation14 + $0x38] sm:$0xff] }
 0x7da   :  { %v1550_v38 = vmax.f32 %v1480_v36, 0.0  ;;  %v2572_v62 = vpop.f32.mrb[52].mxu1  ;;  %2951 = vmatpush3.bf16.msra.mxu0 %v2950_v31  ;;  %v281_v31 = vld [vmem:[#allocation14 + $0x40] sm:$0xff]  ;;  %v282_v36 = vld [vmem:[#allocation14 + $0x48] sm:$0xff] }
 0x7db   :  { %v1495_v44 = vadd.f32 %v2572_v62, %v3830_v19  ;;  %v1489_v47 = vpop.f32.mrb[53].mxu1  ;;  %2952 = vmatprep.subr.bf16.mxu0 %v3259_v18  ;;  %v284_v62 = vld [vmem:[#allocation14 + $0x58] sm:$0xff] }
 0x7dc   :  { %v2953_v52 = vpack.c.bf16 %v1551_v55, %v1550_v38  ;;  %v1490_v9 = vadd.f32 %v3830_v19, %v1489_v47  ;;  %v3010_v55 = vpack.c.bf16 %v282_v36, %v281_v31  ;;  %v283_v38 = vld [vmem:[#allocation14 + $0x50] sm:$0xff]  ;;  %v285_v47 = vld [vmem:[#allocation14 + $0x60] sm:$0xff] }
 0x7dd   :  { %v1553_v56 = vmax.f32 %v1495_v44, 0.0  ;;  %v3013_v44 = vpack.c.bf16 %v284_v62, %v283_v38 }
 0x7de   :  { %v1552_v11 = vmax.f32 %v1490_v9, 0.0  ;;  %v2575_v58 = vpop.f32.mrb[54].mxu1  ;;  %2954 = vmatpush3.bf16.msra.mxu0 %v2953_v52  ;;  %v286_v52 = vld [vmem:[#allocation14 + $0x68] sm:$0xff] }
 0x7df   :  { %v1505_v42 = vadd.f32 %v2575_v58, %v3830_v19  ;;  %v1499_v22 = vpop.f32.mrb[55].mxu1  ;;  %2955 = vmatprep.subr.bf16.mxu0 %v3259_v18  ;;  %v3016_v9 = vpack.c.bf16 %v286_v52, %v285_v47 }
 0x7e0   :  { %v2956_v23 = vpack.c.bf16 %v1553_v56, %v1552_v11  ;;  %v1500_v46 = vadd.f32 %v3830_v19, %v1499_v22  ;;  %v288_v22 = vld [vmem:[#allocation14 + $0x78] sm:$0xff] }
 0x7e1   :  { %v1555_v40 = vmax.f32 %v1505_v42, 0.0  ;;  %v287_v42 = vld [vmem:[#allocation14 + $0x70] sm:$0xff] }
 0x7e2   :  { %v1554_v39 = vmax.f32 %v1500_v46, 0.0  ;;  %v2578_v48 = vpop.f32.mrb[56].mxu1  ;;  %2957 = vmatpush3.bf16.msra.mxu0 %v2956_v23  ;;  %v3019_v23 = vpack.c.bf16 %v288_v22, %v287_v42  ;;  %v1831_v46 = vld [vmem:[%s3896_s10] ss:$0 sm:$0xff]  ;;  %s3262_s10 = smov [#allocation16]  }
 0x7e3   :  { %v1515_v43 = vadd.f32 %v2578_v48, %v3830_v19  ;;  %v1509_v59 = vpop.f32.mrb[57].mxu1  ;;  %2958 = vmatprep.subr.bf16.mxu0 %v3259_v18 }
 0x7e4   :  { %v2959_v51 = vpack.c.bf16 %v1555_v40, %v1554_v39  ;;  %v1510_v5 = vadd.f32 %v3830_v19, %v1509_v59  ;;  %v1788_v59 = vlaneseq }
 0x7e5   :  { %v1557_v28 = vmax.f32 %v1515_v43, 0.0 }
 0x7e6   :  { %v1556_v54 = vmax.f32 %v1510_v5, 0.0  ;;  %v2581_v37 = vpop.f32.mrb[58].mxu1  ;;  %2960 = vmatpush3.bf16.msra.mxu0 %v2959_v51  ;;  %v1789_v51 = vand.u32 127, %v1788_v59 }
 0x7e7   :  { %v1525_v10 = vadd.f32 %v2581_v37, %v3830_v19  ;;  %v1519_v57 = vpop.f32.mrb[59].mxu1  ;;  %2961 = vmatprep.subr.bf16.mxu0 %v3259_v18 }
 0x7e8   :  { %v2962_v12 = vpack.c.bf16 %v1557_v28, %v1556_v54  ;;  %v1520_v41 = vadd.f32 %v3830_v19, %v1519_v57  ;;  %vm1792_vm1 = vcmp.lt.s32.totalorder %v1789_v51, 20 }
 0x7e9   :  { %v1559_v45 = vmax.f32 %v1525_v10, 0.0 }
 0x7ea   :  { %v1558_v25 = vmax.f32 %v1520_v41, 0.0  ;;  %v2584_v27 = vpop.f32.mrb[60].mxu1  ;;  %2963 = vmatpush3.bf16.msra.mxu0 %v2962_v12 }
 0x7eb   :  { %v1535_v60 = vadd.f32 %v2584_v27, %v3830_v19  ;;  %v1529_v49 = vpop.f32.mrb[61].mxu1  ;;  %2964 = vmatprep.subr.bf16.mxu0 %v3259_v18  ;;  %v1791_v27 = vshrl.u32 %v1788_v59, 7 }
 0x7ec   :  { %v2965_v50 = vpack.c.bf16 %v1559_v45, %v1558_v25  ;;  %v1530_v53 = vadd.f32 %v3830_v19, %v1529_v49 }
 0x7ed   :  { %v1561_v1 = vmax.f32 %v1535_v60, 0.0  ;;  %vm1793_vm2 = vcmp.lt.s32.totalorder %v1791_v27, 4 }
 0x7ee   :  { %v1560_v7 = vmax.f32 %v1530_v53, 0.0  ;;  %v2587_v63 = vpop.f32.mrb[62].mxu1  ;;  %2966 = vmatpush3.bf16.msra.mxu0 %v2965_v50  ;;  %vm1805_vm3 = vmand %vm1792_vm1, %vm1793_vm2 }
 0x7ef   :  { %v1545_v4 = vadd.f32 %v2587_v63, %v3830_v19  ;;  %v1539_v6 = vpop.f32.mrb[63].mxu1  ;;  %2967 = vmatprep.subr.bf16.mxu0 %v3259_v18 }
 0x7f0   :  { %v2968_v8 = vpack.c.bf16 %v1561_v1, %v1560_v7  ;;  %v1540_v32 = vadd.f32 %v3830_v19, %v1539_v6  ;;  %v274_v19 = vld [vmem:[#allocation14 + $0x8] sm:$0xff] }
 0x7f1   :  { %v1563_v2 = vmax.f32 %v1545_v4, 0.0  ;;  %v2998_v3 = vpack.c.bf16 %v274_v19, %v273_v16 }
 0x7f2   :  { %v1562_v34 = vmax.f32 %v1540_v32, 0.0  ;;  %2969 = vmatpush3.bf16.msra.mxu0 %v2968_v8 }
 0x7f3   :  { %2970 = vmatprep.subr.bf16.mxu0 %v3259_v18 }
 0x7f4   :  { %v2971_v61 = vpack.c.bf16 %v1563_v2, %v1562_v34 }
 0x7f6   :  { %2972 = vmatpush3.bf16.msra.mxu0 %v2971_v61 }
 0x7f7   :  { %2997 = vmatprep.subr.bf16.mxu0 %v3259_v18 }
 0x7f9   :  { %2621 = vmatmul.mubr.f32.vlgmr.msra.gmra.mrb[64].mxu0 %v204_v0 }
 0x7fa   :  { %2690 = vmatprep.mubr.msk.f32.mxu0 %vm3260_vm0, %v3261_v20  ;;  %2999 = vmatpush3.bf16.msra.mxu0 %v2998_v3  ;;  %v279_v20 = vld [vmem:[#allocation14 + $0x30] sm:$0xff] }
 0x7fb   :  { %3000 = vmatprep.subr.bf16.mxu0 %v3259_v18  ;;  %v3007_v35 = vpack.c.bf16 %v280_v33, %v279_v20 }
 0x7fe   :  { %3002 = vmatpush3.bf16.msra.mxu0 %v3001_v21 }
 0x7ff   :  { %3003 = vmatprep.subr.bf16.mxu0 %v3259_v18 }
 0x802   :  { %3005 = vmatpush3.bf16.msra.mxu0 %v3004_v29 }
 0x803   :  { %3006 = vmatprep.subr.bf16.mxu0 %v3259_v18 }
 0x806   :  { %3008 = vmatpush3.bf16.msra.mxu0 %v3007_v35 }
 0x807   :  { %3009 = vmatprep.subr.bf16.mxu0 %v3259_v18 }
 0x80a   :  { %3011 = vmatpush3.bf16.msra.mxu0 %v3010_v55 }
 0x80b   :  { %3012 = vmatprep.subr.bf16.mxu0 %v3259_v18 }
 0x80e   :  { %3014 = vmatpush3.bf16.msra.mxu0 %v3013_v44 }
 0x80f   :  { %3015 = vmatprep.subr.bf16.mxu0 %v3259_v18 }
 0x812   :  { %3017 = vmatpush3.bf16.msra.mxu0 %v3016_v9 }
 0x813   :  { %3018 = vmatprep.subr.bf16.mxu0 %v3259_v18  ;;  %v1832_v18 = vld [vmem:[%s3898_s12] ss:$0 sm:$0xff]  ;;  %s1815_s12 = sshll.u32 %s3262_s10, 4  ;;  %s1816_s12 = int_to_ptr.vmem [resolvable:$true] %s1815_s12 }
 0x814   :  { %s3215_s0 = scalar_lea.vmem %s1816_s12, 128  ;;  %p3220_p9 = scmp.lt.s32.totalorder %s1816_s12, %s1816_s12 }
 0x815   :  { %p3216_p8 = scmp.ne.s32.totalorder %s1816_s12, %s3215_s0  ;;  %p3221_p10 = scmp.lt.s32.totalorder %s3215_s0, %s3215_s0 }
 0x816   :  { %3020 = vmatpush3.bf16.msra.mxu0 %v3019_v23 }
 0x817   :  { %p3222_p11 = por %p3221_p10, %p3220_p9 }
 0x819   :  { %p3223_p12 = pnand %p3222_p11, %p3216_p8 }
 0x8cc   :  { %v1630_v56 = vpop.f32.mrb[64].mxu0 }
 0x8cd   :  { %v1634_v11 = vmax.f32 %v1630_v56, 0.0  ;;  %v2622_v58 = vpop.f32.mrb[65].mxu0 }
 0x8cf   :  { %2656 = vmatmul.mubr.f32.vlgmr.msra.gmra.mrb[64].mxu1 %v1634_v11 }
 0x9a2   :  { %v1707_v40 = vpop.f32.mrb[64].mxu1 }
 0x9a3   :  { %v1708_v39 = vadd.f32 %v1831_v46, %v1707_v40  ;;  %v2657_v48 = vpop.f32.mrb[65].mxu1 }
 0x9a5   :  { %v1711_v43 = vmax.f32 %v1708_v39, 0.0 }
 0x9a7   :  { %2691 = vmatmul.mubr.f32.vlgmr.msra.gmra.mrb[66].mxu0 %v1711_v43 }
 0xa7a   :  { %v1784_v5 = vpop.f32.mrb[66].mxu0 }
 0xa7b   :  { %v1785_v28 = vadd.f32 %v1832_v18, %v1784_v5  ;;  %v2692_v54 = vpop.f32.mrb[67].mxu0 }
 0xa7d   :  { %v1794_v37 = vsel %vm1792_vm1, %v1785_v28, -1e+30 }
 0xa7e   :  { %1795 = vmax.xlane.f32.xlu0 %v1794_v37 }
 0xb0b   :  { %v1796_v10 = vpop.xlane.xlu0 %1795 }
 0xb0c   :  { %v1797_v57 = vsub.f32 %v1794_v37, %v1796_v10 }
 0xb0e   :  { %v1798_v12 = vmul.f32 1.442695, %v1797_v57 }
 0xb10   :  { %3035 = vpow2.f32 %v1798_v12 }
 0xb1a   :  { %v3036_v41 = vpop.eup %3035 }
 0xb1b   :  { %v1800_v45 = vsel %vm1792_vm1, %v3036_v41, 0.0 }
 0xb1c   :  { %1801 = vadd.xlane.f32.xlu0 %v1800_v45 }
 0xba9   :  { %v1802_v25 = vpop.xlane.xlu0 %1801 }
 0xbaa   :  { %3037 = vlog2.f32 %v1802_v25 }
 0xbb4   :  { %v3038_v60 = vpop.eup %3037 }
 0xbb5   :  { %v1804_v49 = vmul.f32 0.6931472, %v3038_v60 }
 0xbb7   :  { %v1806_v50 = vsub.f32 %v1797_v57, %v1804_v49 }
 0xbb9   :  { %v1807_v53 = vsel %vm1805_vm3, %v1806_v50, 0.0 }
 0xbba   :  { %1808 = vst [vmem:[#allocation16] sm:$0xff] %v1807_v53 }
 0xbbb   :  { %3226 = shalt.err (!%p3223_p12)
}
 0xbbc   :  { %s3227_s23 = scalar_lea.hbm %s3899_s13, 128 }
 0xbbd   :  { %p3228_p13 = scmp.ne.s32.totalorder %s3899_s13, %s3227_s23  ;;  %p3231_p0 = scmp.lt.u32.totalorder %s3227_s23, %s3899_s13 }
 0xbbf   :  { %p3233_p1 = pnand %p3231_p0, %p3228_p13 }
 0xbc1   :  { %3236 = shalt.err (!%p3233_p1)
}
 0xbc2   :  { %1818 = dma.vmem_to_hbm [thread:$0]  %s1816_s12, 128, %s3899_s13, [#allocation4]  }
 0xbc3   :  { %3247 = dma.done.wait [#allocation4], 128  }
 0xbc4   :  { %3248 = vsyncadd [#allocation4], 4294967168 }
 0xbc5   :  { %1822 = vsyncpa [#allocation3], 1 }
 0xbc6   :  { %1823 = vsyncpa [#allocation6], 1 }
 0xbc7   :  { %1824 = vsyncpa [#allocation9], 1 }
 0xbc8   :  { %1825 = vsyncpa [#allocation12], 1 }
 0xbc9   :  { %1826 = vsyncpa [#allocation15], 1 }
 0xbca   :  { %1827 = vsyncpa [#allocation4], 1 }

</bundles_post_ra>
